<compile_context>
chip_gen: v7x
topology: tpu7x:2x2x1
jax: 0.10.0
libtpu: 0.0.40
codegen_flags: <defaults>
</compile_context>

<pallas_src>
import jax
import jax.numpy as jnp
import numpy as np
from jax import lax
from jax.experimental import pallas as pl
from jax.experimental.pallas import tpu as pltpu


# ----------------------------------------------------------------------------
# Fused whole-network kernel
# ----------------------------------------------------------------------------
def build_birnn_kernel(T, B, H, num_layers):
    """Returns a kernel closure over the static network configuration.

    Kernel argument order (all refs):
      x_ref                                  (T*B, Din)   time-major, flattened
      per layer l: wih_f, wih_b,             (d_in, 4H)   packed gate columns
                   whh_f, whh_b,             (H, 4H)
                   b_f, b_b                  (1, 4H)      b_ih + b_hh folded
      fc_wf, fc_wb                           (H, C)       fc weight rows split
      fc_b                                   (1, C)
      out_ref                                (B, C)
      scratch: outf0, outb0, outf1, outb1    (T*B, H)     ping-pong layer outputs
    """
    G4 = 4 * H

    def kernel(*args):
        x_ref = args[0]
        layer_refs = [args[1 + 6 * l: 1 + 6 * (l + 1)] for l in range(num_layers)]
        base = 1 + 6 * num_layers
        fc_wf_ref, fc_wb_ref, fc_b_ref = args[base:base + 3]
        out_ref = args[base + 3]
        sc = args[base + 4:]
        buffers = [(sc[0], sc[1]), (sc[2], sc[3])]

        # Lane mask: packed gate order (i, f, o, g) -> sigmoid on lanes [0,3H),
        # tanh on [3H,4H).  Both activations run on the full 128-lane vreg and
        # are blended, avoiding sub-vreg lane slices on the critical path.
        lane = lax.broadcasted_iota(jnp.int32, (B, G4), 1)
        sig_mask = lane < 3 * H

        def lstm_cell(g, c):
            a = jnp.where(sig_mask, jax.nn.sigmoid(g), jnp.tanh(g))
            i = a[:, :H]
            f = a[:, H:2 * H]
            o = a[:, 2 * H:3 * H]
            gg = a[:, 3 * H:]
            c_new = f * c + i * gg
            h_new = o * jnp.tanh(c_new)
            return h_new, c_new

        hf_last = None
        hb_last = None
        for l in range(num_layers):
            wih_f, wih_b, whh_f, whh_b, b_f, b_b = layer_refs[l]
            is_last = l == num_layers - 1

            # ---- hoisted input projection for the whole layer (both dirs) ---
            if l == 0:
                xin = x_ref[...]                                   # (T*B, Din)
                gx_f = jnp.dot(xin, wih_f[...],
                               preferred_element_type=jnp.float32) + b_f[...]
                gx_b = jnp.dot(xin, wih_b[...],
                               preferred_element_type=jnp.float32) + b_b[...]
            else:
                of_ref, ob_ref = buffers[(l - 1) % 2]
                of = of_ref[...]                                   # (T*B, H)
                ob = ob_ref[...]                                   # (T*B, H)
                wf = wih_f[...]                                    # (2H, 4H)
                wb = wih_b[...]
                gx_f = (jnp.dot(of, wf[:H], preferred_element_type=jnp.float32)
                        + jnp.dot(ob, wf[H:], preferred_element_type=jnp.float32)
                        + b_f[...])
                gx_b = (jnp.dot(of, wb[:H], preferred_element_type=jnp.float32)
                        + jnp.dot(ob, wb[H:], preferred_element_type=jnp.float32)
                        + b_b[...])

            # ---- fused bidirectional recurrence over T steps -----------------
            outf_ref, outb_ref = buffers[l % 2]
            whhf = whh_f[...]
            whhb = whh_b[...]
            h_f = jnp.zeros((B, H), jnp.float32)
            c_f = jnp.zeros((B, H), jnp.float32)
            h_b = jnp.zeros((B, H), jnp.float32)
            c_b = jnp.zeros((B, H), jnp.float32)
            for t in range(T):                       # static, small -> unrolled
                tb = T - 1 - t                       # backward time index
                g_f = gx_f[t * B:(t + 1) * B, :] + jnp.dot(
                    h_f, whhf, preferred_element_type=jnp.float32)
                g_b = gx_b[tb * B:(tb + 1) * B, :] + jnp.dot(
                    h_b, whhb, preferred_element_type=jnp.float32)
                h_f, c_f = lstm_cell(g_f, c_f)
                h_b, c_b = lstm_cell(g_b, c_b)
                if t == 0:
                    hb_last = h_b                    # backward hidden at time T-1
                if not is_last:
                    outf_ref[t * B:(t + 1) * B, :] = h_f
                    outb_ref[tb * B:(tb + 1) * B, :] = h_b
            hf_last = h_f                            # forward hidden at time T-1

        # ---- fused Linear head: out[:, -1, :] @ fc_w.T + fc_b ---------------
        out_ref[...] = (
            jnp.dot(hf_last, fc_wf_ref[...], preferred_element_type=jnp.float32)
            + jnp.dot(hb_last, fc_wb_ref[...], preferred_element_type=jnp.float32)
            + fc_b_ref[...]
        )

    return kernel


# ----------------------------------------------------------------------------
# Parameters (PyTorch layout) + packing into the kernel-friendly layout
# ----------------------------------------------------------------------------
def init_birnn_params(key, input_size, hidden_size, num_layers, num_classes):
    """Same shapes / layout as the PyTorch module (w_ih:(4H,Din), w_hh:(4H,H))."""
    H = hidden_size
    params = {"lstm": []}
    k = 1.0 / np.sqrt(H)
    for layer in range(num_layers):
        d_in = input_size if layer == 0 else 2 * H
        dirs = []
        for _direction in range(2):
            key, k1, k2, k3, k4 = jax.random.split(key, 5)
            w_ih = jax.random.uniform(k1, (4 * H, d_in), jnp.float32, -k, k)
            w_hh = jax.random.uniform(k2, (4 * H, H), jnp.float32, -k, k)
            b_ih = jax.random.uniform(k3, (4 * H,), jnp.float32, -k, k)
            b_hh = jax.random.uniform(k4, (4 * H,), jnp.float32, -k, k)
            dirs.append((w_ih, w_hh, b_ih, b_hh))
        params["lstm"].append(tuple(dirs))

    kf = 1.0 / np.sqrt(2 * H)
    key, k1, k2 = jax.random.split(key, 3)
    params["fc_w"] = jax.random.uniform(k1, (num_classes, 2 * H), jnp.float32, -kf, kf)
    params["fc_b"] = jax.random.uniform(k2, (num_classes,), jnp.float32, -kf, kf)
    return params


def _gate_perm(H):
    # torch gate order (i, f, g, o) -> packed (i, f, o, g): sigmoid lanes are a
    # contiguous [0, 3H) block, tanh lanes are [3H, 4H).
    return np.concatenate([np.arange(0, 2 * H), np.arange(3 * H, 4 * H),
                           np.arange(2 * H, 3 * H)])


def pack_birnn_params(params, hidden_size, num_classes):
    """Pre-transpose / permute / fuse weights once, outside the kernel."""
    H = hidden_size
    perm = _gate_perm(H)
    packed = {
        "layers": [],
        "hidden_size": H,
        "num_classes": num_classes,
        "num_layers": len(params["lstm"]),
    }
    for (fwd, bwd) in params["lstm"]:
        layer = {}
        for tag, (w_ih, w_hh, b_ih, b_hh) in (("f", fwd), ("b", bwd)):
            layer["wih_" + tag] = jnp.transpose(w_ih)[:, perm]      # (d_in, 4H)
            layer["whh_" + tag] = jnp.transpose(w_hh)[:, perm]      # (H, 4H)
            layer["b_" + tag] = (b_ih + b_hh)[perm][None, :]        # (1, 4H)
        packed["layers"].append(layer)
    fc_w, fc_b = params["fc_w"], params["fc_b"]                     # (C,2H),(C,)
    packed["fc_wf"] = jnp.transpose(fc_w[:, :H])                    # (H, C)
    packed["fc_wb"] = jnp.transpose(fc_w[:, H:])                    # (H, C)
    packed["fc_b"] = fc_b[None, :]                                  # (1, C)
    return packed


# ----------------------------------------------------------------------------
# Forward pass (one pallas_call)
# ----------------------------------------------------------------------------
def birnn_forward(packed, x):
    """x: (B, T, input_size) batch-first (PyTorch convention) -> (B, num_classes)."""
    B, T, Din = x.shape
    H = packed["hidden_size"]
    C = packed["num_classes"]
    L = packed["num_layers"]

    # Time-major, flattened (free layout plumbing done once in XLA).
    x2d = jnp.transpose(x, (1, 0, 2)).astype(jnp.float32).reshape(T * B, Din)

    inputs = [x2d]
    in_specs = [pl.BlockSpec((T * B, Din), lambda: (0, 0))]
    for layer in packed["layers"]:
        for name in ("wih_f", "wih_b", "whh_f", "whh_b", "b_f", "b_b"):
            a = layer[name]
            inputs.append(a)
            in_specs.append(pl.BlockSpec(a.shape, lambda: (0, 0)))
    for name in ("fc_wf", "fc_wb", "fc_b"):
        a = packed[name]
        inputs.append(a)
        in_specs.append(pl.BlockSpec(a.shape, lambda: (0, 0)))

    # Advisory cost estimate so XLA schedules neighbors sensibly.
    flops = 0
    trans = 0
    d_in = Din
    for _ in range(L):
        flops += 2 * 2 * T * B * d_in * 4 * H          # input projections
        flops += 2 * 2 * T * B * H * 4 * H             # recurrence matmuls
        flops += T * 2 * B * 10 * H                    # cell elementwise (approx)
        trans += T * 2 * B * (4 * H + H)               # sigmoid/tanh + tanh(c)
        d_in = 2 * H
    flops += 2 * B * 2 * H * C
    bytes_accessed = sum(int(np.prod(a.shape)) * 4 for a in inputs) + B * C * 4
    cost = pl.CostEstimate(flops=flops, transcendentals=trans,
                           bytes_accessed=bytes_accessed)

    kernel = build_birnn_kernel(T, B, H, L)
    return pl.pallas_call(
        kernel,
        out_shape=jax.ShapeDtypeStruct((B, C), jnp.float32),
        in_specs=in_specs,
        out_specs=pl.BlockSpec((B, C), lambda: (0, 0)),
        scratch_shapes=[pltpu.VMEM((T * B, H), jnp.float32)] * 4,
        compiler_params=pltpu.CompilerParams(vmem_limit_bytes=32 * 1024 * 1024),
        cost_estimate=cost,
    )(*inputs)


# ----------------------------------------------------------------------------
# Pure-JAX reference (mirrors the PyTorch module exactly)
# ----------------------------------------------------------------------------
def _ref_lstm_dir(x_tm, w_ih, w_hh, b_ih, b_hh, reverse):
    T, B, _ = x_tm.shape
    H = w_hh.shape[1]
    seq = x_tm[::-1] if reverse else x_tm

    def step(carry, x_t):
        h, c = carry
        g = x_t @ w_ih.T + h @ w_hh.T + b_ih + b_hh
        i = jax.nn.sigmoid(g[:, 0 * H:1 * H])
        f = jax.nn.sigmoid(g[:, 1 * H:2 * H])
        gg = jnp.tanh(g[:, 2 * H:3 * H])
        o = jax.nn.sigmoid(g[:, 3 * H:4 * H])
        c = f * c + i * gg
        h = o * jnp.tanh(c)
        return (h, c), h

    init = (jnp.zeros((B, H), jnp.float32), jnp.zeros((B, H), jnp.float32))
    _, hs = jax.lax.scan(step, init, seq)
    return hs[::-1] if reverse else hs


def birnn_reference(params, x):
    x_tm = jnp.transpose(x, (1, 0, 2)).astype(jnp.float32)
    for (fwd, bwd) in params["lstm"]:
        out_f = _ref_lstm_dir(x_tm, *fwd, reverse=False)
        out_b = _ref_lstm_dir(x_tm, *bwd, reverse=True)
        x_tm = jnp.concatenate([out_f, out_b], axis=-1)
    return x_tm[-1] @ params["fc_w"].T + params["fc_b"]


# ----------------------------------------------------------------------------
if __name__ == "__main__":
    input_size = 16
    hidden_size = 32
    num_layers = 2
    num_classes = 10
    batch = 2
    seq_len = 8

    key = jax.random.PRNGKey(0)
    pkey, xkey = jax.random.split(key)
    params = init_birnn_params(pkey, input_size, hidden_size, num_layers, num_classes)
    packed = pack_birnn_params(params, hidden_size, num_classes)
    x = jax.random.normal(xkey, (batch, seq_len, input_size), dtype=jnp.float32)

    fwd = jax.jit(lambda xx: birnn_forward(packed, xx))
    out = jax.block_until_ready(fwd(x))
    ref = jax.block_until_ready(birnn_reference(params, x))

    assert out.shape == (batch, num_classes), out.shape
    np.testing.assert_allclose(np.asarray(out), np.asarray(ref), rtol=1e-4, atol=1e-4)
    print("KERNEL_OK")
</pallas_src>

<mosaic_0001>
module attributes {stable_mosaic.version = 11 : i64} {
  func.func @kernel(%arg0: memref<16x16xf32, #tpu.memory_space<vmem>>, %arg1: memref<16x128xf32, #tpu.memory_space<vmem>>, %arg2: memref<16x128xf32, #tpu.memory_space<vmem>>, %arg3: memref<32x128xf32, #tpu.memory_space<vmem>>, %arg4: memref<32x128xf32, #tpu.memory_space<vmem>>, %arg5: memref<1x128xf32, #tpu.memory_space<vmem>>, %arg6: memref<1x128xf32, #tpu.memory_space<vmem>>, %arg7: memref<64x128xf32, #tpu.memory_space<vmem>>, %arg8: memref<64x128xf32, #tpu.memory_space<vmem>>, %arg9: memref<32x128xf32, #tpu.memory_space<vmem>>, %arg10: memref<32x128xf32, #tpu.memory_space<vmem>>, %arg11: memref<1x128xf32, #tpu.memory_space<vmem>>, %arg12: memref<1x128xf32, #tpu.memory_space<vmem>>, %arg13: memref<32x10xf32, #tpu.memory_space<vmem>>, %arg14: memref<32x10xf32, #tpu.memory_space<vmem>>, %arg15: memref<1x10xf32, #tpu.memory_space<vmem>>, %arg16: memref<2x10xf32, #tpu.memory_space<vmem>>, %arg17: memref<16x32xf32, #tpu.memory_space<vmem>>, %arg18: memref<16x32xf32, #tpu.memory_space<vmem>>, %arg19: memref<16x32xf32, #tpu.memory_space<vmem>>, %arg20: memref<16x32xf32, #tpu.memory_space<vmem>>) attributes {dimension_semantics = [], scalar_prefetch = 0 : i64, scratch_operands = 4 : i64, tpu.core_type = #tpu.core_type<tc>} {
    %0 = tpu.iota {dimensions = array<i32: 1>} : vector<2x128xi32>
    %c96_i32 = arith.constant 96 : i32
    %1 = vector.broadcast %c96_i32 : i32 to vector<2x128xi32>
    %2 = arith.cmpi slt, %0, %1 : vector<2x128xi32>
    %c0 = arith.constant 0 : index
    %c0_0 = arith.constant 0 : index
    %3 = vector.load %arg0[%c0, %c0_0] : memref<16x16xf32, #tpu.memory_space<vmem>>, vector<16x16xf32>
    %c0_1 = arith.constant 0 : index
    %c0_2 = arith.constant 0 : index
    %4 = vector.load %arg1[%c0_1, %c0_2] : memref<16x128xf32, #tpu.memory_space<vmem>>, vector<16x128xf32>
    %cst = arith.constant dense<0.000000e+00> : vector<16x128xf32>
    %5 = tpu.matmul %3, %4, %cst {dimension_numbers = #tpu.dot_dimension_numbers<[1], [0], [0], [1], [0, 0, 1, 1], [], []>} : vector<16x16xf32>, vector<16x128xf32>, vector<16x128xf32> -> vector<16x128xf32>
    %c0_3 = arith.constant 0 : index
    %c0_4 = arith.constant 0 : index
    %6 = vector.load %arg5[%c0_3, %c0_4] : memref<1x128xf32, #tpu.memory_space<vmem>>, vector<1x128xf32>
    %7 = vector.broadcast %6 : vector<1x128xf32> to vector<16x128xf32>
    %8 = arith.addf %5, %7 : vector<16x128xf32>
    %c0_5 = arith.constant 0 : index
    %c0_6 = arith.constant 0 : index
    %9 = vector.load %arg2[%c0_5, %c0_6] : memref<16x128xf32, #tpu.memory_space<vmem>>, vector<16x128xf32>
    %cst_7 = arith.constant dense<0.000000e+00> : vector<16x128xf32>
    %10 = tpu.matmul %3, %9, %cst_7 {dimension_numbers = #tpu.dot_dimension_numbers<[1], [0], [0], [1], [0, 0, 1, 1], [], []>} : vector<16x16xf32>, vector<16x128xf32>, vector<16x128xf32> -> vector<16x128xf32>
    %c0_8 = arith.constant 0 : index
    %c0_9 = arith.constant 0 : index
    %11 = vector.load %arg6[%c0_8, %c0_9] : memref<1x128xf32, #tpu.memory_space<vmem>>, vector<1x128xf32>
    %12 = vector.broadcast %11 : vector<1x128xf32> to vector<16x128xf32>
    %13 = arith.addf %10, %12 : vector<16x128xf32>
    %c0_10 = arith.constant 0 : index
    %c0_11 = arith.constant 0 : index
    %14 = vector.load %arg3[%c0_10, %c0_11] : memref<32x128xf32, #tpu.memory_space<vmem>>, vector<32x128xf32>
    %c0_12 = arith.constant 0 : index
    %c0_13 = arith.constant 0 : index
    %15 = vector.load %arg4[%c0_12, %c0_13] : memref<32x128xf32, #tpu.memory_space<vmem>>, vector<32x128xf32>
    %cst_14 = arith.constant 0.000000e+00 : f32
    %16 = vector.broadcast %cst_14 : f32 to vector<2x32xf32>
    %cst_15 = arith.constant 0.000000e+00 : f32
    %17 = vector.broadcast %cst_15 : f32 to vector<2x32xf32>
    %cst_16 = arith.constant 0.000000e+00 : f32
    %18 = vector.broadcast %cst_16 : f32 to vector<2x32xf32>
    %cst_17 = arith.constant 0.000000e+00 : f32
    %19 = vector.broadcast %cst_17 : f32 to vector<2x32xf32>
    %20 = vector.extract_strided_slice %8 {offsets = [0, 0], sizes = [2, 128], strides = [1, 1]} : vector<16x128xf32> to vector<2x128xf32>
    %cst_18 = arith.constant dense<0.000000e+00> : vector<2x128xf32>
    %21 = tpu.matmul %16, %14, %cst_18 {dimension_numbers = #tpu.dot_dimension_numbers<[1], [0], [0], [1], [0, 0, 1, 1], [], []>} : vector<2x32xf32>, vector<32x128xf32>, vector<2x128xf32> -> vector<2x128xf32>
    %22 = arith.addf %20, %21 : vector<2x128xf32>
    %23 = vector.extract_strided_slice %13 {offsets = [14, 0], sizes = [2, 128], strides = [1, 1]} : vector<16x128xf32> to vector<2x128xf32>
    %cst_19 = arith.constant dense<0.000000e+00> : vector<2x128xf32>
    %24 = tpu.matmul %18, %15, %cst_19 {dimension_numbers = #tpu.dot_dimension_numbers<[1], [0], [0], [1], [0, 0, 1, 1], [], []>} : vector<2x32xf32>, vector<32x128xf32>, vector<2x128xf32> -> vector<2x128xf32>
    %25 = arith.addf %23, %24 : vector<2x128xf32>
    %26 = arith.negf %22 : vector<2x128xf32>
    %27 = math.exp %26 : vector<2x128xf32>
    %cst_20 = arith.constant 1.000000e+00 : f32
    %28 = vector.broadcast %cst_20 : f32 to vector<2x128xf32>
    %29 = arith.addf %28, %27 : vector<2x128xf32>
    %30 = arith.divf %28, %29 : vector<2x128xf32>
    %31 = math.tanh %22 : vector<2x128xf32>
    %32 = arith.select %2, %30, %31 : vector<2x128xi1>, vector<2x128xf32>
    %33 = vector.extract_strided_slice %32 {offsets = [0, 0], sizes = [2, 32], strides = [1, 1]} : vector<2x128xf32> to vector<2x32xf32>
    %34 = vector.extract_strided_slice %32 {offsets = [0, 32], sizes = [2, 32], strides = [1, 1]} : vector<2x128xf32> to vector<2x32xf32>
    %35 = vector.extract_strided_slice %32 {offsets = [0, 64], sizes = [2, 32], strides = [1, 1]} : vector<2x128xf32> to vector<2x32xf32>
    %36 = vector.extract_strided_slice %32 {offsets = [0, 96], sizes = [2, 32], strides = [1, 1]} : vector<2x128xf32> to vector<2x32xf32>
    %37 = arith.mulf %34, %17 : vector<2x32xf32>
    %38 = arith.mulf %33, %36 : vector<2x32xf32>
    %39 = arith.addf %37, %38 : vector<2x32xf32>
    %40 = math.tanh %39 : vector<2x32xf32>
    %41 = arith.mulf %35, %40 : vector<2x32xf32>
    %42 = arith.negf %25 : vector<2x128xf32>
    %43 = math.exp %42 : vector<2x128xf32>
    %cst_21 = arith.constant 1.000000e+00 : f32
    %44 = vector.broadcast %cst_21 : f32 to vector<2x128xf32>
    %45 = arith.addf %44, %43 : vector<2x128xf32>
    %46 = arith.divf %44, %45 : vector<2x128xf32>
    %47 = math.tanh %25 : vector<2x128xf32>
    %48 = arith.select %2, %46, %47 : vector<2x128xi1>, vector<2x128xf32>
    %49 = vector.extract_strided_slice %48 {offsets = [0, 0], sizes = [2, 32], strides = [1, 1]} : vector<2x128xf32> to vector<2x32xf32>
    %50 = vector.extract_strided_slice %48 {offsets = [0, 32], sizes = [2, 32], strides = [1, 1]} : vector<2x128xf32> to vector<2x32xf32>
    %51 = vector.extract_strided_slice %48 {offsets = [0, 64], sizes = [2, 32], strides = [1, 1]} : vector<2x128xf32> to vector<2x32xf32>
    %52 = vector.extract_strided_slice %48 {offsets = [0, 96], sizes = [2, 32], strides = [1, 1]} : vector<2x128xf32> to vector<2x32xf32>
    %53 = arith.mulf %50, %19 : vector<2x32xf32>
    %54 = arith.mulf %49, %52 : vector<2x32xf32>
    %55 = arith.addf %53, %54 : vector<2x32xf32>
    %56 = math.tanh %55 : vector<2x32xf32>
    %57 = arith.mulf %51, %56 : vector<2x32xf32>
    %c0_22 = arith.constant 0 : index
    %c0_23 = arith.constant 0 : index
    %58 = vector.load %arg17[%c0_22, %c0_23] : memref<16x32xf32, #tpu.memory_space<vmem>>, vector<2x32xf32>
    tpu.vector_store %arg17[%c0_22, %c0_23], %41 {strides = array<i32>} : memref<16x32xf32, #tpu.memory_space<vmem>>, vector<2x32xf32>,
    %c14 = arith.constant 14 : index
    %c0_24 = arith.constant 0 : index
    %59 = vector.load %arg18[%c14, %c0_24] : memref<16x32xf32, #tpu.memory_space<vmem>>, vector<2x32xf32>
    tpu.vector_store %arg18[%c14, %c0_24], %57 {strides = array<i32>} : memref<16x32xf32, #tpu.memory_space<vmem>>, vector<2x32xf32>,
    %60 = vector.extract_strided_slice %8 {offsets = [2, 0], sizes = [2, 128], strides = [1, 1]} : vector<16x128xf32> to vector<2x128xf32>
    %cst_25 = arith.constant dense<0.000000e+00> : vector<2x128xf32>
    %61 = tpu.matmul %41, %14, %cst_25 {dimension_numbers = #tpu.dot_dimension_numbers<[1], [0], [0], [1], [0, 0, 1, 1], [], []>} : vector<2x32xf32>, vector<32x128xf32>, vector<2x128xf32> -> vector<2x128xf32>
    %62 = arith.addf %60, %61 : vector<2x128xf32>
    %63 = vector.extract_strided_slice %13 {offsets = [12, 0], sizes = [2, 128], strides = [1, 1]} : vector<16x128xf32> to vector<2x128xf32>
    %cst_26 = arith.constant dense<0.000000e+00> : vector<2x128xf32>
    %64 = tpu.matmul %57, %15, %cst_26 {dimension_numbers = #tpu.dot_dimension_numbers<[1], [0], [0], [1], [0, 0, 1, 1], [], []>} : vector<2x32xf32>, vector<32x128xf32>, vector<2x128xf32> -> vector<2x128xf32>
    %65 = arith.addf %63, %64 : vector<2x128xf32>
    %66 = arith.negf %62 : vector<2x128xf32>
    %67 = math.exp %66 : vector<2x128xf32>
    %cst_27 = arith.constant 1.000000e+00 : f32
    %68 = vector.broadcast %cst_27 : f32 to vector<2x128xf32>
    %69 = arith.addf %68, %67 : vector<2x128xf32>
    %70 = arith.divf %68, %69 : vector<2x128xf32>
    %71 = math.tanh %62 : vector<2x128xf32>
    %72 = arith.select %2, %70, %71 : vector<2x128xi1>, vector<2x128xf32>
    %73 = vector.extract_strided_slice %72 {offsets = [0, 0], sizes = [2, 32], strides = [1, 1]} : vector<2x128xf32> to vector<2x32xf32>
    %74 = vector.extract_strided_slice %72 {offsets = [0, 32], sizes = [2, 32], strides = [1, 1]} : vector<2x128xf32> to vector<2x32xf32>
    %75 = vector.extract_strided_slice %72 {offsets = [0, 64], sizes = [2, 32], strides = [1, 1]} : vector<2x128xf32> to vector<2x32xf32>
    %76 = vector.extract_strided_slice %72 {offsets = [0, 96], sizes = [2, 32], strides = [1, 1]} : vector<2x128xf32> to vector<2x32xf32>
    %77 = arith.mulf %74, %39 : vector<2x32xf32>
    %78 = arith.mulf %73, %76 : vector<2x32xf32>
    %79 = arith.addf %77, %78 : vector<2x32xf32>
    %80 = math.tanh %79 : vector<2x32xf32>
    %81 = arith.mulf %75, %80 : vector<2x32xf32>
    %82 = arith.negf %65 : vector<2x128xf32>
    %83 = math.exp %82 : vector<2x128xf32>
    %cst_28 = arith.constant 1.000000e+00 : f32
    %84 = vector.broadcast %cst_28 : f32 to vector<2x128xf32>
    %85 = arith.addf %84, %83 : vector<2x128xf32>
    %86 = arith.divf %84, %85 : vector<2x128xf32>
    %87 = math.tanh %65 : vector<2x128xf32>
    %88 = arith.select %2, %86, %87 : vector<2x128xi1>, vector<2x128xf32>
    %89 = vector.extract_strided_slice %88 {offsets = [0, 0], sizes = [2, 32], strides = [1, 1]} : vector<2x128xf32> to vector<2x32xf32>
    %90 = vector.extract_strided_slice %88 {offsets = [0, 32], sizes = [2, 32], strides = [1, 1]} : vector<2x128xf32> to vector<2x32xf32>
    %91 = vector.extract_strided_slice %88 {offsets = [0, 64], sizes = [2, 32], strides = [1, 1]} : vector<2x128xf32> to vector<2x32xf32>
    %92 = vector.extract_strided_slice %88 {offsets = [0, 96], sizes = [2, 32], strides = [1, 1]} : vector<2x128xf32> to vector<2x32xf32>
    %93 = arith.mulf %90, %55 : vector<2x32xf32>
    %94 = arith.mulf %89, %92 : vector<2x32xf32>
    %95 = arith.addf %93, %94 : vector<2x32xf32>
    %96 = math.tanh %95 : vector<2x32xf32>
    %97 = arith.mulf %91, %96 : vector<2x32xf32>
    %c2 = arith.constant 2 : index
    %c0_29 = arith.constant 0 : index
    %98 = vector.load %arg17[%c2, %c0_29] : memref<16x32xf32, #tpu.memory_space<vmem>>, vector<2x32xf32>
    tpu.vector_store %arg17[%c2, %c0_29], %81 {strides = array<i32>} : memref<16x32xf32, #tpu.memory_space<vmem>>, vector<2x32xf32>,
    %c12 = arith.constant 12 : index
    %c0_30 = arith.constant 0 : index
    %99 = vector.load %arg18[%c12, %c0_30] : memref<16x32xf32, #tpu.memory_space<vmem>>, vector<2x32xf32>
    tpu.vector_store %arg18[%c12, %c0_30], %97 {strides = array<i32>} : memref<16x32xf32, #tpu.memory_space<vmem>>, vector<2x32xf32>,
    %100 = vector.extract_strided_slice %8 {offsets = [4, 0], sizes = [2, 128], strides = [1, 1]} : vector<16x128xf32> to vector<2x128xf32>
    %cst_31 = arith.constant dense<0.000000e+00> : vector<2x128xf32>
    %101 = tpu.matmul %81, %14, %cst_31 {dimension_numbers = #tpu.dot_dimension_numbers<[1], [0], [0], [1], [0, 0, 1, 1], [], []>} : vector<2x32xf32>, vector<32x128xf32>, vector<2x128xf32> -> vector<2x128xf32>
    %102 = arith.addf %100, %101 : vector<2x128xf32>
    %103 = vector.extract_strided_slice %13 {offsets = [10, 0], sizes = [2, 128], strides = [1, 1]} : vector<16x128xf32> to vector<2x128xf32>
    %cst_32 = arith.constant dense<0.000000e+00> : vector<2x128xf32>
    %104 = tpu.matmul %97, %15, %cst_32 {dimension_numbers = #tpu.dot_dimension_numbers<[1], [0], [0], [1], [0, 0, 1, 1], [], []>} : vector<2x32xf32>, vector<32x128xf32>, vector<2x128xf32> -> vector<2x128xf32>
    %105 = arith.addf %103, %104 : vector<2x128xf32>
    %106 = arith.negf %102 : vector<2x128xf32>
    %107 = math.exp %106 : vector<2x128xf32>
    %cst_33 = arith.constant 1.000000e+00 : f32
    %108 = vector.broadcast %cst_33 : f32 to vector<2x128xf32>
    %109 = arith.addf %108, %107 : vector<2x128xf32>
    %110 = arith.divf %108, %109 : vector<2x128xf32>
    %111 = math.tanh %102 : vector<2x128xf32>
    %112 = arith.select %2, %110, %111 : vector<2x128xi1>, vector<2x128xf32>
    %113 = vector.extract_strided_slice %112 {offsets = [0, 0], sizes = [2, 32], strides = [1, 1]} : vector<2x128xf32> to vector<2x32xf32>
    %114 = vector.extract_strided_slice %112 {offsets = [0, 32], sizes = [2, 32], strides = [1, 1]} : vector<2x128xf32> to vector<2x32xf32>
    %115 = vector.extract_strided_slice %112 {offsets = [0, 64], sizes = [2, 32], strides = [1, 1]} : vector<2x128xf32> to vector<2x32xf32>
    %116 = vector.extract_strided_slice %112 {offsets = [0, 96], sizes = [2, 32], strides = [1, 1]} : vector<2x128xf32> to vector<2x32xf32>
    %117 = arith.mulf %114, %79 : vector<2x32xf32>
    %118 = arith.mulf %113, %116 : vector<2x32xf32>
    %119 = arith.addf %117, %118 : vector<2x32xf32>
    %120 = math.tanh %119 : vector<2x32xf32>
    %121 = arith.mulf %115, %120 : vector<2x32xf32>
    %122 = arith.negf %105 : vector<2x128xf32>
    %123 = math.exp %122 : vector<2x128xf32>
    %cst_34 = arith.constant 1.000000e+00 : f32
    %124 = vector.broadcast %cst_34 : f32 to vector<2x128xf32>
    %125 = arith.addf %124, %123 : vector<2x128xf32>
    %126 = arith.divf %124, %125 : vector<2x128xf32>
    %127 = math.tanh %105 : vector<2x128xf32>
    %128 = arith.select %2, %126, %127 : vector<2x128xi1>, vector<2x128xf32>
    %129 = vector.extract_strided_slice %128 {offsets = [0, 0], sizes = [2, 32], strides = [1, 1]} : vector<2x128xf32> to vector<2x32xf32>
    %130 = vector.extract_strided_slice %128 {offsets = [0, 32], sizes = [2, 32], strides = [1, 1]} : vector<2x128xf32> to vector<2x32xf32>
    %131 = vector.extract_strided_slice %128 {offsets = [0, 64], sizes = [2, 32], strides = [1, 1]} : vector<2x128xf32> to vector<2x32xf32>
    %132 = vector.extract_strided_slice %128 {offsets = [0, 96], sizes = [2, 32], strides = [1, 1]} : vector<2x128xf32> to vector<2x32xf32>
    %133 = arith.mulf %130, %95 : vector<2x32xf32>
    %134 = arith.mulf %129, %132 : vector<2x32xf32>
    %135 = arith.addf %133, %134 : vector<2x32xf32>
    %136 = math.tanh %135 : vector<2x32xf32>
    %137 = arith.mulf %131, %136 : vector<2x32xf32>
    %c4 = arith.constant 4 : index
    %c0_35 = arith.constant 0 : index
    %138 = vector.load %arg17[%c4, %c0_35] : memref<16x32xf32, #tpu.memory_space<vmem>>, vector<2x32xf32>
    tpu.vector_store %arg17[%c4, %c0_35], %121 {strides = array<i32>} : memref<16x32xf32, #tpu.memory_space<vmem>>, vector<2x32xf32>,
    %c10 = arith.constant 10 : index
    %c0_36 = arith.constant 0 : index
    %139 = vector.load %arg18[%c10, %c0_36] : memref<16x32xf32, #tpu.memory_space<vmem>>, vector<2x32xf32>
    tpu.vector_store %arg18[%c10, %c0_36], %137 {strides = array<i32>} : memref<16x32xf32, #tpu.memory_space<vmem>>, vector<2x32xf32>,
    %140 = vector.extract_strided_slice %8 {offsets = [6, 0], sizes = [2, 128], strides = [1, 1]} : vector<16x128xf32> to vector<2x128xf32>
    %cst_37 = arith.constant dense<0.000000e+00> : vector<2x128xf32>
    %141 = tpu.matmul %121, %14, %cst_37 {dimension_numbers = #tpu.dot_dimension_numbers<[1], [0], [0], [1], [0, 0, 1, 1], [], []>} : vector<2x32xf32>, vector<32x128xf32>, vector<2x128xf32> -> vector<2x128xf32>
    %142 = arith.addf %140, %141 : vector<2x128xf32>
    %143 = vector.extract_strided_slice %13 {offsets = [8, 0], sizes = [2, 128], strides = [1, 1]} : vector<16x128xf32> to vector<2x128xf32>
    %cst_38 = arith.constant dense<0.000000e+00> : vector<2x128xf32>
    %144 = tpu.matmul %137, %15, %cst_38 {dimension_numbers = #tpu.dot_dimension_numbers<[1], [0], [0], [1], [0, 0, 1, 1], [], []>} : vector<2x32xf32>, vector<32x128xf32>, vector<2x128xf32> -> vector<2x128xf32>
    %145 = arith.addf %143, %144 : vector<2x128xf32>
    %146 = arith.negf %142 : vector<2x128xf32>
    %147 = math.exp %146 : vector<2x128xf32>
    %cst_39 = arith.constant 1.000000e+00 : f32
    %148 = vector.broadcast %cst_39 : f32 to vector<2x128xf32>
    %149 = arith.addf %148, %147 : vector<2x128xf32>
    %150 = arith.divf %148, %149 : vector<2x128xf32>
    %151 = math.tanh %142 : vector<2x128xf32>
    %152 = arith.select %2, %150, %151 : vector<2x128xi1>, vector<2x128xf32>
    %153 = vector.extract_strided_slice %152 {offsets = [0, 0], sizes = [2, 32], strides = [1, 1]} : vector<2x128xf32> to vector<2x32xf32>
    %154 = vector.extract_strided_slice %152 {offsets = [0, 32], sizes = [2, 32], strides = [1, 1]} : vector<2x128xf32> to vector<2x32xf32>
    %155 = vector.extract_strided_slice %152 {offsets = [0, 64], sizes = [2, 32], strides = [1, 1]} : vector<2x128xf32> to vector<2x32xf32>
    %156 = vector.extract_strided_slice %152 {offsets = [0, 96], sizes = [2, 32], strides = [1, 1]} : vector<2x128xf32> to vector<2x32xf32>
    %157 = arith.mulf %154, %119 : vector<2x32xf32>
    %158 = arith.mulf %153, %156 : vector<2x32xf32>
    %159 = arith.addf %157, %158 : vector<2x32xf32>
    %160 = math.tanh %159 : vector<2x32xf32>
    %161 = arith.mulf %155, %160 : vector<2x32xf32>
    %162 = arith.negf %145 : vector<2x128xf32>
    %163 = math.exp %162 : vector<2x128xf32>
    %cst_40 = arith.constant 1.000000e+00 : f32
    %164 = vector.broadcast %cst_40 : f32 to vector<2x128xf32>
    %165 = arith.addf %164, %163 : vector<2x128xf32>
    %166 = arith.divf %164, %165 : vector<2x128xf32>
    %167 = math.tanh %145 : vector<2x128xf32>
    %168 = arith.select %2, %166, %167 : vector<2x128xi1>, vector<2x128xf32>
    %169 = vector.extract_strided_slice %168 {offsets = [0, 0], sizes = [2, 32], strides = [1, 1]} : vector<2x128xf32> to vector<2x32xf32>
    %170 = vector.extract_strided_slice %168 {offsets = [0, 32], sizes = [2, 32], strides = [1, 1]} : vector<2x128xf32> to vector<2x32xf32>
    %171 = vector.extract_strided_slice %168 {offsets = [0, 64], sizes = [2, 32], strides = [1, 1]} : vector<2x128xf32> to vector<2x32xf32>
    %172 = vector.extract_strided_slice %168 {offsets = [0, 96], sizes = [2, 32], strides = [1, 1]} : vector<2x128xf32> to vector<2x32xf32>
    %173 = arith.mulf %170, %135 : vector<2x32xf32>
    %174 = arith.mulf %169, %172 : vector<2x32xf32>
    %175 = arith.addf %173, %174 : vector<2x32xf32>
    %176 = math.tanh %175 : vector<2x32xf32>
    %177 = arith.mulf %171, %176 : vector<2x32xf32>
    %c6 = arith.constant 6 : index
    %c0_41 = arith.constant 0 : index
    %178 = vector.load %arg17[%c6, %c0_41] : memref<16x32xf32, #tpu.memory_space<vmem>>, vector<2x32xf32>
    tpu.vector_store %arg17[%c6, %c0_41], %161 {strides = array<i32>} : memref<16x32xf32, #tpu.memory_space<vmem>>, vector<2x32xf32>,
    %c8 = arith.constant 8 : index
    %c0_42 = arith.constant 0 : index
    %179 = vector.load %arg18[%c8, %c0_42] : memref<16x32xf32, #tpu.memory_space<vmem>>, vector<2x32xf32>
    tpu.vector_store %arg18[%c8, %c0_42], %177 {strides = array<i32>} : memref<16x32xf32, #tpu.memory_space<vmem>>, vector<2x32xf32>,
    %180 = vector.extract_strided_slice %8 {offsets = [8, 0], sizes = [2, 128], strides = [1, 1]} : vector<16x128xf32> to vector<2x128xf32>
    %cst_43 = arith.constant dense<0.000000e+00> : vector<2x128xf32>
    %181 = tpu.matmul %161, %14, %cst_43 {dimension_numbers = #tpu.dot_dimension_numbers<[1], [0], [0], [1], [0, 0, 1, 1], [], []>} : vector<2x32xf32>, vector<32x128xf32>, vector<2x128xf32> -> vector<2x128xf32>
    %182 = arith.addf %180, %181 : vector<2x128xf32>
    %183 = vector.extract_strided_slice %13 {offsets = [6, 0], sizes = [2, 128], strides = [1, 1]} : vector<16x128xf32> to vector<2x128xf32>
    %cst_44 = arith.constant dense<0.000000e+00> : vector<2x128xf32>
    %184 = tpu.matmul %177, %15, %cst_44 {dimension_numbers = #tpu.dot_dimension_numbers<[1], [0], [0], [1], [0, 0, 1, 1], [], []>} : vector<2x32xf32>, vector<32x128xf32>, vector<2x128xf32> -> vector<2x128xf32>
    %185 = arith.addf %183, %184 : vector<2x128xf32>
    %186 = arith.negf %182 : vector<2x128xf32>
    %187 = math.exp %186 : vector<2x128xf32>
    %cst_45 = arith.constant 1.000000e+00 : f32
    %188 = vector.broadcast %cst_45 : f32 to vector<2x128xf32>
    %189 = arith.addf %188, %187 : vector<2x128xf32>
    %190 = arith.divf %188, %189 : vector<2x128xf32>
    %191 = math.tanh %182 : vector<2x128xf32>
    %192 = arith.select %2, %190, %191 : vector<2x128xi1>, vector<2x128xf32>
    %193 = vector.extract_strided_slice %192 {offsets = [0, 0], sizes = [2, 32], strides = [1, 1]} : vector<2x128xf32> to vector<2x32xf32>
    %194 = vector.extract_strided_slice %192 {offsets = [0, 32], sizes = [2, 32], strides = [1, 1]} : vector<2x128xf32> to vector<2x32xf32>
    %195 = vector.extract_strided_slice %192 {offsets = [0, 64], sizes = [2, 32], strides = [1, 1]} : vector<2x128xf32> to vector<2x32xf32>
    %196 = vector.extract_strided_slice %192 {offsets = [0, 96], sizes = [2, 32], strides = [1, 1]} : vector<2x128xf32> to vector<2x32xf32>
    %197 = arith.mulf %194, %159 : vector<2x32xf32>
    %198 = arith.mulf %193, %196 : vector<2x32xf32>
    %199 = arith.addf %197, %198 : vector<2x32xf32>
    %200 = math.tanh %199 : vector<2x32xf32>
    %201 = arith.mulf %195, %200 : vector<2x32xf32>
    %202 = arith.negf %185 : vector<2x128xf32>
    %203 = math.exp %202 : vector<2x128xf32>
    %cst_46 = arith.constant 1.000000e+00 : f32
    %204 = vector.broadcast %cst_46 : f32 to vector<2x128xf32>
    %205 = arith.addf %204, %203 : vector<2x128xf32>
    %206 = arith.divf %204, %205 : vector<2x128xf32>
    %207 = math.tanh %185 : vector<2x128xf32>
    %208 = arith.select %2, %206, %207 : vector<2x128xi1>, vector<2x128xf32>
    %209 = vector.extract_strided_slice %208 {offsets = [0, 0], sizes = [2, 32], strides = [1, 1]} : vector<2x128xf32> to vector<2x32xf32>
    %210 = vector.extract_strided_slice %208 {offsets = [0, 32], sizes = [2, 32], strides = [1, 1]} : vector<2x128xf32> to vector<2x32xf32>
    %211 = vector.extract_strided_slice %208 {offsets = [0, 64], sizes = [2, 32], strides = [1, 1]} : vector<2x128xf32> to vector<2x32xf32>
    %212 = vector.extract_strided_slice %208 {offsets = [0, 96], sizes = [2, 32], strides = [1, 1]} : vector<2x128xf32> to vector<2x32xf32>
    %213 = arith.mulf %210, %175 : vector<2x32xf32>
    %214 = arith.mulf %209, %212 : vector<2x32xf32>
    %215 = arith.addf %213, %214 : vector<2x32xf32>
    %216 = math.tanh %215 : vector<2x32xf32>
    %217 = arith.mulf %211, %216 : vector<2x32xf32>
    %c8_47 = arith.constant 8 : index
    %c0_48 = arith.constant 0 : index
    %218 = vector.load %arg17[%c8_47, %c0_48] : memref<16x32xf32, #tpu.memory_space<vmem>>, vector<2x32xf32>
    tpu.vector_store %arg17[%c8_47, %c0_48], %201 {strides = array<i32>} : memref<16x32xf32, #tpu.memory_space<vmem>>, vector<2x32xf32>,
    %c6_49 = arith.constant 6 : index
    %c0_50 = arith.constant 0 : index
    %219 = vector.load %arg18[%c6_49, %c0_50] : memref<16x32xf32, #tpu.memory_space<vmem>>, vector<2x32xf32>
    tpu.vector_store %arg18[%c6_49, %c0_50], %217 {strides = array<i32>} : memref<16x32xf32, #tpu.memory_space<vmem>>, vector<2x32xf32>,
    %220 = vector.extract_strided_slice %8 {offsets = [10, 0], sizes = [2, 128], strides = [1, 1]} : vector<16x128xf32> to vector<2x128xf32>
    %cst_51 = arith.constant dense<0.000000e+00> : vector<2x128xf32>
    %221 = tpu.matmul %201, %14, %cst_51 {dimension_numbers = #tpu.dot_dimension_numbers<[1], [0], [0], [1], [0, 0, 1, 1], [], []>} : vector<2x32xf32>, vector<32x128xf32>, vector<2x128xf32> -> vector<2x128xf32>
    %222 = arith.addf %220, %221 : vector<2x128xf32>
    %223 = vector.extract_strided_slice %13 {offsets = [4, 0], sizes = [2, 128], strides = [1, 1]} : vector<16x128xf32> to vector<2x128xf32>
    %cst_52 = arith.constant dense<0.000000e+00> : vector<2x128xf32>
    %224 = tpu.matmul %217, %15, %cst_52 {dimension_numbers = #tpu.dot_dimension_numbers<[1], [0], [0], [1], [0, 0, 1, 1], [], []>} : vector<2x32xf32>, vector<32x128xf32>, vector<2x128xf32> -> vector<2x128xf32>
    %225 = arith.addf %223, %224 : vector<2x128xf32>
    %226 = arith.negf %222 : vector<2x128xf32>
    %227 = math.exp %226 : vector<2x128xf32>
    %cst_53 = arith.constant 1.000000e+00 : f32
    %228 = vector.broadcast %cst_53 : f32 to vector<2x128xf32>
    %229 = arith.addf %228, %227 : vector<2x128xf32>
    %230 = arith.divf %228, %229 : vector<2x128xf32>
    %231 = math.tanh %222 : vector<2x128xf32>
    %232 = arith.select %2, %230, %231 : vector<2x128xi1>, vector<2x128xf32>
    %233 = vector.extract_strided_slice %232 {offsets = [0, 0], sizes = [2, 32], strides = [1, 1]} : vector<2x128xf32> to vector<2x32xf32>
    %234 = vector.extract_strided_slice %232 {offsets = [0, 32], sizes = [2, 32], strides = [1, 1]} : vector<2x128xf32> to vector<2x32xf32>
    %235 = vector.extract_strided_slice %232 {offsets = [0, 64], sizes = [2, 32], strides = [1, 1]} : vector<2x128xf32> to vector<2x32xf32>
    %236 = vector.extract_strided_slice %232 {offsets = [0, 96], sizes = [2, 32], strides = [1, 1]} : vector<2x128xf32> to vector<2x32xf32>
    %237 = arith.mulf %234, %199 : vector<2x32xf32>
    %238 = arith.mulf %233, %236 : vector<2x32xf32>
    %239 = arith.addf %237, %238 : vector<2x32xf32>
    %240 = math.tanh %239 : vector<2x32xf32>
    %241 = arith.mulf %235, %240 : vector<2x32xf32>
    %242 = arith.negf %225 : vector<2x128xf32>
    %243 = math.exp %242 : vector<2x128xf32>
    %cst_54 = arith.constant 1.000000e+00 : f32
    %244 = vector.broadcast %cst_54 : f32 to vector<2x128xf32>
    %245 = arith.addf %244, %243 : vector<2x128xf32>
    %246 = arith.divf %244, %245 : vector<2x128xf32>
    %247 = math.tanh %225 : vector<2x128xf32>
    %248 = arith.select %2, %246, %247 : vector<2x128xi1>, vector<2x128xf32>
    %249 = vector.extract_strided_slice %248 {offsets = [0, 0], sizes = [2, 32], strides = [1, 1]} : vector<2x128xf32> to vector<2x32xf32>
    %250 = vector.extract_strided_slice %248 {offsets = [0, 32], sizes = [2, 32], strides = [1, 1]} : vector<2x128xf32> to vector<2x32xf32>
    %251 = vector.extract_strided_slice %248 {offsets = [0, 64], sizes = [2, 32], strides = [1, 1]} : vector<2x128xf32> to vector<2x32xf32>
    %252 = vector.extract_strided_slice %248 {offsets = [0, 96], sizes = [2, 32], strides = [1, 1]} : vector<2x128xf32> to vector<2x32xf32>
    %253 = arith.mulf %250, %215 : vector<2x32xf32>
    %254 = arith.mulf %249, %252 : vector<2x32xf32>
    %255 = arith.addf %253, %254 : vector<2x32xf32>
    %256 = math.tanh %255 : vector<2x32xf32>
    %257 = arith.mulf %251, %256 : vector<2x32xf32>
    %c10_55 = arith.constant 10 : index
    %c0_56 = arith.constant 0 : index
    %258 = vector.load %arg17[%c10_55, %c0_56] : memref<16x32xf32, #tpu.memory_space<vmem>>, vector<2x32xf32>
    tpu.vector_store %arg17[%c10_55, %c0_56], %241 {strides = array<i32>} : memref<16x32xf32, #tpu.memory_space<vmem>>, vector<2x32xf32>,
    %c4_57 = arith.constant 4 : index
    %c0_58 = arith.constant 0 : index
    %259 = vector.load %arg18[%c4_57, %c0_58] : memref<16x32xf32, #tpu.memory_space<vmem>>, vector<2x32xf32>
    tpu.vector_store %arg18[%c4_57, %c0_58], %257 {strides = array<i32>} : memref<16x32xf32, #tpu.memory_space<vmem>>, vector<2x32xf32>,
    %260 = vector.extract_strided_slice %8 {offsets = [12, 0], sizes = [2, 128], strides = [1, 1]} : vector<16x128xf32> to vector<2x128xf32>
    %cst_59 = arith.constant dense<0.000000e+00> : vector<2x128xf32>
    %261 = tpu.matmul %241, %14, %cst_59 {dimension_numbers = #tpu.dot_dimension_numbers<[1], [0], [0], [1], [0, 0, 1, 1], [], []>} : vector<2x32xf32>, vector<32x128xf32>, vector<2x128xf32> -> vector<2x128xf32>
    %262 = arith.addf %260, %261 : vector<2x128xf32>
    %263 = vector.extract_strided_slice %13 {offsets = [2, 0], sizes = [2, 128], strides = [1, 1]} : vector<16x128xf32> to vector<2x128xf32>
    %cst_60 = arith.constant dense<0.000000e+00> : vector<2x128xf32>
    %264 = tpu.matmul %257, %15, %cst_60 {dimension_numbers = #tpu.dot_dimension_numbers<[1], [0], [0], [1], [0, 0, 1, 1], [], []>} : vector<2x32xf32>, vector<32x128xf32>, vector<2x128xf32> -> vector<2x128xf32>
    %265 = arith.addf %263, %264 : vector<2x128xf32>
    %266 = arith.negf %262 : vector<2x128xf32>
    %267 = math.exp %266 : vector<2x128xf32>
    %cst_61 = arith.constant 1.000000e+00 : f32
    %268 = vector.broadcast %cst_61 : f32 to vector<2x128xf32>
    %269 = arith.addf %268, %267 : vector<2x128xf32>
    %270 = arith.divf %268, %269 : vector<2x128xf32>
    %271 = math.tanh %262 : vector<2x128xf32>
    %272 = arith.select %2, %270, %271 : vector<2x128xi1>, vector<2x128xf32>
    %273 = vector.extract_strided_slice %272 {offsets = [0, 0], sizes = [2, 32], strides = [1, 1]} : vector<2x128xf32> to vector<2x32xf32>
    %274 = vector.extract_strided_slice %272 {offsets = [0, 32], sizes = [2, 32], strides = [1, 1]} : vector<2x128xf32> to vector<2x32xf32>
    %275 = vector.extract_strided_slice %272 {offsets = [0, 64], sizes = [2, 32], strides = [1, 1]} : vector<2x128xf32> to vector<2x32xf32>
    %276 = vector.extract_strided_slice %272 {offsets = [0, 96], sizes = [2, 32], strides = [1, 1]} : vector<2x128xf32> to vector<2x32xf32>
    %277 = arith.mulf %274, %239 : vector<2x32xf32>
    %278 = arith.mulf %273, %276 : vector<2x32xf32>
    %279 = arith.addf %277, %278 : vector<2x32xf32>
    %280 = math.tanh %279 : vector<2x32xf32>
    %281 = arith.mulf %275, %280 : vector<2x32xf32>
    %282 = arith.negf %265 : vector<2x128xf32>
    %283 = math.exp %282 : vector<2x128xf32>
    %cst_62 = arith.constant 1.000000e+00 : f32
    %284 = vector.broadcast %cst_62 : f32 to vector<2x128xf32>
    %285 = arith.addf %284, %283 : vector<2x128xf32>
    %286 = arith.divf %284, %285 : vector<2x128xf32>
    %287 = math.tanh %265 : vector<2x128xf32>
    %288 = arith.select %2, %286, %287 : vector<2x128xi1>, vector<2x128xf32>
    %289 = vector.extract_strided_slice %288 {offsets = [0, 0], sizes = [2, 32], strides = [1, 1]} : vector<2x128xf32> to vector<2x32xf32>
    %290 = vector.extract_strided_slice %288 {offsets = [0, 32], sizes = [2, 32], strides = [1, 1]} : vector<2x128xf32> to vector<2x32xf32>
    %291 = vector.extract_strided_slice %288 {offsets = [0, 64], sizes = [2, 32], strides = [1, 1]} : vector<2x128xf32> to vector<2x32xf32>
    %292 = vector.extract_strided_slice %288 {offsets = [0, 96], sizes = [2, 32], strides = [1, 1]} : vector<2x128xf32> to vector<2x32xf32>
    %293 = arith.mulf %290, %255 : vector<2x32xf32>
    %294 = arith.mulf %289, %292 : vector<2x32xf32>
    %295 = arith.addf %293, %294 : vector<2x32xf32>
    %296 = math.tanh %295 : vector<2x32xf32>
    %297 = arith.mulf %291, %296 : vector<2x32xf32>
    %c12_63 = arith.constant 12 : index
    %c0_64 = arith.constant 0 : index
    %298 = vector.load %arg17[%c12_63, %c0_64] : memref<16x32xf32, #tpu.memory_space<vmem>>, vector<2x32xf32>
    tpu.vector_store %arg17[%c12_63, %c0_64], %281 {strides = array<i32>} : memref<16x32xf32, #tpu.memory_space<vmem>>, vector<2x32xf32>,
    %c2_65 = arith.constant 2 : index
    %c0_66 = arith.constant 0 : index
    %299 = vector.load %arg18[%c2_65, %c0_66] : memref<16x32xf32, #tpu.memory_space<vmem>>, vector<2x32xf32>
    tpu.vector_store %arg18[%c2_65, %c0_66], %297 {strides = array<i32>} : memref<16x32xf32, #tpu.memory_space<vmem>>, vector<2x32xf32>,
    %300 = vector.extract_strided_slice %8 {offsets = [14, 0], sizes = [2, 128], strides = [1, 1]} : vector<16x128xf32> to vector<2x128xf32>
    %cst_67 = arith.constant dense<0.000000e+00> : vector<2x128xf32>
    %301 = tpu.matmul %281, %14, %cst_67 {dimension_numbers = #tpu.dot_dimension_numbers<[1], [0], [0], [1], [0, 0, 1, 1], [], []>} : vector<2x32xf32>, vector<32x128xf32>, vector<2x128xf32> -> vector<2x128xf32>
    %302 = arith.addf %300, %301 : vector<2x128xf32>
    %303 = vector.extract_strided_slice %13 {offsets = [0, 0], sizes = [2, 128], strides = [1, 1]} : vector<16x128xf32> to vector<2x128xf32>
    %cst_68 = arith.constant dense<0.000000e+00> : vector<2x128xf32>
    %304 = tpu.matmul %297, %15, %cst_68 {dimension_numbers = #tpu.dot_dimension_numbers<[1], [0], [0], [1], [0, 0, 1, 1], [], []>} : vector<2x32xf32>, vector<32x128xf32>, vector<2x128xf32> -> vector<2x128xf32>
    %305 = arith.addf %303, %304 : vector<2x128xf32>
    %306 = arith.negf %302 : vector<2x128xf32>
    %307 = math.exp %306 : vector<2x128xf32>
    %cst_69 = arith.constant 1.000000e+00 : f32
    %308 = vector.broadcast %cst_69 : f32 to vector<2x128xf32>
    %309 = arith.addf %308, %307 : vector<2x128xf32>
    %310 = arith.divf %308, %309 : vector<2x128xf32>
    %311 = math.tanh %302 : vector<2x128xf32>
    %312 = arith.select %2, %310, %311 : vector<2x128xi1>, vector<2x128xf32>
    %313 = vector.extract_strided_slice %312 {offsets = [0, 0], sizes = [2, 32], strides = [1, 1]} : vector<2x128xf32> to vector<2x32xf32>
    %314 = vector.extract_strided_slice %312 {offsets = [0, 32], sizes = [2, 32], strides = [1, 1]} : vector<2x128xf32> to vector<2x32xf32>
    %315 = vector.extract_strided_slice %312 {offsets = [0, 64], sizes = [2, 32], strides = [1, 1]} : vector<2x128xf32> to vector<2x32xf32>
    %316 = vector.extract_strided_slice %312 {offsets = [0, 96], sizes = [2, 32], strides = [1, 1]} : vector<2x128xf32> to vector<2x32xf32>
    %317 = arith.mulf %314, %279 : vector<2x32xf32>
    %318 = arith.mulf %313, %316 : vector<2x32xf32>
    %319 = arith.addf %317, %318 : vector<2x32xf32>
    %320 = math.tanh %319 : vector<2x32xf32>
    %321 = arith.mulf %315, %320 : vector<2x32xf32>
    %322 = arith.negf %305 : vector<2x128xf32>
    %323 = math.exp %322 : vector<2x128xf32>
    %cst_70 = arith.constant 1.000000e+00 : f32
    %324 = vector.broadcast %cst_70 : f32 to vector<2x128xf32>
    %325 = arith.addf %324, %323 : vector<2x128xf32>
    %326 = arith.divf %324, %325 : vector<2x128xf32>
    %327 = math.tanh %305 : vector<2x128xf32>
    %328 = arith.select %2, %326, %327 : vector<2x128xi1>, vector<2x128xf32>
    %329 = vector.extract_strided_slice %328 {offsets = [0, 0], sizes = [2, 32], strides = [1, 1]} : vector<2x128xf32> to vector<2x32xf32>
    %330 = vector.extract_strided_slice %328 {offsets = [0, 32], sizes = [2, 32], strides = [1, 1]} : vector<2x128xf32> to vector<2x32xf32>
    %331 = vector.extract_strided_slice %328 {offsets = [0, 64], sizes = [2, 32], strides = [1, 1]} : vector<2x128xf32> to vector<2x32xf32>
    %332 = vector.extract_strided_slice %328 {offsets = [0, 96], sizes = [2, 32], strides = [1, 1]} : vector<2x128xf32> to vector<2x32xf32>
    %333 = arith.mulf %330, %295 : vector<2x32xf32>
    %334 = arith.mulf %329, %332 : vector<2x32xf32>
    %335 = arith.addf %333, %334 : vector<2x32xf32>
    %336 = math.tanh %335 : vector<2x32xf32>
    %337 = arith.mulf %331, %336 : vector<2x32xf32>
    %c14_71 = arith.constant 14 : index
    %c0_72 = arith.constant 0 : index
    %338 = vector.load %arg17[%c14_71, %c0_72] : memref<16x32xf32, #tpu.memory_space<vmem>>, vector<2x32xf32>
    tpu.vector_store %arg17[%c14_71, %c0_72], %321 {strides = array<i32>} : memref<16x32xf32, #tpu.memory_space<vmem>>, vector<2x32xf32>,
    %c0_73 = arith.constant 0 : index
    %c0_74 = arith.constant 0 : index
    %339 = vector.load %arg18[%c0_73, %c0_74] : memref<16x32xf32, #tpu.memory_space<vmem>>, vector<2x32xf32>
    tpu.vector_store %arg18[%c0_73, %c0_74], %337 {strides = array<i32>} : memref<16x32xf32, #tpu.memory_space<vmem>>, vector<2x32xf32>,
    %c0_75 = arith.constant 0 : index
    %c0_76 = arith.constant 0 : index
    %340 = vector.load %arg17[%c0_75, %c0_76] : memref<16x32xf32, #tpu.memory_space<vmem>>, vector<16x32xf32>
    %c0_77 = arith.constant 0 : index
    %c0_78 = arith.constant 0 : index
    %341 = vector.load %arg18[%c0_77, %c0_78] : memref<16x32xf32, #tpu.memory_space<vmem>>, vector<16x32xf32>
    %c0_79 = arith.constant 0 : index
    %c0_80 = arith.constant 0 : index
    %342 = vector.load %arg7[%c0_79, %c0_80] : memref<64x128xf32, #tpu.memory_space<vmem>>, vector<64x128xf32>
    %c0_81 = arith.constant 0 : index
    %c0_82 = arith.constant 0 : index
    %343 = vector.load %arg8[%c0_81, %c0_82] : memref<64x128xf32, #tpu.memory_space<vmem>>, vector<64x128xf32>
    %344 = vector.extract_strided_slice %342 {offsets = [0, 0], sizes = [32, 128], strides = [1, 1]} : vector<64x128xf32> to vector<32x128xf32>
    %cst_83 = arith.constant dense<0.000000e+00> : vector<16x128xf32>
    %345 = tpu.matmul %340, %344, %cst_83 {dimension_numbers = #tpu.dot_dimension_numbers<[1], [0], [0], [1], [0, 0, 1, 1], [], []>} : vector<16x32xf32>, vector<32x128xf32>, vector<16x128xf32> -> vector<16x128xf32>
    %346 = vector.extract_strided_slice %342 {offsets = [32, 0], sizes = [32, 128], strides = [1, 1]} : vector<64x128xf32> to vector<32x128xf32>
    %cst_84 = arith.constant dense<0.000000e+00> : vector<16x128xf32>
    %347 = tpu.matmul %341, %346, %cst_84 {dimension_numbers = #tpu.dot_dimension_numbers<[1], [0], [0], [1], [0, 0, 1, 1], [], []>} : vector<16x32xf32>, vector<32x128xf32>, vector<16x128xf32> -> vector<16x128xf32>
    %348 = arith.addf %345, %347 : vector<16x128xf32>
    %c0_85 = arith.constant 0 : index
    %c0_86 = arith.constant 0 : index
    %349 = vector.load %arg11[%c0_85, %c0_86] : memref<1x128xf32, #tpu.memory_space<vmem>>, vector<1x128xf32>
    %350 = vector.broadcast %349 : vector<1x128xf32> to vector<16x128xf32>
    %351 = arith.addf %348, %350 : vector<16x128xf32>
    %352 = vector.extract_strided_slice %343 {offsets = [0, 0], sizes = [32, 128], strides = [1, 1]} : vector<64x128xf32> to vector<32x128xf32>
    %cst_87 = arith.constant dense<0.000000e+00> : vector<16x128xf32>
    %353 = tpu.matmul %340, %352, %cst_87 {dimension_numbers = #tpu.dot_dimension_numbers<[1], [0], [0], [1], [0, 0, 1, 1], [], []>} : vector<16x32xf32>, vector<32x128xf32>, vector<16x128xf32> -> vector<16x128xf32>
    %354 = vector.extract_strided_slice %343 {offsets = [32, 0], sizes = [32, 128], strides = [1, 1]} : vector<64x128xf32> to vector<32x128xf32>
    %cst_88 = arith.constant dense<0.000000e+00> : vector<16x128xf32>
    %355 = tpu.matmul %341, %354, %cst_88 {dimension_numbers = #tpu.dot_dimension_numbers<[1], [0], [0], [1], [0, 0, 1, 1], [], []>} : vector<16x32xf32>, vector<32x128xf32>, vector<16x128xf32> -> vector<16x128xf32>
    %356 = arith.addf %353, %355 : vector<16x128xf32>
    %c0_89 = arith.constant 0 : index
    %c0_90 = arith.constant 0 : index
    %357 = vector.load %arg12[%c0_89, %c0_90] : memref<1x128xf32, #tpu.memory_space<vmem>>, vector<1x128xf32>
    %358 = vector.broadcast %357 : vector<1x128xf32> to vector<16x128xf32>
    %359 = arith.addf %356, %358 : vector<16x128xf32>
    %c0_91 = arith.constant 0 : index
    %c0_92 = arith.constant 0 : index
    %360 = vector.load %arg9[%c0_91, %c0_92] : memref<32x128xf32, #tpu.memory_space<vmem>>, vector<32x128xf32>
    %c0_93 = arith.constant 0 : index
    %c0_94 = arith.constant 0 : index
    %361 = vector.load %arg10[%c0_93, %c0_94] : memref<32x128xf32, #tpu.memory_space<vmem>>, vector<32x128xf32>
    %cst_95 = arith.constant 0.000000e+00 : f32
    %362 = vector.broadcast %cst_95 : f32 to vector<2x32xf32>
    %cst_96 = arith.constant 0.000000e+00 : f32
    %363 = vector.broadcast %cst_96 : f32 to vector<2x32xf32>
    %cst_97 = arith.constant 0.000000e+00 : f32
    %364 = vector.broadcast %cst_97 : f32 to vector<2x32xf32>
    %cst_98 = arith.constant 0.000000e+00 : f32
    %365 = vector.broadcast %cst_98 : f32 to vector<2x32xf32>
    %366 = vector.extract_strided_slice %351 {offsets = [0, 0], sizes = [2, 128], strides = [1, 1]} : vector<16x128xf32> to vector<2x128xf32>
    %cst_99 = arith.constant dense<0.000000e+00> : vector<2x128xf32>
    %367 = tpu.matmul %362, %360, %cst_99 {dimension_numbers = #tpu.dot_dimension_numbers<[1], [0], [0], [1], [0, 0, 1, 1], [], []>} : vector<2x32xf32>, vector<32x128xf32>, vector<2x128xf32> -> vector<2x128xf32>
    %368 = arith.addf %366, %367 : vector<2x128xf32>
    %369 = vector.extract_strided_slice %359 {offsets = [14, 0], sizes = [2, 128], strides = [1, 1]} : vector<16x128xf32> to vector<2x128xf32>
    %cst_100 = arith.constant dense<0.000000e+00> : vector<2x128xf32>
    %370 = tpu.matmul %364, %361, %cst_100 {dimension_numbers = #tpu.dot_dimension_numbers<[1], [0], [0], [1], [0, 0, 1, 1], [], []>} : vector<2x32xf32>, vector<32x128xf32>, vector<2x128xf32> -> vector<2x128xf32>
    %371 = arith.addf %369, %370 : vector<2x128xf32>
    %372 = arith.negf %368 : vector<2x128xf32>
    %373 = math.exp %372 : vector<2x128xf32>
    %cst_101 = arith.constant 1.000000e+00 : f32
    %374 = vector.broadcast %cst_101 : f32 to vector<2x128xf32>
    %375 = arith.addf %374, %373 : vector<2x128xf32>
    %376 = arith.divf %374, %375 : vector<2x128xf32>
    %377 = math.tanh %368 : vector<2x128xf32>
    %378 = arith.select %2, %376, %377 : vector<2x128xi1>, vector<2x128xf32>
    %379 = vector.extract_strided_slice %378 {offsets = [0, 0], sizes = [2, 32], strides = [1, 1]} : vector<2x128xf32> to vector<2x32xf32>
    %380 = vector.extract_strided_slice %378 {offsets = [0, 32], sizes = [2, 32], strides = [1, 1]} : vector<2x128xf32> to vector<2x32xf32>
    %381 = vector.extract_strided_slice %378 {offsets = [0, 64], sizes = [2, 32], strides = [1, 1]} : vector<2x128xf32> to vector<2x32xf32>
    %382 = vector.extract_strided_slice %378 {offsets = [0, 96], sizes = [2, 32], strides = [1, 1]} : vector<2x128xf32> to vector<2x32xf32>
    %383 = arith.mulf %380, %363 : vector<2x32xf32>
    %384 = arith.mulf %379, %382 : vector<2x32xf32>
    %385 = arith.addf %383, %384 : vector<2x32xf32>
    %386 = math.tanh %385 : vector<2x32xf32>
    %387 = arith.mulf %381, %386 : vector<2x32xf32>
    %388 = arith.negf %371 : vector<2x128xf32>
    %389 = math.exp %388 : vector<2x128xf32>
    %cst_102 = arith.constant 1.000000e+00 : f32
    %390 = vector.broadcast %cst_102 : f32 to vector<2x128xf32>
    %391 = arith.addf %390, %389 : vector<2x128xf32>
    %392 = arith.divf %390, %391 : vector<2x128xf32>
    %393 = math.tanh %371 : vector<2x128xf32>
    %394 = arith.select %2, %392, %393 : vector<2x128xi1>, vector<2x128xf32>
    %395 = vector.extract_strided_slice %394 {offsets = [0, 0], sizes = [2, 32], strides = [1, 1]} : vector<2x128xf32> to vector<2x32xf32>
    %396 = vector.extract_strided_slice %394 {offsets = [0, 32], sizes = [2, 32], strides = [1, 1]} : vector<2x128xf32> to vector<2x32xf32>
    %397 = vector.extract_strided_slice %394 {offsets = [0, 64], sizes = [2, 32], strides = [1, 1]} : vector<2x128xf32> to vector<2x32xf32>
    %398 = vector.extract_strided_slice %394 {offsets = [0, 96], sizes = [2, 32], strides = [1, 1]} : vector<2x128xf32> to vector<2x32xf32>
    %399 = arith.mulf %396, %365 : vector<2x32xf32>
    %400 = arith.mulf %395, %398 : vector<2x32xf32>
    %401 = arith.addf %399, %400 : vector<2x32xf32>
    %402 = math.tanh %401 : vector<2x32xf32>
    %403 = arith.mulf %397, %402 : vector<2x32xf32>
    %404 = vector.extract_strided_slice %351 {offsets = [2, 0], sizes = [2, 128], strides = [1, 1]} : vector<16x128xf32> to vector<2x128xf32>
    %cst_103 = arith.constant dense<0.000000e+00> : vector<2x128xf32>
    %405 = tpu.matmul %387, %360, %cst_103 {dimension_numbers = #tpu.dot_dimension_numbers<[1], [0], [0], [1], [0, 0, 1, 1], [], []>} : vector<2x32xf32>, vector<32x128xf32>, vector<2x128xf32> -> vector<2x128xf32>
    %406 = arith.addf %404, %405 : vector<2x128xf32>
    %407 = arith.negf %406 : vector<2x128xf32>
    %408 = math.exp %407 : vector<2x128xf32>
    %cst_104 = arith.constant 1.000000e+00 : f32
    %409 = vector.broadcast %cst_104 : f32 to vector<2x128xf32>
    %410 = arith.addf %409, %408 : vector<2x128xf32>
    %411 = arith.divf %409, %410 : vector<2x128xf32>
    %412 = math.tanh %406 : vector<2x128xf32>
    %413 = arith.select %2, %411, %412 : vector<2x128xi1>, vector<2x128xf32>
    %414 = vector.extract_strided_slice %413 {offsets = [0, 0], sizes = [2, 32], strides = [1, 1]} : vector<2x128xf32> to vector<2x32xf32>
    %415 = vector.extract_strided_slice %413 {offsets = [0, 32], sizes = [2, 32], strides = [1, 1]} : vector<2x128xf32> to vector<2x32xf32>
    %416 = vector.extract_strided_slice %413 {offsets = [0, 64], sizes = [2, 32], strides = [1, 1]} : vector<2x128xf32> to vector<2x32xf32>
    %417 = vector.extract_strided_slice %413 {offsets = [0, 96], sizes = [2, 32], strides = [1, 1]} : vector<2x128xf32> to vector<2x32xf32>
    %418 = arith.mulf %415, %385 : vector<2x32xf32>
    %419 = arith.mulf %414, %417 : vector<2x32xf32>
    %420 = arith.addf %418, %419 : vector<2x32xf32>
    %421 = math.tanh %420 : vector<2x32xf32>
    %422 = arith.mulf %416, %421 : vector<2x32xf32>
    %423 = vector.extract_strided_slice %351 {offsets = [4, 0], sizes = [2, 128], strides = [1, 1]} : vector<16x128xf32> to vector<2x128xf32>
    %cst_105 = arith.constant dense<0.000000e+00> : vector<2x128xf32>
    %424 = tpu.matmul %422, %360, %cst_105 {dimension_numbers = #tpu.dot_dimension_numbers<[1], [0], [0], [1], [0, 0, 1, 1], [], []>} : vector<2x32xf32>, vector<32x128xf32>, vector<2x128xf32> -> vector<2x128xf32>
    %425 = arith.addf %423, %424 : vector<2x128xf32>
    %426 = arith.negf %425 : vector<2x128xf32>
    %427 = math.exp %426 : vector<2x128xf32>
    %cst_106 = arith.constant 1.000000e+00 : f32
    %428 = vector.broadcast %cst_106 : f32 to vector<2x128xf32>
    %429 = arith.addf %428, %427 : vector<2x128xf32>
    %430 = arith.divf %428, %429 : vector<2x128xf32>
    %431 = math.tanh %425 : vector<2x128xf32>
    %432 = arith.select %2, %430, %431 : vector<2x128xi1>, vector<2x128xf32>
    %433 = vector.extract_strided_slice %432 {offsets = [0, 0], sizes = [2, 32], strides = [1, 1]} : vector<2x128xf32> to vector<2x32xf32>
    %434 = vector.extract_strided_slice %432 {offsets = [0, 32], sizes = [2, 32], strides = [1, 1]} : vector<2x128xf32> to vector<2x32xf32>
    %435 = vector.extract_strided_slice %432 {offsets = [0, 64], sizes = [2, 32], strides = [1, 1]} : vector<2x128xf32> to vector<2x32xf32>
    %436 = vector.extract_strided_slice %432 {offsets = [0, 96], sizes = [2, 32], strides = [1, 1]} : vector<2x128xf32> to vector<2x32xf32>
    %437 = arith.mulf %434, %420 : vector<2x32xf32>
    %438 = arith.mulf %433, %436 : vector<2x32xf32>
    %439 = arith.addf %437, %438 : vector<2x32xf32>
    %440 = math.tanh %439 : vector<2x32xf32>
    %441 = arith.mulf %435, %440 : vector<2x32xf32>
    %442 = vector.extract_strided_slice %351 {offsets = [6, 0], sizes = [2, 128], strides = [1, 1]} : vector<16x128xf32> to vector<2x128xf32>
    %cst_107 = arith.constant dense<0.000000e+00> : vector<2x128xf32>
    %443 = tpu.matmul %441, %360, %cst_107 {dimension_numbers = #tpu.dot_dimension_numbers<[1], [0], [0], [1], [0, 0, 1, 1], [], []>} : vector<2x32xf32>, vector<32x128xf32>, vector<2x128xf32> -> vector<2x128xf32>
    %444 = arith.addf %442, %443 : vector<2x128xf32>
    %445 = arith.negf %444 : vector<2x128xf32>
    %446 = math.exp %445 : vector<2x128xf32>
    %cst_108 = arith.constant 1.000000e+00 : f32
    %447 = vector.broadcast %cst_108 : f32 to vector<2x128xf32>
    %448 = arith.addf %447, %446 : vector<2x128xf32>
    %449 = arith.divf %447, %448 : vector<2x128xf32>
    %450 = math.tanh %444 : vector<2x128xf32>
    %451 = arith.select %2, %449, %450 : vector<2x128xi1>, vector<2x128xf32>
    %452 = vector.extract_strided_slice %451 {offsets = [0, 0], sizes = [2, 32], strides = [1, 1]} : vector<2x128xf32> to vector<2x32xf32>
    %453 = vector.extract_strided_slice %451 {offsets = [0, 32], sizes = [2, 32], strides = [1, 1]} : vector<2x128xf32> to vector<2x32xf32>
    %454 = vector.extract_strided_slice %451 {offsets = [0, 64], sizes = [2, 32], strides = [1, 1]} : vector<2x128xf32> to vector<2x32xf32>
    %455 = vector.extract_strided_slice %451 {offsets = [0, 96], sizes = [2, 32], strides = [1, 1]} : vector<2x128xf32> to vector<2x32xf32>
    %456 = arith.mulf %453, %439 : vector<2x32xf32>
    %457 = arith.mulf %452, %455 : vector<2x32xf32>
    %458 = arith.addf %456, %457 : vector<2x32xf32>
    %459 = math.tanh %458 : vector<2x32xf32>
    %460 = arith.mulf %454, %459 : vector<2x32xf32>
    %461 = vector.extract_strided_slice %351 {offsets = [8, 0], sizes = [2, 128], strides = [1, 1]} : vector<16x128xf32> to vector<2x128xf32>
    %cst_109 = arith.constant dense<0.000000e+00> : vector<2x128xf32>
    %462 = tpu.matmul %460, %360, %cst_109 {dimension_numbers = #tpu.dot_dimension_numbers<[1], [0], [0], [1], [0, 0, 1, 1], [], []>} : vector<2x32xf32>, vector<32x128xf32>, vector<2x128xf32> -> vector<2x128xf32>
    %463 = arith.addf %461, %462 : vector<2x128xf32>
    %464 = arith.negf %463 : vector<2x128xf32>
    %465 = math.exp %464 : vector<2x128xf32>
    %cst_110 = arith.constant 1.000000e+00 : f32
    %466 = vector.broadcast %cst_110 : f32 to vector<2x128xf32>
    %467 = arith.addf %466, %465 : vector<2x128xf32>
    %468 = arith.divf %466, %467 : vector<2x128xf32>
    %469 = math.tanh %463 : vector<2x128xf32>
    %470 = arith.select %2, %468, %469 : vector<2x128xi1>, vector<2x128xf32>
    %471 = vector.extract_strided_slice %470 {offsets = [0, 0], sizes = [2, 32], strides = [1, 1]} : vector<2x128xf32> to vector<2x32xf32>
    %472 = vector.extract_strided_slice %470 {offsets = [0, 32], sizes = [2, 32], strides = [1, 1]} : vector<2x128xf32> to vector<2x32xf32>
    %473 = vector.extract_strided_slice %470 {offsets = [0, 64], sizes = [2, 32], strides = [1, 1]} : vector<2x128xf32> to vector<2x32xf32>
    %474 = vector.extract_strided_slice %470 {offsets = [0, 96], sizes = [2, 32], strides = [1, 1]} : vector<2x128xf32> to vector<2x32xf32>
    %475 = arith.mulf %472, %458 : vector<2x32xf32>
    %476 = arith.mulf %471, %474 : vector<2x32xf32>
    %477 = arith.addf %475, %476 : vector<2x32xf32>
    %478 = math.tanh %477 : vector<2x32xf32>
    %479 = arith.mulf %473, %478 : vector<2x32xf32>
    %480 = vector.extract_strided_slice %351 {offsets = [10, 0], sizes = [2, 128], strides = [1, 1]} : vector<16x128xf32> to vector<2x128xf32>
    %cst_111 = arith.constant dense<0.000000e+00> : vector<2x128xf32>
    %481 = tpu.matmul %479, %360, %cst_111 {dimension_numbers = #tpu.dot_dimension_numbers<[1], [0], [0], [1], [0, 0, 1, 1], [], []>} : vector<2x32xf32>, vector<32x128xf32>, vector<2x128xf32> -> vector<2x128xf32>
    %482 = arith.addf %480, %481 : vector<2x128xf32>
    %483 = arith.negf %482 : vector<2x128xf32>
    %484 = math.exp %483 : vector<2x128xf32>
    %cst_112 = arith.constant 1.000000e+00 : f32
    %485 = vector.broadcast %cst_112 : f32 to vector<2x128xf32>
    %486 = arith.addf %485, %484 : vector<2x128xf32>
    %487 = arith.divf %485, %486 : vector<2x128xf32>
    %488 = math.tanh %482 : vector<2x128xf32>
    %489 = arith.select %2, %487, %488 : vector<2x128xi1>, vector<2x128xf32>
    %490 = vector.extract_strided_slice %489 {offsets = [0, 0], sizes = [2, 32], strides = [1, 1]} : vector<2x128xf32> to vector<2x32xf32>
    %491 = vector.extract_strided_slice %489 {offsets = [0, 32], sizes = [2, 32], strides = [1, 1]} : vector<2x128xf32> to vector<2x32xf32>
    %492 = vector.extract_strided_slice %489 {offsets = [0, 64], sizes = [2, 32], strides = [1, 1]} : vector<2x128xf32> to vector<2x32xf32>
    %493 = vector.extract_strided_slice %489 {offsets = [0, 96], sizes = [2, 32], strides = [1, 1]} : vector<2x128xf32> to vector<2x32xf32>
    %494 = arith.mulf %491, %477 : vector<2x32xf32>
    %495 = arith.mulf %490, %493 : vector<2x32xf32>
    %496 = arith.addf %494, %495 : vector<2x32xf32>
    %497 = math.tanh %496 : vector<2x32xf32>
    %498 = arith.mulf %492, %497 : vector<2x32xf32>
    %499 = vector.extract_strided_slice %351 {offsets = [12, 0], sizes = [2, 128], strides = [1, 1]} : vector<16x128xf32> to vector<2x128xf32>
    %cst_113 = arith.constant dense<0.000000e+00> : vector<2x128xf32>
    %500 = tpu.matmul %498, %360, %cst_113 {dimension_numbers = #tpu.dot_dimension_numbers<[1], [0], [0], [1], [0, 0, 1, 1], [], []>} : vector<2x32xf32>, vector<32x128xf32>, vector<2x128xf32> -> vector<2x128xf32>
    %501 = arith.addf %499, %500 : vector<2x128xf32>
    %502 = arith.negf %501 : vector<2x128xf32>
    %503 = math.exp %502 : vector<2x128xf32>
    %cst_114 = arith.constant 1.000000e+00 : f32
    %504 = vector.broadcast %cst_114 : f32 to vector<2x128xf32>
    %505 = arith.addf %504, %503 : vector<2x128xf32>
    %506 = arith.divf %504, %505 : vector<2x128xf32>
    %507 = math.tanh %501 : vector<2x128xf32>
    %508 = arith.select %2, %506, %507 : vector<2x128xi1>, vector<2x128xf32>
    %509 = vector.extract_strided_slice %508 {offsets = [0, 0], sizes = [2, 32], strides = [1, 1]} : vector<2x128xf32> to vector<2x32xf32>
    %510 = vector.extract_strided_slice %508 {offsets = [0, 32], sizes = [2, 32], strides = [1, 1]} : vector<2x128xf32> to vector<2x32xf32>
    %511 = vector.extract_strided_slice %508 {offsets = [0, 64], sizes = [2, 32], strides = [1, 1]} : vector<2x128xf32> to vector<2x32xf32>
    %512 = vector.extract_strided_slice %508 {offsets = [0, 96], sizes = [2, 32], strides = [1, 1]} : vector<2x128xf32> to vector<2x32xf32>
    %513 = arith.mulf %510, %496 : vector<2x32xf32>
    %514 = arith.mulf %509, %512 : vector<2x32xf32>
    %515 = arith.addf %513, %514 : vector<2x32xf32>
    %516 = math.tanh %515 : vector<2x32xf32>
    %517 = arith.mulf %511, %516 : vector<2x32xf32>
    %518 = vector.extract_strided_slice %351 {offsets = [14, 0], sizes = [2, 128], strides = [1, 1]} : vector<16x128xf32> to vector<2x128xf32>
    %cst_115 = arith.constant dense<0.000000e+00> : vector<2x128xf32>
    %519 = tpu.matmul %517, %360, %cst_115 {dimension_numbers = #tpu.dot_dimension_numbers<[1], [0], [0], [1], [0, 0, 1, 1], [], []>} : vector<2x32xf32>, vector<32x128xf32>, vector<2x128xf32> -> vector<2x128xf32>
    %520 = arith.addf %518, %519 : vector<2x128xf32>
    %521 = arith.negf %520 : vector<2x128xf32>
    %522 = math.exp %521 : vector<2x128xf32>
    %cst_116 = arith.constant 1.000000e+00 : f32
    %523 = vector.broadcast %cst_116 : f32 to vector<2x128xf32>
    %524 = arith.addf %523, %522 : vector<2x128xf32>
    %525 = arith.divf %523, %524 : vector<2x128xf32>
    %526 = math.tanh %520 : vector<2x128xf32>
    %527 = arith.select %2, %525, %526 : vector<2x128xi1>, vector<2x128xf32>
    %528 = vector.extract_strided_slice %527 {offsets = [0, 0], sizes = [2, 32], strides = [1, 1]} : vector<2x128xf32> to vector<2x32xf32>
    %529 = vector.extract_strided_slice %527 {offsets = [0, 32], sizes = [2, 32], strides = [1, 1]} : vector<2x128xf32> to vector<2x32xf32>
    %530 = vector.extract_strided_slice %527 {offsets = [0, 64], sizes = [2, 32], strides = [1, 1]} : vector<2x128xf32> to vector<2x32xf32>
    %531 = vector.extract_strided_slice %527 {offsets = [0, 96], sizes = [2, 32], strides = [1, 1]} : vector<2x128xf32> to vector<2x32xf32>
    %532 = arith.mulf %529, %515 : vector<2x32xf32>
    %533 = arith.mulf %528, %531 : vector<2x32xf32>
    %534 = arith.addf %532, %533 : vector<2x32xf32>
    %535 = math.tanh %534 : vector<2x32xf32>
    %536 = arith.mulf %530, %535 : vector<2x32xf32>
    %c0_117 = arith.constant 0 : index
    %c0_118 = arith.constant 0 : index
    %537 = vector.load %arg13[%c0_117, %c0_118] : memref<32x10xf32, #tpu.memory_space<vmem>>, vector<32x10xf32>
    %cst_119 = arith.constant dense<0.000000e+00> : vector<2x10xf32>
    %538 = tpu.matmul %536, %537, %cst_119 {dimension_numbers = #tpu.dot_dimension_numbers<[1], [0], [0], [1], [0, 0, 1, 1], [], []>} : vector<2x32xf32>, vector<32x10xf32>, vector<2x10xf32> -> vector<2x10xf32>
    %c0_120 = arith.constant 0 : index
    %c0_121 = arith.constant 0 : index
    %539 = vector.load %arg14[%c0_120, %c0_121] : memref<32x10xf32, #tpu.memory_space<vmem>>, vector<32x10xf32>
    %cst_122 = arith.constant dense<0.000000e+00> : vector<2x10xf32>
    %540 = tpu.matmul %403, %539, %cst_122 {dimension_numbers = #tpu.dot_dimension_numbers<[1], [0], [0], [1], [0, 0, 1, 1], [], []>} : vector<2x32xf32>, vector<32x10xf32>, vector<2x10xf32> -> vector<2x10xf32>
    %541 = arith.addf %538, %540 : vector<2x10xf32>
    %c0_123 = arith.constant 0 : index
    %c0_124 = arith.constant 0 : index
    %542 = vector.load %arg15[%c0_123, %c0_124] : memref<1x10xf32, #tpu.memory_space<vmem>>, vector<1x10xf32>
    %543 = vector.broadcast %542 : vector<1x10xf32> to vector<2x10xf32>
    %544 = arith.addf %541, %543 : vector<2x10xf32>
    %c0_125 = arith.constant 0 : index
    %c0_126 = arith.constant 0 : index
    %545 = vector.load %arg16[%c0_125, %c0_126] : memref<2x10xf32, #tpu.memory_space<vmem>>, vector<2x10xf32>
    tpu.vector_store %arg16[%c0_125, %c0_126], %544 {strides = array<i32>} : memref<2x10xf32, #tpu.memory_space<vmem>>, vector<2x10xf32>,
    return
  }
}

</mosaic_0001>

<bundles_post_ra>
// kernel: _lambda_.1
= control target key start
LH: loop header
LB: loop body
LE: loop exit
PB: predicated region body
PF: predicated region fallthrough
CT: control target
= control target key end

     0   :  { %s5700_s0 = inlined_call_operand.vmem [shape: f32[16,16], index: 0, kind: input, shape index: {}]   ;;  %s5701_s1 = inlined_call_operand.hbm [shape: f32[16,128], index: 1, kind: input, shape index: {}]   ;;  %s5702_s2 = inlined_call_operand.hbm [shape: f32[16,128], index: 2, kind: input, shape index: {}]   ;;  %s5703_s3 = inlined_call_operand.hbm [shape: f32[32,128], index: 3, kind: input, shape index: {}]   ;;  %s5704_s4 = inlined_call_operand.hbm [shape: f32[32,128], index: 4, kind: input, shape index: {}]   ;;  %s5705_s5 = inlined_call_operand.vmem [shape: f32[1,128], index: 5, kind: input, shape index: {}]   ;;  %s5706_s6 = inlined_call_operand.vmem [shape: f32[1,128], index: 6, kind: input, shape index: {}]   ;;  %s5707_s7 = inlined_call_operand.hbm [shape: f32[64,128], index: 7, kind: input, shape index: {}]   ;;  %s5708_s8 = inlined_call_operand.vmem [shape: f32[64,128], index: 8, kind: input, shape index: {}]   ;;  %s5709_s9 = inlined_call_operand.hbm [shape: f32[32,128], index: 9, kind: input, shape index: {}]   ;;  %s5710_s10 = inlined_call_operand.hbm [shape: f32[32,128], index: 10, kind: input, shape index: {}]   ;;  %s5711_s11 = inlined_call_operand.vmem [shape: f32[1,128], index: 11, kind: input, shape index: {}]   ;;  %s5712_s12 = inlined_call_operand.vmem [shape: f32[1,128], index: 12, kind: input, shape index: {}]   ;;  %s5713_s13 = inlined_call_operand.hbm [shape: f32[32,10], index: 13, kind: input, shape index: {}]   ;;  %s5714_s14 = inlined_call_operand.hbm [shape: f32[32,10], index: 14, kind: input, shape index: {}]   ;;  %s5715_s15 = inlined_call_operand.vmem [shape: f32[1,10], index: 15, kind: input, shape index: {}]   ;;  %s5716_s16 = inlined_call_operand.hbm [shape: f32[2,10], index: 16, kind: output, shape index: {}]  }
   0x1   :  { %5718 = sst [smem:[#allocation28_spill]] %s5700_s0 }
   0x2   :  { %21 = vsyncpa [#allocation7], 0 }
   0x3   :  { %22 = vsyncpa [#allocation10], 0 }
   0x4   :  { %23 = vsyncpa [#allocation13], 0 }
   0x5   :  { %24 = vsyncpa [#allocation16], 0 }
   0x6   :  { %25 = vsyncpa [#allocation19], 0 }
   0x7   :  { %26 = vsyncpa [#allocation8], 0  ;;  %s4857_s21 = smov [#allocation9]   ;;  %s4858_s23 = smov [#allocation12]  }
   0x8   :  { %s46_s22 = sshll.u32 %s4857_s21, 4  ;;  %s70_s24 = sshll.u32 %s4858_s23, 4  ;;  %s47_s22 = int_to_ptr.vmem [resolvable:$true] %s46_s22  ;;  %s4959_s24 = int_to_ptr.vmem [resolvable:$true] %s70_s24 }
   0x9   :  { %s4625_s27 = scalar_lea.hbm %s5702_s2, 256 }
   0xa   :  { %p4626_p0 = scmp.ne.s32.totalorder %s5702_s2, %s4625_s27  ;;  %p4629_p1 = scmp.lt.u32.totalorder %s4625_s27, %s5702_s2 }
   0xc   :  { %p4631_p2 = pnand %p4629_p1, %p4626_p0 }
   0xe   :  { %4634 = shalt.err (!%p4631_p2)
}
   0xf   :  { %s4635_s17 = scalar_lea.vmem %s47_s22, 256  ;;  %p4640_p4 = scmp.lt.s32.totalorder %s47_s22, %s47_s22 }
  0x10   :  { %p4636_p3 = scmp.ne.s32.totalorder %s47_s22, %s4635_s17  ;;  %p4641_p5 = scmp.lt.s32.totalorder %s4635_s17, %s4635_s17 }
  0x12   :  { %p4642_p6 = por %p4641_p5, %p4640_p4 }
  0x14   :  { %p4643_p7 = pnand %p4642_p6, %p4636_p3 }
  0x16   :  { %4646 = shalt.err (!%p4643_p7)
}
  0x17   :  { %s4859_s18 = smov 128   ;;  %s4860_s19 = smov 8  }
  0x18   :  { %52 = dma.hbm_to_vmem [thread:$0]  %s5702_s2, 256, %s47_s22, [#allocation10], %s4859_s18, %s4859_s18, %s4860_s19  }
  0x19   :  { %s4647_s26 = scalar_lea.hbm %s5704_s4, 512 }
  0x1a   :  { %p4648_p8 = scmp.ne.s32.totalorder %s5704_s4, %s4647_s26  ;;  %p4651_p9 = scmp.lt.u32.totalorder %s4647_s26, %s5704_s4 }
  0x1c   :  { %p4653_p10 = pnand %p4651_p9, %p4648_p8 }
  0x1e   :  { %4656 = shalt.err (!%p4653_p10)
}
  0x1f   :  { %s4657_s0 = scalar_lea.vmem %s4959_s24, 512  ;;  %p4662_p12 = scmp.lt.s32.totalorder %s4959_s24, %s4959_s24 }
  0x20   :  { %p4658_p11 = scmp.ne.s32.totalorder %s4959_s24, %s4657_s0  ;;  %p4663_p13 = scmp.lt.s32.totalorder %s4657_s0, %s4657_s0 }
  0x22   :  { %p4664_p0 = por %p4663_p13, %p4662_p12 }
  0x24   :  { %p4665_p1 = pnand %p4664_p0, %p4658_p11 }
  0x26   :  { %4668 = shalt.err (!%p4665_p1)
}
  0x27   :  { %76 = dma.hbm_to_vmem [thread:$0]  %s5704_s4, 512, %s4959_s24, [#allocation13], %s4859_s18, %s4859_s18, %s4860_s19  }
  0x28   :  { %s4861_s17 = smov [#allocation15]   ;;  %s4862_s21 = smov [#allocation18]  }
  0x29   :  { %s100_s20 = sshll.u32 %s4861_s17, 4  ;;  %s128_s23 = sshll.u32 %s4862_s21, 4  ;;  %s101_s20 = int_to_ptr.vmem [resolvable:$true] %s100_s20  ;;  %s4996_s23 = int_to_ptr.vmem [resolvable:$true] %s128_s23 }
  0x2a   :  { %s4669_s27 = scalar_lea.hbm %s5709_s9, 512 }
  0x2b   :  { %p4670_p2 = scmp.ne.s32.totalorder %s5709_s9, %s4669_s27  ;;  %p4673_p3 = scmp.lt.u32.totalorder %s4669_s27, %s5709_s9 }
  0x2d   :  { %p4675_p4 = pnand %p4673_p3, %p4670_p2 }
  0x2f   :  { %4678 = shalt.err (!%p4675_p4)
}
  0x30   :  { %s4679_s4 = scalar_lea.vmem %s101_s20, 512  ;;  %p4684_p6 = scmp.lt.s32.totalorder %s101_s20, %s101_s20 }
  0x31   :  { %p4680_p5 = scmp.ne.s32.totalorder %s101_s20, %s4679_s4  ;;  %p4685_p7 = scmp.lt.s32.totalorder %s4679_s4, %s4679_s4 }
  0x33   :  { %p4686_p8 = por %p4685_p7, %p4684_p6 }
  0x35   :  { %p4687_p9 = pnand %p4686_p8, %p4680_p5 }
  0x37   :  { %4690 = shalt.err (!%p4687_p9)
}
  0x38   :  { %106 = dma.hbm_to_vmem [thread:$0]  %s5709_s9, 512, %s101_s20, [#allocation16], %s4859_s18, %s4859_s18, %s4860_s19  }
  0x39   :  { %s4691_s21 = scalar_lea.hbm %s5713_s13, 512 }
  0x3a   :  { %p4692_p10 = scmp.ne.s32.totalorder %s5713_s13, %s4691_s21  ;;  %p4695_p11 = scmp.lt.u32.totalorder %s4691_s21, %s5713_s13 }
  0x3c   :  { %p4697_p12 = pnand %p4695_p11, %p4692_p10 }
  0x3e   :  { %4700 = shalt.err (!%p4697_p12)
}
  0x3f   :  { %s4701_s29 = scalar_lea.vmem %s4996_s23, 512  ;;  %p4706_p0 = scmp.lt.s32.totalorder %s4996_s23, %s4996_s23 }
  0x40   :  { %p4702_p13 = scmp.ne.s32.totalorder %s4996_s23, %s4701_s29  ;;  %p4707_p1 = scmp.lt.s32.totalorder %s4701_s29, %s4701_s29 }
  0x42   :  { %p4708_p2 = por %p4707_p1, %p4706_p0 }
  0x44   :  { %p4709_p3 = pnand %p4708_p2, %p4702_p13 }
  0x46   :  { %4712 = shalt.err (!%p4709_p3)
}
  0x47   :  { %134 = dma.hbm_to_vmem [thread:$0]  %s5713_s13, 512, %s4996_s23, [#allocation19], %s4859_s18, %s4859_s18, %s4860_s19  }
  0x48   :  { %s4863_s30 = smov [#allocation6]   ;;  %s4864_s4 = smov [#allocation11]  }
  0x49   :  { %s34_s0 = sshll.u32 %s4863_s30, 4  ;;  %s58_s24 = sshll.u32 %s4864_s4, 4  ;;  %s35_s0 = int_to_ptr.vmem [resolvable:$true] %s34_s0  ;;  %s5033_s24 = int_to_ptr.vmem [resolvable:$true] %s58_s24 }
  0x4a   :  { %s4713_s17 = scalar_lea.hbm %s5701_s1, 256 }
  0x4b   :  { %p4714_p4 = scmp.ne.s32.totalorder %s5701_s1, %s4713_s17  ;;  %p4717_p5 = scmp.lt.u32.totalorder %s4713_s17, %s5701_s1 }
  0x4d   :  { %p4719_p6 = pnand %p4717_p5, %p4714_p4 }
  0x4f   :  { %4722 = shalt.err (!%p4719_p6)
}
  0x50   :  { %s4723_s13 = scalar_lea.vmem %s35_s0, 256  ;;  %p4728_p8 = scmp.lt.s32.totalorder %s35_s0, %s35_s0 }
  0x51   :  { %p4724_p7 = scmp.ne.s32.totalorder %s35_s0, %s4723_s13  ;;  %p4729_p9 = scmp.lt.s32.totalorder %s4723_s13, %s4723_s13 }
  0x53   :  { %p4730_p10 = por %p4729_p9, %p4728_p8 }
  0x55   :  { %p4731_p11 = pnand %p4730_p10, %p4724_p7 }
  0x57   :  { %4734 = shalt.err (!%p4731_p11)
}
  0x58   :  { %40 = dma.hbm_to_vmem [thread:$0]  %s5701_s1, 256, %s35_s0, [#allocation7], %s4859_s18, %s4859_s18, %s4860_s19  }
  0x59   :  { %s4735_s20 = scalar_lea.hbm %s5703_s3, 512 }
  0x5a   :  { %p4736_p12 = scmp.ne.s32.totalorder %s5703_s3, %s4735_s20  ;;  %p4739_p13 = scmp.lt.u32.totalorder %s4735_s20, %s5703_s3 }
  0x5c   :  { %p4741_p0 = pnand %p4739_p13, %p4736_p12 }
  0x5e   :  { %4744 = shalt.err (!%p4741_p0)
}
  0x5f   :  { %s4745_s17 = scalar_lea.vmem %s5033_s24, 512  ;;  %p4750_p2 = scmp.lt.s32.totalorder %s5033_s24, %s5033_s24 }
  0x60   :  { %p4746_p1 = scmp.ne.s32.totalorder %s5033_s24, %s4745_s17  ;;  %p4751_p3 = scmp.lt.s32.totalorder %s4745_s17, %s4745_s17 }
  0x62   :  { %p4752_p4 = por %p4751_p3, %p4750_p2 }
  0x64   :  { %p4753_p5 = pnand %p4752_p4, %p4746_p1 }
  0x66   :  { %4756 = shalt.err (!%p4753_p5)
}
  0x67   :  { %64 = dma.hbm_to_vmem [thread:$0]  %s5703_s3, 512, %s5033_s24, [#allocation10], %s4859_s18, %s4859_s18, %s4860_s19  }
  0x68   :  { %s4865_s21 = smov [#allocation14]   ;;  %s4866_s26 = smov [#allocation17]  }
  0x69   :  { %s86_s25 = sshll.u32 %s4865_s21, 4  ;;  %s112_s27 = sshll.u32 %s4866_s26, 4  ;;  %s87_s25 = int_to_ptr.vmem [resolvable:$true] %s86_s25  ;;  %s5070_s27 = int_to_ptr.vmem [resolvable:$true] %s112_s27 }
  0x6a   :  { %s4757_s28 = scalar_lea.hbm %s5707_s7, 1024 }
  0x6b   :  { %p4758_p6 = scmp.ne.s32.totalorder %s5707_s7, %s4757_s28  ;;  %p4761_p7 = scmp.lt.u32.totalorder %s4757_s28, %s5707_s7 }
  0x6d   :  { %p4763_p8 = pnand %p4761_p7, %p4758_p6 }
  0x6f   :  { %4766 = shalt.err (!%p4763_p8)
}
  0x70   :  { %s4767_s3 = scalar_lea.vmem %s87_s25, 1024  ;;  %p4772_p10 = scmp.lt.s32.totalorder %s87_s25, %s87_s25 }
  0x71   :  { %p4768_p9 = scmp.ne.s32.totalorder %s87_s25, %s4767_s3  ;;  %p4773_p11 = scmp.lt.s32.totalorder %s4767_s3, %s4767_s3 }
  0x73   :  { %p4774_p12 = por %p4773_p11, %p4772_p10 }
  0x75   :  { %p4775_p13 = pnand %p4774_p12, %p4768_p9 }
  0x77   :  { %4778 = shalt.err (!%p4775_p13)
}
  0x78   :  { %92 = dma.hbm_to_vmem [thread:$0]  %s5707_s7, 1024, %s87_s25, [#allocation13], %s4859_s18, %s4859_s18, %s4860_s19  }
  0x79   :  { %s4779_s17 = scalar_lea.hbm %s5710_s10, 512 }
  0x7a   :  { %p4780_p0 = scmp.ne.s32.totalorder %s5710_s10, %s4779_s17  ;;  %p4783_p1 = scmp.lt.u32.totalorder %s4779_s17, %s5710_s10 }
  0x7c   :  { %p4785_p2 = pnand %p4783_p1, %p4780_p0 }
  0x7e   :  { %4788 = shalt.err (!%p4785_p2)
}
  0x7f   :  { %s4789_s13 = scalar_lea.vmem %s5070_s27, 512  ;;  %p4794_p4 = scmp.lt.s32.totalorder %s5070_s27, %s5070_s27 }
  0x80   :  { %p4790_p3 = scmp.ne.s32.totalorder %s5070_s27, %s4789_s13  ;;  %p4795_p5 = scmp.lt.s32.totalorder %s4789_s13, %s4789_s13 }
  0x82   :  { %p4796_p6 = por %p4795_p5, %p4794_p4 }
  0x84   :  { %p4797_p7 = pnand %p4796_p6, %p4790_p3 }
  0x86   :  { %4800 = shalt.err (!%p4797_p7)
}
  0x87   :  { %118 = dma.hbm_to_vmem [thread:$0]  %s5710_s10, 512, %s5070_s27, [#allocation16], %s4859_s18, %s4859_s18, %s4860_s19  }
  0x88   :  { %s4867_s23 = smov [#allocation20]   ;;  %s4801_s20 = scalar_lea.hbm %s5714_s14, 512 }
  0x89   :  { %s140_s28 = sshll.u32 %s4867_s23, 4  ;;  %p4802_p8 = scmp.ne.s32.totalorder %s5714_s14, %s4801_s20  ;;  %s141_s28 = int_to_ptr.vmem [resolvable:$true] %s140_s28 }
  0x8a   :  { %p4805_p9 = scmp.lt.u32.totalorder %s4801_s20, %s5714_s14 }
  0x8c   :  { %p4807_p10 = pnand %p4805_p9, %p4802_p8 }
  0x8e   :  { %4810 = shalt.err (!%p4807_p10)
}
  0x8f   :  { %s4811_s2 = scalar_lea.vmem %s141_s28, 512  ;;  %p4816_p12 = scmp.lt.s32.totalorder %s141_s28, %s141_s28 }
  0x90   :  { %p4812_p11 = scmp.ne.s32.totalorder %s141_s28, %s4811_s2  ;;  %p4817_p13 = scmp.lt.s32.totalorder %s4811_s2, %s4811_s2 }
  0x92   :  { %p4818_p0 = por %p4817_p13, %p4816_p12 }
  0x94   :  { %p4819_p1 = pnand %p4818_p0, %p4812_p11 }
  0x96   :  { %4822 = shalt.err (!%p4819_p1)
}
  0x97   :  { %146 = dma.hbm_to_vmem [thread:$0]  %s5714_s14, 512, %s141_s28, [#allocation19], %s4859_s18, %s4859_s18, %s4860_s19  }
  0x98   :  { %4845 = dma.done.wait [#allocation7], 256  }
  0x99   :  { %4846 = vsyncadd [#allocation7], 4294967040 }
  0x9a   :  { %4847 = dma.done.wait [#allocation10], 768  }
  0x9b   :  { %4848 = vsyncadd [#allocation10], 4294966528 }
  0x9c   :  { %4849 = dma.done.wait [#allocation13], 1536  }
  0x9d   :  { %4850 = vsyncadd [#allocation13], 4294965760 }
  0x9e   :  { %4851 = dma.done.wait [#allocation16], 1024  }
  0x9f   :  { %4852 = vsyncadd [#allocation16], 4294966272 }
  0xa0   :  { %4853 = dma.done.wait [#allocation19], 1024  }
  0xa1   :  { %4854 = vsyncadd [#allocation19], 4294966272  ;;  %v4868_v0 = vmov 0.0|0.0   ;;  %vm4869_vm0 = vmmov 0   ;;  %v4870_v1 = vmov 0.0   ;;  %vm190_vm1 = vcmask 130048  }
  0xa2   :  { %4212 = vmatprep.subr.bf16.mxu0 %v4868_v0  ;;  %3871 = vmatprep.mubr.msk.f32.mxu0 %vm4869_vm0, %v4870_v1  ;;  %v181_v2 = vld [vmem:[#allocation6] sm:$0xff]  ;;  %v182_v3 = vld [vmem:[#allocation6 + $0x8] sm:$0xff]  ;;  %s5719_s19 = sld [smem:[#allocation28_spill]]  ;;  %v272_v9 = vld [vmem:[#allocation9] sm:$0xff]  ;;  %v176_v45 = vlaneseq  ;;  %vm364_vm3 = vcmask 261120   ;;  %vm567_vm4 = vcmask 254976  }
  0xa3   :  { %v356_v4 = vld [vmem:[#allocation11] sm:$0xff]  ;;  %v4204_v5 = vpack.c.bf16 %v182_v3, %v181_v2  ;;  %v357_v6 = vld [vmem:[#allocation11 + $0x8] sm:$0xff]  ;;  %v273_v10 = vld [vmem:[#allocation9 + $0x8] sm:$0xff]  ;;  %vm573_vm5 = vcmask 261126   ;;  %vm790_vm6 = vcmask 257026   ;;  %vm796_vm7 = vcmask 259076  }
  0xa4   :  { %v5128_v8 = vpack.c.bf16 %v357_v6, %v356_v4  ;;  %v358_v11 = vld [vmem:[#allocation11 + $0x10] sm:$0xff]  ;;  %v4208_v12 = vpack.c.bf16 %v273_v10, %v272_v9  ;;  %v359_v13 = vld [vmem:[#allocation11 + $0x18] sm:$0xff]  ;;  %v360_v16 = vld [vmem:[#allocation12] sm:$0xff]  ;;  %v5184_v46 = vand.u32 127, %v176_v45  ;;  %s4873_s17 = smov [#allocation21]   ;;  %vm3596_vm8 = vcmask 74752  }
  0xa5   :  { %4205 = vmatprep.subr.bf16.mxu1 %v4204_v5  ;;  %v5135_v15 = vpack.c.bf16 %v359_v13, %v358_v11  ;;  %v361_v17 = vld [vmem:[#allocation12 + $0x8] sm:$0xff]  ;;  %v362_v19 = vld [vmem:[#allocation12 + $0x10] sm:$0xff]  ;;  %v363_v20 = vld [vmem:[#allocation12 + $0x18] sm:$0xff]  ;;  %s3604_s1 = sshll.u32 %s4873_s17, 4  ;;  %s3605_s1 = int_to_ptr.vmem [resolvable:$true] %s3604_s1 }
  0xa6   :  { %4214 = vmatpush3.bf16.msra.mxu0 %v5128_v8  ;;  %4207 = vmatpush3.bf16.msra.mxu1 %v4204_v5  ;;  %v5140_v18 = vpack.c.bf16 %v361_v17, %v360_v16  ;;  %v5148_v21 = vpack.c.bf16 %v363_v20, %v362_v19  ;;  %v3617_v22 = vld [vmem:[%s5705_s5] ss:$0 sm:$0xff]  ;;  %vm178_vm2 = vcmp.lt.s32.totalorder %v5184_v46, 96  ;;  %s4871_s5 = smov 32   ;;  %v3430_v46 = vld [vmem:[#allocation18 + $0x10] sm:$0xff]  ;;  %s4823_s0 = scalar_lea.vmem %s3605_s1, 32 }
  0xa7   :  { %4215 = vmatprep.subr.bf16.mxu0 %v4868_v0  ;;  %4209 = vmatprep.subr.bf16.mxu1 %v4208_v12  ;;  %v3620_v26 = vld [vmem:[%s5706_s6] ss:$0 sm:$0xff]  ;;  %s4872_s6 = smov 64   ;;  %p4824_p2 = scmp.ne.s32.totalorder %s3605_s1, %s4823_s0 }
  0xa8   :  { %v179_v7 = vld [vmem:[%s5719_s19] sm:$0xff]  ;;  %v180_v14 = vld [vmem:[%s5719_s19 + $0x8] sm:$0xff]  ;;  %p4828_p3 = scmp.lt.s32.totalorder %s3605_s1, %s3605_s1  ;;  %p4829_p4 = scmp.lt.s32.totalorder %s4823_s0, %s4823_s0 }
  0xa9   :  { %3853 = vmatprep.mubr.msk.f32.mxu1 %vm190_vm1, %v179_v7 }
  0xaa   :  { %3854 = vmatmul.mubr.msk.f32.vlgmr.msra.gmra.mrb[0].mxu1 %vm190_vm1, %v180_v14  ;;  %4217 = vmatpush3.bf16.msra.mxu0 %v5135_v15  ;;  %p4830_p5 = por %p4829_p4, %p4828_p3 }
  0xab   :  { %4211 = vmatpush3.bf16.msra.mxu1 %v4208_v12  ;;  %3860 = vmatprep.mubr.msk.f32.mxu1 %vm190_vm1, %v179_v7 }
  0xac   :  { %4218 = vmatprep.subr.bf16.mxu1 %v4868_v0  ;;  %4224 = vmatprep.subr.bf16.mxu0 %v4868_v0  ;;  %p4831_p6 = pnand %p4830_p5, %p4824_p2 }
  0xad   :  { %3872 = vmatmul.mubr.f32.vlgmr.msra.gmra.mrb[0].mxu0 %v4870_v1 }
  0xae   :  { %3861 = vmatmul.mubr.msk.f32.vlgmr.msra.gmra.mrb[2].mxu1 %vm190_vm1, %v180_v14  ;;  %4226 = vmatpush3.bf16.msra.mxu0 %v5128_v8 }
  0xaf   :  { %4220 = vmatpush3.bf16.msra.mxu1 %v5140_v18  ;;  %3882 = vmatprep.mubr.msk.f32.mxu1 %vm4869_vm0, %v4870_v1 }
  0xb0   :  { %4221 = vmatprep.subr.bf16.mxu1 %v4868_v0  ;;  %4227 = vmatprep.subr.bf16.mxu0 %v4868_v0 }
  0xb1   :  { %3893 = vmatprep.mubr.msk.f32.mxu0 %vm4869_vm0, %v4870_v1 }
  0xb2   :  { %4229 = vmatpush3.bf16.msra.mxu0 %v5135_v15 }
  0xb3   :  { %4223 = vmatpush3.bf16.msra.mxu1 %v5148_v21  ;;  %4236 = vmatprep.subr.bf16.mxu0 %v4868_v0 }
  0xb4   :  { %4230 = vmatprep.subr.bf16.mxu1 %v4868_v0 }
  0xb6   :  { %3883 = vmatmul.mubr.f32.vlgmr.msra.gmra.mrb[4].mxu1 %v4870_v1 }
  0xb7   :  { %4232 = vmatpush3.bf16.msra.mxu1 %v5140_v18  ;;  %3904 = vmatprep.mubr.msk.f32.mxu1 %vm4869_vm0, %v4870_v1 }
  0xb8   :  { %4233 = vmatprep.subr.bf16.mxu1 %v4868_v0 }
  0xbb   :  { %4235 = vmatpush3.bf16.msra.mxu1 %v5148_v21 }
  0xbc   :  { %4242 = vmatprep.subr.bf16.mxu1 %v4868_v0 }
 0x17d   :  { %v3855_v23 = vpop.f32.mrb[0].mxu1 }
 0x17e   :  { %v5171_v24 = vadd.f32 %v3855_v23, %v3617_v22  ;;  %v263_v25 = vpop.f32.mrb[1].mxu1 }
 0x17f   :  { %v5176_v29 = vadd.f32 %v3617_v22, %v263_v25 }
 0x180   :  { %v434_v27 = vpop.f32.mrb[0].mxu0 }
 0x181   :  { %v3862_v28 = vpop.f32.mrb[2].mxu1  ;;  %v3873_v31 = vpop.f32.mrb[1].mxu0  ;;  %v438_v33 = vadd.f32 %v434_v27, %v5176_v29 }
 0x182   :  { %v347_v30 = vpop.f32.mrb[3].mxu1  ;;  %v5181_v36 = vadd.f32 %v3862_v28, %v3620_v26 }
 0x183   :  { %v5178_v32 = vadd.f32 %v3620_v26, %v347_v30  ;;  %v3623_v35 = vmul.f32 -1.442695, %v438_v33 }
 0x185   :  { %4425 = vpow2.f32 %v3623_v35 }
 0x189   :  { %v505_v34 = vpop.f32.mrb[4].mxu1 }
 0x18a   :  { %v510_v37 = vrot.slane %v505_v34, 2  ;;  %v3884_v38 = vpop.f32.mrb[5].mxu1 }
 0x18c   :  { %v512_v39 = vadd.f32 %v510_v37, %v5181_v36 }
 0x18e   :  { %v3624_v40 = vmul.f32 -1.442695, %v512_v39 }
 0x18f   :  { %v4426_v41 = vpop.eup %4425 }
 0x190   :  { %4427 = vpow2.f32 %v3624_v40  ;;  %v516_v43 = vadd.f32 1.0, %v4426_v41 }
 0x191   :  { %4429 = vtanh.f32 %v512_v39 }
 0x19a   :  { %v4428_v42 = vpop.eup %4427 }
 0x19b   :  { %v541_v44 = vadd.f32 1.0, %v4428_v42  ;;  %v4430_v47 = vpop.eup %4429 }
 0x19d   :  { %4431 = vrcp.f32 %v541_v44 }
 0x19e   :  { %4433 = vrcp.f32 %v516_v43 }
 0x19f   :  { %4435 = vtanh.f32 %v438_v33 }
 0x1a7   :  { %v4432_v48 = vpop.eup %4431 }
 0x1a8   :  { %v545_v49 = vsel %vm178_vm2, %v4432_v48, %v4430_v47  ;;  %v4434_v50 = vpop.eup %4433 }
 0x1a9   :  { %548 = vrot.lane.b32.xlu0 %v545_v49, %s4871_s5  ;;  %v4436_v51 = vpop.eup %4435  ;;  %v546_v57 = vmul.f32 0.0, %v545_v49 }
 0x1aa   :  { %v520_v52 = vsel %vm178_vm2, %v4434_v50, %v4436_v51 }
 0x1ab   :  { %v521_v60 = vmul.f32 0.0, %v520_v52 }
 0x1ad   :  { %523 = vrot.lane.b32.xlu0 %v520_v52, %s4871_s5 }
 0x21b   :  { %v549_v53 = vpop.permute.xlu0 %548 }
 0x21c   :  { %v551_v54 = vmul.f32 %v549_v53, %v545_v49 }
 0x21e   :  { %553 = vrot.lane.b32.xlu1 %v551_v54, %s4871_s5 }
 0x21f   :  { %v524_v55 = vpop.permute.xlu0 %523 }
 0x220   :  { %v526_v56 = vmul.f32 %v524_v55, %v520_v52 }
 0x222   :  { %528 = vrot.lane.b32.xlu1 %v526_v56, %s4871_s5 }
 0x290   :  { %v554_v58 = vpop.permute.xlu1 %553 }
 0x291   :  { %v5195_v59 = vadd.f32 %v554_v58, %v546_v57 }
 0x293   :  { %4437 = vtanh.f32 %v5195_v59  ;;  %v767_v42 = vrot.slane %v5195_v59, 2 }
 0x294   :  { %v529_v61 = vpop.permute.xlu1 %528 }
 0x295   :  { %v5198_v62 = vadd.f32 %v529_v61, %v521_v60 }
 0x297   :  { %4439 = vtanh.f32 %v5198_v62  ;;  %v739_v43 = vrot.slane %v5198_v62, 6 }
 0x29d   :  { %v4438_v63 = vpop.eup %4437 }
 0x29e   :  { %559 = vrot.lane.b32.xlu0 %v4438_v63, %s4871_s5 }
 0x2a1   :  { %v4440_v2 = vpop.eup %4439 }
 0x2a2   :  { %534 = vrot.lane.b32.xlu1 %v4440_v2, %s4871_s5 }
 0x310   :  { %v560_v3 = vpop.permute.xlu0 %559 }
 0x311   :  { %v5203_v4 = vmul.f32 %v560_v3, %v545_v49 }
 0x313   :  { %v651_v5 = vrot.slane %v5203_v4, 6 }
 0x314   :  { %v535_v6 = vpop.permute.xlu1 %534 }
 0x315   :  { %v537_v7 = vmul.f32 %v535_v6, %v520_v52  ;;  %652 = vrot.lane.b32.xlu0 %v651_v5, %s4872_s6 }
 0x317   :  { %564 = vrot.lane.b32.xlu1 %v537_v7, %s4872_s6 }
 0x387   :  { %v653_v9 = vpop.permute.xlu0 %652 }
 0x388   :  { %3905 = vmatmul.mubr.msk.f32.vlgmr.msra.gmra.mrb[6].mxu1 %vm364_vm3, %v653_v9 }
 0x389   :  { %v565_v10 = vpop.permute.xlu1 %564  ;;  %4244 = vmatpush3.bf16.msra.mxu1 %v5140_v18  ;;  %3926 = vmatprep.mubr.msk.f32.mxu1 %vm4869_vm0, %v4870_v1 }
 0x38a   :  { %568 = vst.msk [vmem:[#allocation2] sm:$0x3] %vm567_vm4, %v565_v10  ;;  %3894 = vmatmul.mubr.msk.f32.vlgmr.msra.gmra.mrb[2].mxu0 %vm364_vm3, %v565_v10  ;;  %4245 = vmatprep.subr.bf16.mxu1 %v4868_v0 }
 0x38b   :  { %4238 = vmatpush3.bf16.msra.mxu0 %v5128_v8  ;;  %3915 = vmatprep.mubr.msk.f32.mxu0 %vm4869_vm0, %v4870_v1 }
 0x38c   :  { %4239 = vmatprep.subr.bf16.mxu0 %v4868_v0 }
 0x38d   :  { %4247 = vmatpush3.bf16.msra.mxu1 %v5148_v21 }
 0x38e   :  { %4254 = vmatprep.subr.bf16.mxu1 %v4868_v0 }
 0x38f   :  { %4241 = vmatpush3.bf16.msra.mxu0 %v5135_v15 }
 0x390   :  { %4248 = vmatprep.subr.bf16.mxu0 %v4868_v0 }
 0x45b   :  { %v722_v11 = vpop.f32.mrb[6].mxu1 }
 0x45c   :  { %v727_v12 = vrot.slane %v722_v11, 4  ;;  %v3906_v13 = vpop.f32.mrb[7].mxu1 }
 0x45d   :  { %v643_v14 = vpop.f32.mrb[2].mxu0 }
 0x45e   :  { %v729_v16 = vadd.f32 %v727_v12, %v5181_v36  ;;  %v648_v17 = vrot.slane %v643_v14, 6  ;;  %v3895_v19 = vpop.f32.mrb[3].mxu0 }
 0x460   :  { %v3628_v20 = vmul.f32 -1.442695, %v729_v16  ;;  %v650_v22 = vadd.f32 %v648_v17, %v5176_v29 }
 0x462   :  { %4441 = vpow2.f32 %v3628_v20  ;;  %v3627_v23 = vmul.f32 -1.442695, %v650_v22 }
 0x464   :  { %4443 = vpow2.f32 %v3627_v23 }
 0x465   :  { %4445 = vtanh.f32 %v729_v16 }
 0x46c   :  { %v4442_v25 = vpop.eup %4441 }
 0x46d   :  { %v761_v26 = vadd.f32 1.0, %v4442_v25 }
 0x46e   :  { %v4444_v27 = vpop.eup %4443 }
 0x46f   :  { %4447 = vrcp.f32 %v761_v26  ;;  %v733_v28 = vadd.f32 1.0, %v4444_v27  ;;  %v4446_v30 = vpop.eup %4445 }
 0x470   :  { %4449 = vtanh.f32 %v650_v22 }
 0x471   :  { %4451 = vrcp.f32 %v733_v28 }
 0x479   :  { %v4448_v31 = vpop.eup %4447 }
 0x47a   :  { %v4450_v33 = vpop.eup %4449  ;;  %v765_v34 = vsel %vm178_vm2, %v4448_v31, %v4446_v30 }
 0x47b   :  { %v4452_v35 = vpop.eup %4451  ;;  %771 = vrot.lane.b32.xlu0 %v765_v34, %s4871_s5  ;;  %v769_v44 = vmul.f32 %v767_v42, %v765_v34 }
 0x47c   :  { %v737_v37 = vsel %vm178_vm2, %v4452_v35, %v4450_v33 }
 0x47d   :  { %743 = vrot.lane.b32.xlu1 %v737_v37, %s4871_s5  ;;  %v741_v48 = vmul.f32 %v739_v43, %v737_v37 }
 0x4ed   :  { %v772_v38 = vpop.permute.xlu0 %771 }
 0x4ee   :  { %v774_v39 = vmul.f32 %v772_v38, %v765_v34 }
 0x4ef   :  { %v744_v40 = vpop.permute.xlu1 %743 }
 0x4f0   :  { %v746_v41 = vmul.f32 %v744_v40, %v737_v37  ;;  %776 = vrot.lane.b32.xlu0 %v774_v39, %s4871_s5 }
 0x4f2   :  { %748 = vrot.lane.b32.xlu1 %v746_v41, %s4871_s5 }
 0x562   :  { %v777_v45 = vpop.permute.xlu0 %776 }
 0x563   :  { %v5235_v47 = vadd.f32 %v777_v45, %v769_v44 }
 0x564   :  { %v749_v49 = vpop.permute.xlu1 %748 }
 0x565   :  { %4453 = vtanh.f32 %v5235_v47  ;;  %v5238_v50 = vadd.f32 %v749_v49, %v741_v48  ;;  %v993_v30 = vrot.slane %v5235_v47, 2 }
 0x567   :  { %4455 = vtanh.f32 %v5238_v50  ;;  %v965_v31 = vrot.slane %v5238_v50, 6 }
 0x56f   :  { %v4454_v51 = vpop.eup %4453 }
 0x570   :  { %782 = vrot.lane.b32.xlu0 %v4454_v51, %s4871_s5 }
 0x571   :  { %v4456_v52 = vpop.eup %4455 }
 0x572   :  { %754 = vrot.lane.b32.xlu1 %v4456_v52, %s4871_s5 }
 0x5e2   :  { %v783_v53 = vpop.permute.xlu0 %782 }
 0x5e3   :  { %v5243_v54 = vmul.f32 %v783_v53, %v765_v34 }
 0x5e4   :  { %v755_v55 = vpop.permute.xlu1 %754 }
 0x5e5   :  { %v877_v56 = vrot.slane %v5243_v54, 4  ;;  %v5246_v57 = vmul.f32 %v755_v55, %v737_v37 }
 0x5e7   :  { %v798_v58 = vrot.slane %v5246_v57, 2  ;;  %878 = vrot.lane.b32.xlu0 %v877_v56, %s4872_s6 }
 0x5e9   :  { %799 = vrot.lane.b32.xlu1 %v798_v58, %s4872_s6 }
 0x659   :  { %v879_v59 = vpop.permute.xlu0 %878 }
 0x65a   :  { %3927 = vmatmul.mubr.msk.f32.vlgmr.msra.gmra.mrb[8].mxu1 %vm364_vm3, %v879_v59 }
 0x65b   :  { %v800_v60 = vpop.permute.xlu1 %799  ;;  %4256 = vmatpush3.bf16.msra.mxu1 %v5140_v18  ;;  %3948 = vmatprep.mubr.msk.f32.mxu1 %vm4869_vm0, %v4870_v1 }
 0x65c   :  { %3916 = vmatmul.mubr.msk.f32.vlgmr.msra.gmra.mrb[4].mxu0 %vm364_vm3, %v800_v60  ;;  %4257 = vmatprep.subr.bf16.mxu1 %v4868_v0 }
 0x65d   :  { %4250 = vmatpush3.bf16.msra.mxu0 %v5128_v8  ;;  %3937 = vmatprep.mubr.msk.f32.mxu0 %vm4869_vm0, %v4870_v1 }
 0x65e   :  { %4251 = vmatprep.subr.bf16.mxu0 %v4868_v0 }
 0x65f   :  { %4259 = vmatpush3.bf16.msra.mxu1 %v5148_v21 }
 0x660   :  { %4266 = vmatprep.subr.bf16.mxu1 %v4868_v0 }
 0x661   :  { %4253 = vmatpush3.bf16.msra.mxu0 %v5135_v15 }
 0x662   :  { %4260 = vmatprep.subr.bf16.mxu0 %v4868_v0 }
 0x72d   :  { %v948_v61 = vpop.f32.mrb[8].mxu1 }
 0x72e   :  { %v953_v62 = vrot.slane %v948_v61, 6  ;;  %v3928_v63 = vpop.f32.mrb[9].mxu1 }
 0x72f   :  { %v869_v2 = vpop.f32.mrb[4].mxu0 }
 0x730   :  { %v955_v3 = vadd.f32 %v953_v62, %v5181_v36  ;;  %v874_v5 = vrot.slane %v869_v2, 4  ;;  %v3917_v6 = vpop.f32.mrb[5].mxu0 }
 0x732   :  { %v3632_v7 = vmul.f32 -1.442695, %v955_v3  ;;  %v876_v9 = vadd.f32 %v874_v5, %v5176_v29 }
 0x734   :  { %4457 = vpow2.f32 %v3632_v7  ;;  %v3631_v10 = vmul.f32 -1.442695, %v876_v9 }
 0x736   :  { %4459 = vpow2.f32 %v3631_v10 }
 0x737   :  { %4461 = vtanh.f32 %v955_v3 }
 0x73e   :  { %v4458_v11 = vpop.eup %4457 }
 0x73f   :  { %v987_v12 = vadd.f32 1.0, %v4458_v11 }
 0x740   :  { %v4460_v13 = vpop.eup %4459 }
 0x741   :  { %4463 = vrcp.f32 %v987_v12  ;;  %v959_v14 = vadd.f32 1.0, %v4460_v13  ;;  %v4462_v16 = vpop.eup %4461 }
 0x742   :  { %4465 = vtanh.f32 %v876_v9 }
 0x743   :  { %4467 = vrcp.f32 %v959_v14 }
 0x74b   :  { %v4464_v17 = vpop.eup %4463 }
 0x74c   :  { %v4466_v19 = vpop.eup %4465  ;;  %v991_v20 = vsel %vm178_vm2, %v4464_v17, %v4462_v16 }
 0x74d   :  { %v4468_v22 = vpop.eup %4467  ;;  %997 = vrot.lane.b32.xlu0 %v991_v20, %s4871_s5  ;;  %v995_v33 = vmul.f32 %v993_v30, %v991_v20 }
 0x74e   :  { %v963_v23 = vsel %vm178_vm2, %v4468_v22, %v4466_v19 }
 0x74f   :  { %969 = vrot.lane.b32.xlu1 %v963_v23, %s4871_s5  ;;  %v967_v37 = vmul.f32 %v965_v31, %v963_v23 }
 0x7bf   :  { %v998_v25 = vpop.permute.xlu0 %997 }
 0x7c0   :  { %v1000_v26 = vmul.f32 %v998_v25, %v991_v20 }
 0x7c1   :  { %v970_v27 = vpop.permute.xlu1 %969 }
 0x7c2   :  { %v972_v28 = vmul.f32 %v970_v27, %v963_v23  ;;  %1002 = vrot.lane.b32.xlu0 %v1000_v26, %s4871_s5 }
 0x7c4   :  { %974 = vrot.lane.b32.xlu1 %v972_v28, %s4871_s5 }
 0x834   :  { %v1003_v34 = vpop.permute.xlu0 %1002 }
 0x835   :  { %v5277_v35 = vadd.f32 %v1003_v34, %v995_v33 }
 0x836   :  { %v975_v38 = vpop.permute.xlu1 %974 }
 0x837   :  { %4469 = vtanh.f32 %v5277_v35  ;;  %v5280_v39 = vadd.f32 %v975_v38, %v967_v37  ;;  %v1214_v14 = vrot.slane %v5277_v35, 2 }
 0x839   :  { %4471 = vtanh.f32 %v5280_v39  ;;  %v1186_v19 = vrot.slane %v5280_v39, 6 }
 0x841   :  { %v4470_v40 = vpop.eup %4469 }
 0x842   :  { %1008 = vrot.lane.b32.xlu0 %v4470_v40, %s4871_s5 }
 0x843   :  { %v4472_v41 = vpop.eup %4471 }
 0x844   :  { %980 = vrot.lane.b32.xlu1 %v4472_v41, %s4871_s5 }
 0x8b4   :  { %v1009_v42 = vpop.permute.xlu0 %1008 }
 0x8b5   :  { %v5285_v43 = vmul.f32 %v1009_v42, %v991_v20 }
 0x8b6   :  { %v981_v44 = vpop.permute.xlu1 %980 }
 0x8b7   :  { %v1101_v45 = vrot.slane %v5285_v43, 2  ;;  %v5288_v47 = vmul.f32 %v981_v44, %v963_v23 }
 0x8b9   :  { %v1022_v48 = vrot.slane %v5288_v47, 4  ;;  %1102 = vrot.lane.b32.xlu0 %v1101_v45, %s4872_s6 }
 0x8bb   :  { %1023 = vrot.lane.b32.xlu1 %v1022_v48, %s4872_s6 }
 0x92b   :  { %v1103_v49 = vpop.permute.xlu0 %1102 }
 0x92c   :  { %3949 = vmatmul.mubr.msk.f32.vlgmr.msra.gmra.mrb[10].mxu1 %vm364_vm3, %v1103_v49 }
 0x92d   :  { %v1024_v50 = vpop.permute.xlu1 %1023  ;;  %4268 = vmatpush3.bf16.msra.mxu1 %v5140_v18  ;;  %3970 = vmatprep.mubr.msk.f32.mxu1 %vm4869_vm0, %v4870_v1 }
 0x92e   :  { %3938 = vmatmul.mubr.msk.f32.vlgmr.msra.gmra.mrb[6].mxu0 %vm364_vm3, %v1024_v50  ;;  %4269 = vmatprep.subr.bf16.mxu1 %v4868_v0 }
 0x92f   :  { %4262 = vmatpush3.bf16.msra.mxu0 %v5128_v8  ;;  %3959 = vmatprep.mubr.msk.f32.mxu0 %vm4869_vm0, %v4870_v1 }
 0x930   :  { %4263 = vmatprep.subr.bf16.mxu0 %v4868_v0 }
 0x931   :  { %4271 = vmatpush3.bf16.msra.mxu1 %v5148_v21 }
 0x932   :  { %4278 = vmatprep.subr.bf16.mxu1 %v4868_v0 }
 0x933   :  { %4265 = vmatpush3.bf16.msra.mxu0 %v5135_v15 }
 0x934   :  { %4272 = vmatprep.subr.bf16.mxu0 %v4868_v0 }
 0x9ff   :  { %v1172_v51 = vpop.f32.mrb[10].mxu1 }
 0xa00   :  { %v1176_v52 = vadd.f32 %v1172_v51, %v5181_v36  ;;  %v3950_v53 = vpop.f32.mrb[11].mxu1 }
 0xa01   :  { %v1093_v55 = vpop.f32.mrb[6].mxu0 }
 0xa02   :  { %v3636_v56 = vmul.f32 -1.442695, %v1176_v52  ;;  %v1098_v58 = vrot.slane %v1093_v55, 2  ;;  %v3939_v59 = vpop.f32.mrb[7].mxu0 }
 0xa04   :  { %4473 = vpow2.f32 %v3636_v56  ;;  %v1100_v60 = vadd.f32 %v1098_v58, %v5176_v29 }
 0xa06   :  { %v3635_v61 = vmul.f32 -1.442695, %v1100_v60 }
 0xa08   :  { %4475 = vpow2.f32 %v3635_v61 }
 0xa09   :  { %4477 = vtanh.f32 %v1176_v52 }
 0xa0e   :  { %v4474_v62 = vpop.eup %4473 }
 0xa0f   :  { %v1208_v63 = vadd.f32 1.0, %v4474_v62 }
 0xa11   :  { %4479 = vrcp.f32 %v1208_v63 }
 0xa12   :  { %v4476_v2 = vpop.eup %4475  ;;  %4481 = vtanh.f32 %v1100_v60 }
 0xa13   :  { %v1180_v3 = vadd.f32 1.0, %v4476_v2  ;;  %v4478_v5 = vpop.eup %4477 }
 0xa15   :  { %4483 = vrcp.f32 %v1180_v3 }
 0xa1b   :  { %v4480_v36 = vpop.eup %4479 }
 0xa1c   :  { %v1212_v6 = vsel %vm178_vm2, %v4480_v36, %v4478_v5  ;;  %v4482_v7 = vpop.eup %4481 }
 0xa1d   :  { %1218 = vrot.lane.b32.xlu0 %v1212_v6, %s4871_s5  ;;  %v1216_v16 = vmul.f32 %v1214_v14, %v1212_v6 }
 0xa1f   :  { %v4484_v9 = vpop.eup %4483 }
 0xa20   :  { %v1184_v29 = vsel %vm178_vm2, %v4484_v9, %v4482_v7 }
 0xa21   :  { %1190 = vrot.lane.b32.xlu1 %v1184_v29, %s4871_s5  ;;  %v1188_v22 = vmul.f32 %v1186_v19, %v1184_v29 }
 0xa8f   :  { %v1219_v10 = vpop.permute.xlu0 %1218 }
 0xa90   :  { %v1221_v11 = vmul.f32 %v1219_v10, %v1212_v6 }
 0xa92   :  { %1223 = vrot.lane.b32.xlu0 %v1221_v11, %s4871_s5 }
 0xa93   :  { %v1191_v12 = vpop.permute.xlu1 %1190 }
 0xa94   :  { %v1193_v13 = vmul.f32 %v1191_v12, %v1184_v29 }
 0xa96   :  { %1195 = vrot.lane.b32.xlu1 %v1193_v13, %s4871_s5 }
 0xb04   :  { %v1224_v17 = vpop.permute.xlu0 %1223 }
 0xb05   :  { %v5319_v20 = vadd.f32 %v1224_v17, %v1216_v16 }
 0xb07   :  { %4485 = vtanh.f32 %v5319_v20  ;;  %v1432_v5 = vrot.slane %v5319_v20, 2 }
 0xb08   :  { %v1196_v23 = vpop.permute.xlu1 %1195 }
 0xb09   :  { %v5322_v25 = vadd.f32 %v1196_v23, %v1188_v22 }
 0xb0b   :  { %4487 = vtanh.f32 %v5322_v25  ;;  %v1404_v7 = vrot.slane %v5322_v25, 6 }
 0xb11   :  { %v4486_v26 = vpop.eup %4485 }
 0xb12   :  { %1229 = vrot.lane.b32.xlu0 %v4486_v26, %s4871_s5 }
 0xb15   :  { %v4488_v27 = vpop.eup %4487 }
 0xb16   :  { %1201 = vrot.lane.b32.xlu1 %v4488_v27, %s4871_s5 }
 0xb84   :  { %v1230_v28 = vpop.permute.xlu0 %1229 }
 0xb85   :  { %v1232_v30 = vmul.f32 %v1230_v28, %v1212_v6 }
 0xb87   :  { %1239 = vrot.lane.b32.xlu0 %v1232_v30, %s4872_s6 }
 0xb88   :  { %v1202_v31 = vpop.permute.xlu1 %1201 }
 0xb89   :  { %v5328_v33 = vmul.f32 %v1202_v31, %v1184_v29 }
 0xb8b   :  { %v1243_v34 = vrot.slane %v5328_v33, 6 }
 0xb8d   :  { %1244 = vrot.lane.b32.xlu1 %v1243_v34, %s4872_s6 }
 0xbf9   :  { %v1240_v35 = vpop.permute.xlu0 %1239 }
 0xbfa   :  { %1242 = vst.msk [vmem:[#allocation3 + $0x8] sm:$0x3] %vm567_vm4, %v1240_v35  ;;  %3971 = vmatmul.mubr.msk.f32.vlgmr.msra.gmra.mrb[12].mxu1 %vm364_vm3, %v1240_v35 }
 0xbfb   :  { %4280 = vmatpush3.bf16.msra.mxu1 %v5140_v18  ;;  %3992 = vmatprep.mubr.msk.f32.mxu1 %vm4869_vm0, %v4870_v1 }
 0xbfc   :  { %4281 = vmatprep.subr.bf16.mxu1 %v4868_v0 }
 0xbff   :  { %v1245_v37 = vpop.permute.xlu1 %1244  ;;  %4283 = vmatpush3.bf16.msra.mxu1 %v5148_v21 }
 0xc00   :  { %3960 = vmatmul.mubr.msk.f32.vlgmr.msra.gmra.mrb[8].mxu0 %vm364_vm3, %v1245_v37  ;;  %4290 = vmatprep.subr.bf16.mxu1 %v4868_v0 }
 0xc01   :  { %4274 = vmatpush3.bf16.msra.mxu0 %v5128_v8  ;;  %3981 = vmatprep.mubr.msk.f32.mxu0 %vm4869_vm0, %v4870_v1 }
 0xc02   :  { %4275 = vmatprep.subr.bf16.mxu0 %v4868_v0 }
 0xc05   :  { %4277 = vmatpush3.bf16.msra.mxu0 %v5135_v15 }
 0xc06   :  { %4284 = vmatprep.subr.bf16.mxu0 %v4868_v0 }
 0xccd   :  { %v1387_v38 = vpop.f32.mrb[12].mxu1 }
 0xcce   :  { %v1392_v39 = vrot.slane %v1387_v38, 2  ;;  %v3972_v40 = vpop.f32.mrb[13].mxu1 }
 0xcd0   :  { %v1394_v41 = vadd.f32 %v1392_v39, %v5178_v32 }
 0xcd2   :  { %v3640_v42 = vmul.f32 -1.442695, %v1394_v41 }
 0xcd3   :  { %v1314_v44 = vpop.f32.mrb[8].mxu0 }
 0xcd4   :  { %4489 = vpow2.f32 %v3640_v42  ;;  %v1318_v45 = vadd.f32 %v1314_v44, %v5171_v24  ;;  %v3961_v48 = vpop.f32.mrb[9].mxu0 }
 0xcd6   :  { %v3639_v49 = vmul.f32 -1.442695, %v1318_v45 }
 0xcd8   :  { %4491 = vpow2.f32 %v3639_v49 }
 0xcd9   :  { %4493 = vtanh.f32 %v1394_v41 }
 0xcde   :  { %v4490_v50 = vpop.eup %4489 }
 0xcdf   :  { %v1426_v51 = vadd.f32 1.0, %v4490_v50 }
 0xce1   :  { %4495 = vrcp.f32 %v1426_v51 }
 0xce2   :  { %v4492_v52 = vpop.eup %4491  ;;  %4497 = vtanh.f32 %v1318_v45 }
 0xce3   :  { %v1398_v53 = vadd.f32 1.0, %v4492_v52  ;;  %v4494_v55 = vpop.eup %4493 }
 0xce5   :  { %4499 = vrcp.f32 %v1398_v53 }
 0xceb   :  { %v4496_v56 = vpop.eup %4495 }
 0xcec   :  { %v1430_v58 = vsel %vm178_vm2, %v4496_v56, %v4494_v55  ;;  %v4498_v59 = vpop.eup %4497 }
 0xced   :  { %1436 = vrot.lane.b32.xlu0 %v1430_v58, %s4871_s5  ;;  %v1434_v36 = vmul.f32 %v1432_v5, %v1430_v58 }
 0xcef   :  { %v4500_v60 = vpop.eup %4499 }
 0xcf0   :  { %v1402_v61 = vsel %vm178_vm2, %v4500_v60, %v4498_v59 }
 0xcf1   :  { %1408 = vrot.lane.b32.xlu1 %v1402_v61, %s4871_s5  ;;  %v1406_v29 = vmul.f32 %v1404_v7, %v1402_v61 }
 0xd5f   :  { %v1437_v62 = vpop.permute.xlu0 %1436 }
 0xd60   :  { %v1439_v63 = vmul.f32 %v1437_v62, %v1430_v58 }
 0xd62   :  { %1441 = vrot.lane.b32.xlu0 %v1439_v63, %s4871_s5 }
 0xd63   :  { %v1409_v2 = vpop.permute.xlu1 %1408 }
 0xd64   :  { %v1411_v3 = vmul.f32 %v1409_v2, %v1402_v61 }
 0xd66   :  { %1413 = vrot.lane.b32.xlu1 %v1411_v3, %s4871_s5 }
 0xdd4   :  { %v1442_v6 = vpop.permute.xlu0 %1441 }
 0xdd5   :  { %v5359_v9 = vadd.f32 %v1442_v6, %v1434_v36 }
 0xdd7   :  { %4501 = vtanh.f32 %v5359_v9 }
 0xdd8   :  { %v1414_v10 = vpop.permute.xlu1 %1413 }
 0xdd9   :  { %v5362_v11 = vadd.f32 %v1414_v10, %v1406_v29 }
 0xddb   :  { %4503 = vtanh.f32 %v5362_v11  ;;  %v1625_v59 = vrot.slane %v5362_v11, 6 }
 0xde1   :  { %v4502_v12 = vpop.eup %4501 }
 0xde2   :  { %1447 = vrot.lane.b32.xlu0 %v4502_v12, %s4871_s5 }
 0xde5   :  { %v4504_v13 = vpop.eup %4503 }
 0xde6   :  { %1419 = vrot.lane.b32.xlu1 %v4504_v13, %s4871_s5 }
 0xe54   :  { %v1448_v14 = vpop.permute.xlu0 %1447 }
 0xe55   :  { %v5367_v16 = vmul.f32 %v1448_v14, %v1430_v58  ;;  %v1653_v58 = vrot.slane %v5359_v9, 2 }
 0xe57   :  { %v1537_v17 = vrot.slane %v5367_v16, 6 }
 0xe58   :  { %v1420_v19 = vpop.permute.xlu1 %1419 }
 0xe59   :  { %v1422_v20 = vmul.f32 %v1420_v19, %v1402_v61  ;;  %1538 = vrot.lane.b32.xlu0 %v1537_v17, %s4872_s6 }
 0xe5b   :  { %1452 = vrot.lane.b32.xlu1 %v1422_v20, %s4872_s6 }
 0xecb   :  { %v1539_v22 = vpop.permute.xlu0 %1538 }
 0xecc   :  { %3993 = vmatmul.mubr.msk.f32.vlgmr.msra.gmra.mrb[14].mxu1 %vm364_vm3, %v1539_v22 }
 0xecd   :  { %v1453_v23 = vpop.permute.xlu1 %1452  ;;  %4292 = vmatpush3.bf16.msra.mxu1 %v5140_v18  ;;  %4014 = vmatprep.mubr.msk.f32.mxu1 %vm4869_vm0, %v4870_v1 }
 0xece   :  { %1455 = vst.msk [vmem:[#allocation2 + $0x8] sm:$0x3] %vm567_vm4, %v1453_v23  ;;  %3982 = vmatmul.mubr.msk.f32.vlgmr.msra.gmra.mrb[10].mxu0 %vm364_vm3, %v1453_v23  ;;  %4293 = vmatprep.subr.bf16.mxu1 %v4868_v0 }
 0xecf   :  { %4286 = vmatpush3.bf16.msra.mxu0 %v5128_v8  ;;  %4003 = vmatprep.mubr.msk.f32.mxu0 %vm4869_vm0, %v4870_v1 }
 0xed0   :  { %4287 = vmatprep.subr.bf16.mxu0 %v4868_v0 }
 0xed1   :  { %4295 = vmatpush3.bf16.msra.mxu1 %v5148_v21 }
 0xed2   :  { %4302 = vmatprep.subr.bf16.mxu1 %v4868_v0 }
 0xed3   :  { %4289 = vmatpush3.bf16.msra.mxu0 %v5135_v15 }
 0xed4   :  { %4296 = vmatprep.subr.bf16.mxu0 %v4868_v0 }
 0xf9f   :  { %v1608_v25 = vpop.f32.mrb[14].mxu1 }
 0xfa0   :  { %v1613_v26 = vrot.slane %v1608_v25, 4  ;;  %v3994_v27 = vpop.f32.mrb[15].mxu1 }
 0xfa1   :  { %v1529_v28 = vpop.f32.mrb[10].mxu0 }
 0xfa2   :  { %v1615_v30 = vadd.f32 %v1613_v26, %v5178_v32  ;;  %v1534_v31 = vrot.slane %v1529_v28, 6  ;;  %v3983_v34 = vpop.f32.mrb[11].mxu0 }
 0xfa4   :  { %v3644_v35 = vmul.f32 -1.442695, %v1615_v30  ;;  %v1536_v37 = vadd.f32 %v1534_v31, %v5171_v24 }
 0xfa6   :  { %4505 = vpow2.f32 %v3644_v35  ;;  %v3643_v38 = vmul.f32 -1.442695, %v1536_v37 }
 0xfa8   :  { %4507 = vpow2.f32 %v3643_v38 }
 0xfa9   :  { %4509 = vtanh.f32 %v1615_v30 }
 0xfb0   :  { %v4506_v39 = vpop.eup %4505 }
 0xfb1   :  { %v1647_v40 = vadd.f32 1.0, %v4506_v39 }
 0xfb2   :  { %v4508_v41 = vpop.eup %4507 }
 0xfb3   :  { %4511 = vrcp.f32 %v1647_v40  ;;  %v1619_v42 = vadd.f32 1.0, %v4508_v41  ;;  %v4510_v44 = vpop.eup %4509 }
 0xfb4   :  { %4513 = vtanh.f32 %v1536_v37 }
 0xfb5   :  { %4515 = vrcp.f32 %v1619_v42 }
 0xfbd   :  { %v4512_v45 = vpop.eup %4511 }
 0xfbe   :  { %v4514_v48 = vpop.eup %4513  ;;  %v1651_v49 = vsel %vm178_vm2, %v4512_v45, %v4510_v44 }
 0xfbf   :  { %v4516_v50 = vpop.eup %4515  ;;  %1657 = vrot.lane.b32.xlu0 %v1651_v49, %s4871_s5  ;;  %v1655_v60 = vmul.f32 %v1653_v58, %v1651_v49 }
 0xfc0   :  { %v1623_v51 = vsel %vm178_vm2, %v4516_v50, %v4514_v48 }
 0xfc1   :  { %1629 = vrot.lane.b32.xlu1 %v1623_v51, %s4871_s5  ;;  %v1627_v63 = vmul.f32 %v1625_v59, %v1623_v51 }
0x1031   :  { %v1658_v52 = vpop.permute.xlu0 %1657 }
0x1032   :  { %v1660_v53 = vmul.f32 %v1658_v52, %v1651_v49 }
0x1033   :  { %v1630_v55 = vpop.permute.xlu1 %1629 }
0x1034   :  { %v1632_v56 = vmul.f32 %v1630_v55, %v1623_v51  ;;  %1662 = vrot.lane.b32.xlu0 %v1660_v53, %s4871_s5 }
0x1036   :  { %1634 = vrot.lane.b32.xlu1 %v1632_v56, %s4871_s5 }
0x10a6   :  { %v1663_v61 = vpop.permute.xlu0 %1662 }
0x10a7   :  { %v5399_v62 = vadd.f32 %v1663_v61, %v1655_v60 }
0x10a8   :  { %v1635_v2 = vpop.permute.xlu1 %1634 }
0x10a9   :  { %4517 = vtanh.f32 %v5399_v62  ;;  %v5402_v3 = vadd.f32 %v1635_v2, %v1627_v63  ;;  %v1877_v44 = vrot.slane %v5399_v62, 2 }
0x10ab   :  { %4519 = vtanh.f32 %v5402_v3  ;;  %v1849_v45 = vrot.slane %v5402_v3, 6 }
0x10b3   :  { %v4518_v5 = vpop.eup %4517 }
0x10b4   :  { %1668 = vrot.lane.b32.xlu0 %v4518_v5, %s4871_s5 }
0x10b5   :  { %v4520_v36 = vpop.eup %4519 }
0x10b6   :  { %1640 = vrot.lane.b32.xlu1 %v4520_v36, %s4871_s5 }
0x1126   :  { %v1669_v6 = vpop.permute.xlu0 %1668 }
0x1127   :  { %v5407_v7 = vmul.f32 %v1669_v6, %v1651_v49 }
0x1128   :  { %v1641_v9 = vpop.permute.xlu1 %1640 }
0x1129   :  { %v1761_v29 = vrot.slane %v5407_v7, 4  ;;  %v5410_v10 = vmul.f32 %v1641_v9, %v1623_v51 }
0x112b   :  { %v1682_v11 = vrot.slane %v5410_v10, 2  ;;  %1762 = vrot.lane.b32.xlu0 %v1761_v29, %s4872_s6 }
0x112d   :  { %1683 = vrot.lane.b32.xlu1 %v1682_v11, %s4872_s6 }
0x119d   :  { %v1763_v12 = vpop.permute.xlu0 %1762 }
0x119e   :  { %4015 = vmatmul.mubr.msk.f32.vlgmr.msra.gmra.mrb[16].mxu1 %vm364_vm3, %v1763_v12 }
0x119f   :  { %v1684_v13 = vpop.permute.xlu1 %1683  ;;  %4304 = vmatpush3.bf16.msra.mxu1 %v5140_v18  ;;  %4036 = vmatprep.mubr.msk.f32.mxu1 %vm4869_vm0, %v4870_v1 }
0x11a0   :  { %4004 = vmatmul.mubr.msk.f32.vlgmr.msra.gmra.mrb[12].mxu0 %vm364_vm3, %v1684_v13  ;;  %4305 = vmatprep.subr.bf16.mxu1 %v4868_v0 }
0x11a1   :  { %4298 = vmatpush3.bf16.msra.mxu0 %v5128_v8  ;;  %4025 = vmatprep.mubr.msk.f32.mxu0 %vm4869_vm0, %v4870_v1 }
0x11a2   :  { %4299 = vmatprep.subr.bf16.mxu0 %v4868_v0 }
0x11a3   :  { %4307 = vmatpush3.bf16.msra.mxu1 %v5148_v21 }
0x11a5   :  { %4301 = vmatpush3.bf16.msra.mxu0 %v5135_v15 }
0x1271   :  { %v1832_v14 = vpop.f32.mrb[16].mxu1 }
0x1272   :  { %v1837_v18 = vrot.slane %v1832_v14, 6  ;;  %v4016_v17 = vpop.f32.mrb[17].mxu1 }
0x1273   :  { %v1753_v19 = vpop.f32.mrb[12].mxu0 }
0x1274   :  { %v1839_v20 = vadd.f32 %v1837_v18, %v5178_v32  ;;  %v1758_v22 = vrot.slane %v1753_v19, 4  ;;  %v4005_v23 = vpop.f32.mrb[13].mxu0 }
0x1276   :  { %v3648_v25 = vmul.f32 -1.442695, %v1839_v20  ;;  %v1760_v8 = vadd.f32 %v1758_v22, %v5171_v24 }
0x1278   :  { %4521 = vpow2.f32 %v3648_v25  ;;  %v3647_v26 = vmul.f32 -1.442695, %v1760_v8 }
0x127a   :  { %4523 = vpow2.f32 %v3647_v26 }
0x127b   :  { %4525 = vtanh.f32 %v1839_v20 }
0x1282   :  { %v4522_v27 = vpop.eup %4521 }
0x1283   :  { %v1871_v28 = vadd.f32 1.0, %v4522_v27 }
0x1284   :  { %v4524_v30 = vpop.eup %4523 }
0x1285   :  { %4527 = vrcp.f32 %v1871_v28  ;;  %v1843_v15 = vadd.f32 1.0, %v4524_v30  ;;  %v4526_v21 = vpop.eup %4525 }
0x1286   :  { %4529 = vtanh.f32 %v1760_v8 }
0x1287   :  { %4531 = vrcp.f32 %v1843_v15 }
0x128f   :  { %v4528_v31 = vpop.eup %4527 }
0x1290   :  { %v4530_v34 = vpop.eup %4529  ;;  %v1875_v35 = vsel %vm178_vm2, %v4528_v31, %v4526_v21 }
0x1291   :  { %v4532_v37 = vpop.eup %4531  ;;  %1881 = vrot.lane.b32.xlu0 %v1875_v35, %s4871_s5  ;;  %v1879_v48 = vmul.f32 %v1877_v44, %v1875_v35 }
0x1292   :  { %v1847_v38 = vsel %vm178_vm2, %v4532_v37, %v4530_v34 }
0x1293   :  { %1853 = vrot.lane.b32.xlu1 %v1847_v38, %s4871_s5  ;;  %v1851_v51 = vmul.f32 %v1849_v45, %v1847_v38 }
0x1303   :  { %v1882_v39 = vpop.permute.xlu0 %1881 }
0x1304   :  { %v1884_v40 = vmul.f32 %v1882_v39, %v1875_v35 }
0x1305   :  { %v1854_v41 = vpop.permute.xlu1 %1853 }
0x1306   :  { %v1856_v42 = vmul.f32 %v1854_v41, %v1847_v38  ;;  %1886 = vrot.lane.b32.xlu0 %v1884_v40, %s4871_s5 }
0x1308   :  { %1858 = vrot.lane.b32.xlu1 %v1856_v42, %s4871_s5  ;;  %v2136_v42 = vld [vmem:[#allocation14 + $0x28] sm:$0xff] }
0x1378   :  { %v1887_v49 = vpop.permute.xlu0 %1886 }
0x1379   :  { %v1889_v50 = vadd.f32 %v1887_v49, %v1879_v48  ;;  %v2146_v48 = vld [vmem:[%s5708_s8 + $0x38] sm:$0xff] }
0x137a   :  { %v1859_v52 = vpop.permute.xlu1 %1858 }
0x137b   :  { %4533 = vtanh.f32 %v1889_v50  ;;  %v1861_v53 = vadd.f32 %v1859_v52, %v1851_v51  ;;  %v2098_v15 = vrot.slane %v1889_v50, 2  ;;  %v2131_v50 = vld [vmem:[#allocation14] sm:$0xff]  ;;  %v2132_v51 = vld [vmem:[#allocation14 + $0x8] sm:$0xff] }
0x137c   :  { %v2139_v52 = vld [vmem:[%s5708_s8] sm:$0xff] }
0x137d   :  { %4535 = vtanh.f32 %v1861_v53  ;;  %v2070_v34 = vrot.slane %v1861_v53, 6 }
0x1385   :  { %v4534_v55 = vpop.eup %4533 }
0x1386   :  { %1892 = vrot.lane.b32.xlu0 %v4534_v55, %s4871_s5  ;;  %v4316_v55 = vpack.c.bf16 %v2132_v51, %v2131_v50 }
0x1387   :  { %v4536_v56 = vpop.eup %4535 }
0x1388   :  { %1864 = vrot.lane.b32.xlu1 %v4536_v56, %s4871_s5  ;;  %v2140_v56 = vld [vmem:[%s5708_s8 + $0x8] sm:$0xff] }
0x13f8   :  { %v1893_v58 = vpop.permute.xlu0 %1892 }
0x13f9   :  { %v1895_v59 = vmul.f32 %v1893_v58, %v1875_v35 }
0x13fa   :  { %v1865_v60 = vpop.permute.xlu1 %1864 }
0x13fb   :  { %v1985_v61 = vrot.slane %v1895_v59, 2  ;;  %v5441_v62 = vmul.f32 %v1865_v60, %v1847_v38 }
0x13fd   :  { %v1906_v63 = vrot.slane %v5441_v62, 4  ;;  %1986 = vrot.lane.b32.xlu0 %v1985_v61, %s4872_s6 }
0x13ff   :  { %1907 = vrot.lane.b32.xlu1 %v1906_v63, %s4872_s6 }
0x146f   :  { %v1987_v2 = vpop.permute.xlu0 %1986 }
0x1470   :  { %4037 = vmatmul.mubr.msk.f32.vlgmr.msra.gmra.mrb[18].mxu1 %vm364_vm3, %v1987_v2 }
0x1471   :  { %v1908_v3 = vpop.permute.xlu1 %1907 }
0x1472   :  { %4026 = vmatmul.mubr.msk.f32.vlgmr.msra.gmra.mrb[14].mxu0 %vm364_vm3, %v1908_v3 }
0x1543   :  { %v2056_v5 = vpop.f32.mrb[18].mxu1 }
0x1544   :  { %v2060_v36 = vadd.f32 %v2056_v5, %v5178_v32  ;;  %v4038_v6 = vpop.f32.mrb[19].mxu1 }
0x1545   :  { %v1977_v9 = vpop.f32.mrb[14].mxu0 }
0x1546   :  { %v3652_v29 = vmul.f32 -1.442695, %v2060_v36  ;;  %v1982_v11 = vrot.slane %v1977_v9, 2  ;;  %v4027_v12 = vpop.f32.mrb[15].mxu0 }
0x1547   :  { %v2133_v12 = vld [vmem:[#allocation14 + $0x10] sm:$0xff] }
0x1548   :  { %4537 = vpow2.f32 %v3652_v29  ;;  %v1984_v13 = vadd.f32 %v1982_v11, %v5171_v24 }
0x154a   :  { %v3651_v14 = vmul.f32 -1.442695, %v1984_v13 }
0x154c   :  { %4539 = vpow2.f32 %v3651_v14  ;;  %v2142_v14 = vld [vmem:[%s5708_s8 + $0x18] sm:$0xff] }
0x154d   :  { %4541 = vtanh.f32 %v2060_v36 }
0x1552   :  { %v4538_v18 = vpop.eup %4537 }
0x1553   :  { %v2092_v17 = vadd.f32 1.0, %v4538_v18 }
0x1555   :  { %4543 = vrcp.f32 %v2092_v17 }
0x1556   :  { %v4540_v19 = vpop.eup %4539  ;;  %4545 = vtanh.f32 %v1984_v13  ;;  %v2141_v13 = vld [vmem:[%s5708_s8 + $0x10] sm:$0xff] }
0x1557   :  { %v2064_v20 = vadd.f32 1.0, %v4540_v19  ;;  %v4542_v22 = vpop.eup %4541 }
0x1559   :  { %4547 = vrcp.f32 %v2064_v20  ;;  %v4336_v20 = vpack.c.bf16 %v2142_v14, %v2141_v13 }
0x155f   :  { %v4544_v32 = vpop.eup %4543 }
0x1560   :  { %v2096_v23 = vsel %vm178_vm2, %v4544_v32, %v4542_v22  ;;  %v4546_v25 = vpop.eup %4545 }
0x1561   :  { %2102 = vrot.lane.b32.xlu0 %v2096_v23, %s4871_s5  ;;  %v2100_v21 = vmul.f32 %v2098_v15, %v2096_v23  ;;  %v2477_v15 = vld [vmem:[#allocation15 + $0x18] sm:$0xff] }
0x1563   :  { %v4548_v8 = vpop.eup %4547 }
0x1564   :  { %v5455_v24 = vsel %vm178_vm2, %v4548_v8, %v4546_v25  ;;  %v2475_v25 = vld [vmem:[#allocation15 + $0x8] sm:$0xff]  ;;  %v2478_v8 = vld [vmem:[#allocation17] sm:$0xff] }
0x1565   :  { %2074 = vrot.lane.b32.xlu1 %v5455_v24, %s4871_s5  ;;  %v2072_v37 = vmul.f32 %v2070_v34, %v5455_v24 }
0x15d3   :  { %v2103_v26 = vpop.permute.xlu0 %2102 }
0x15d4   :  { %v2105_v27 = vmul.f32 %v2103_v26, %v2096_v23 }
0x15d6   :  { %2107 = vrot.lane.b32.xlu0 %v2105_v27, %s4871_s5 }
0x15d7   :  { %v2075_v28 = vpop.permute.xlu1 %2074 }
0x15d8   :  { %v2077_v30 = vmul.f32 %v2075_v28, %v5455_v24 }
0x15da   :  { %2079 = vrot.lane.b32.xlu1 %v2077_v30, %s4871_s5  ;;  %v2476_v30 = vld [vmem:[#allocation15 + $0x10] sm:$0xff] }
0x1648   :  { %v2108_v31 = vpop.permute.xlu0 %2107 }
0x1649   :  { %v2110_v35 = vadd.f32 %v2108_v31, %v2100_v21  ;;  %v2480_v21 = vld [vmem:[#allocation17 + $0x10] sm:$0xff]  ;;  %v2481_v31 = vld [vmem:[#allocation17 + $0x18] sm:$0xff] }
0x164b   :  { %4549 = vtanh.f32 %v2110_v35  ;;  %v5539_v35 = vpack.c.bf16 %v2477_v15, %v2476_v30 }
0x164c   :  { %v2080_v38 = vpop.permute.xlu1 %2079 }
0x164d   :  { %v2082_v39 = vadd.f32 %v2080_v38, %v2072_v37  ;;  %v4350_v37 = vpack.c.bf16 %v2481_v31, %v2480_v21 }
0x164f   :  { %4551 = vtanh.f32 %v2082_v39 }
0x1655   :  { %v4550_v40 = vpop.eup %4549 }
0x1656   :  { %2113 = vrot.lane.b32.xlu0 %v4550_v40, %s4871_s5  ;;  %v3657_v40 = vld [vmem:[%s5711_s11] ss:$0 sm:$0xff] }
0x1659   :  { %v4552_v41 = vpop.eup %4551 }
0x165a   :  { %1457 = vrot.lane.b32.xlu0 %v5367_v16, %s4872_s6  ;;  %2085 = vrot.lane.b32.xlu1 %v4552_v41, %s4871_s5  ;;  %v2135_v16 = vld [vmem:[#allocation14 + $0x20] sm:$0xff] }
0x165b   :  { %v4308_v44 = vpack.c.bf16 %v2136_v42, %v2135_v16 }
0x165d   :  { %4309 = vmatprep.subr.bf16.mxu0 %v4308_v44 }
0x165e   :  { %1902 = vrot.lane.b32.xlu0 %v1895_v59, %s4872_s6  ;;  %1678 = vrot.lane.b32.xlu1 %v5407_v7, %s4872_s6  ;;  %v2143_v7 = vld [vmem:[%s5708_s8 + $0x20] sm:$0xff]  ;;  %v4332_v59 = vpack.c.bf16 %v2140_v56, %v2139_v52 }
0x165f   :  { %4311 = vmatpush3.bf16.msra.mxu0 %v4308_v44 }
0x1662   :  { %570 = vrot.lane.b32.xlu0 %v5203_v4, %s4872_s6  ;;  %793 = vrot.lane.b32.xlu1 %v5243_v54, %s4872_s6  ;;  %v2144_v4 = vld [vmem:[%s5708_s8 + $0x28] sm:$0xff] }
0x1663   :  { %v4324_v54 = vpack.c.bf16 %v2144_v4, %v2143_v7 }
0x1665   :  { %4325 = vmatprep.subr.bf16.mxu1 %v4324_v54 }
0x1666   :  { %1018 = vrot.lane.b32.xlu0 %v5285_v43, %s4872_s6  ;;  %v2137_v43 = vld [vmem:[#allocation14 + $0x30] sm:$0xff]  ;;  %4327 = vmatpush3.bf16.msra.mxu1 %v4324_v54  ;;  %v3662_v54 = vld [vmem:[%s5712_s12] ss:$0 sm:$0xff] }
0x166a   :  { %1013 = vrot.lane.b32.xlu0 %v5288_v47, %s4872_s6  ;;  %v2138_v47 = vld [vmem:[#allocation14 + $0x38] sm:$0xff] }
0x166b   :  { %v4312_v45 = vpack.c.bf16 %v2138_v47, %v2137_v43 }
0x166d   :  { %4313 = vmatprep.subr.bf16.mxu0 %v4312_v45 }
0x166e   :  { %1673 = vrot.lane.b32.xlu0 %v5410_v10, %s4872_s6  ;;  %v2145_v10 = vld [vmem:[%s5708_s8 + $0x30] sm:$0xff]  ;;  %4315 = vmatpush3.bf16.msra.mxu0 %v4312_v45 }
0x166f   :  { %v4328_v49 = vpack.c.bf16 %v2146_v48, %v2145_v10  ;;  %4317 = vmatprep.subr.bf16.mxu0 %v4316_v55 }
0x1671   :  { %4329 = vmatprep.subr.bf16.mxu1 %v4328_v49 }
0x1672   :  { %4331 = vmatpush3.bf16.msra.mxu1 %v4328_v49 }
0x1673   :  { %4333 = vmatprep.subr.bf16.mxu1 %v4332_v59 }
0x16c8   :  { %v2114_v53 = vpop.permute.xlu0 %2113 }
0x16c9   :  { %v2116_v58 = vmul.f32 %v2114_v53, %v2096_v23  ;;  %v2474_v23 = vld [vmem:[#allocation15] sm:$0xff] }
0x16ca   :  { %v5534_v27 = vpack.c.bf16 %v2475_v25, %v2474_v23 }
0x16cb   :  { %2123 = vrot.lane.b32.xlu1 %v2116_v58, %s4872_s6 }
0x16cc   :  { %v1458_v60 = vpop.permute.xlu0 %1457  ;;  %v2086_v61 = vpop.permute.xlu1 %2085 }
0x16cd   :  { %1460 = vst.msk [vmem:[#allocation3] sm:$0xc0] %vm573_vm5, %v1458_v60  ;;  %v2088_v63 = vmul.f32 %v2086_v61, %v5455_v24  ;;  %v2479_v24 = vld [vmem:[#allocation17 + $0x8] sm:$0xff] }
0x16ce   :  { %v4347_v28 = vpack.c.bf16 %v2479_v24, %v2478_v8 }
0x16cf   :  { %787 = vrot.lane.b32.xlu1 %v5246_v57, %s4872_s6  ;;  %2118 = vrot.lane.b32.xlu0 %v2088_v63, %s4872_s6 }
0x16d0   :  { %v1903_v2 = vpop.permute.xlu0 %1902  ;;  %v1679_v3 = vpop.permute.xlu1 %1678 }
0x16d1   :  { %1905 = vst.msk [vmem:[#allocation3] sm:$0xc] %vm790_vm6, %v1903_v2 }
0x16d2   :  { %1681 = vst.msk [vmem:[#allocation3] sm:$0x30] %vm796_vm7, %v1679_v3 }
0x16d3   :  { %1234 = vrot.lane.b32.xlu1 %v5328_v33, %s4872_s6 }
0x16d4   :  { %v571_v5 = vpop.permute.xlu0 %570  ;;  %v794_v36 = vpop.permute.xlu1 %793 }
0x16d5   :  { %574 = vst.msk [vmem:[#allocation3 + $0x8] sm:$0xc0] %vm573_vm5, %v571_v5 }
0x16d6   :  { %797 = vst.msk [vmem:[#allocation3 + $0x8] sm:$0x30] %vm796_vm7, %v794_v36 }
0x16d7   :  { %1897 = vrot.lane.b32.xlu1 %v5441_v62, %s4872_s6  ;;  %v2134_v62 = vld [vmem:[#allocation14 + $0x18] sm:$0xff] }
0x16d8   :  { %v1019_v57 = vpop.permute.xlu0 %1018  ;;  %v4320_v19 = vpack.c.bf16 %v2134_v62, %v2133_v12 }
0x16d9   :  { %1021 = vst.msk [vmem:[#allocation3 + $0x8] sm:$0xc] %vm790_vm6, %v1019_v57 }
0x16dc   :  { %v1014_v6 = vpop.permute.xlu0 %1013 }
0x16dd   :  { %1016 = vst.msk [vmem:[#allocation2] sm:$0x30] %vm796_vm7, %v1014_v6 }
0x16e0   :  { %v1674_v9 = vpop.permute.xlu0 %1673  ;;  %v2130_v22 = vld [vmem:[#allocation3 + $0x8] sm:$0xff] }
0x16e1   :  { %1676 = vst.msk [vmem:[#allocation2 + $0x8] sm:$0xc] %vm790_vm6, %v1674_v9 }
0x173d   :  { %v2124_v29 = vpop.permute.xlu1 %2123 }
0x173e   :  { %2126 = vst.msk [vmem:[#allocation3] sm:$0x3] %vm567_vm4, %v2124_v29 }
0x1741   :  { %v2119_v33 = vpop.permute.xlu0 %2118  ;;  %v788_v11 = vpop.permute.xlu1 %787 }
0x1742   :  { %2121 = vst.msk [vmem:[#allocation2 + $0x8] sm:$0xc0] %vm573_vm5, %v2119_v33 }
0x1743   :  { %791 = vst.msk [vmem:[#allocation2] sm:$0xc] %vm790_vm6, %v788_v11 }
0x1745   :  { %v1235_v18 = vpop.permute.xlu1 %1234  ;;  %v2129_v17 = vld [vmem:[#allocation3] sm:$0xff] }
0x1746   :  { %1237 = vst.msk [vmem:[#allocation2] sm:$0xc0] %vm573_vm5, %v1235_v18  ;;  %4047 = vmatprep.mubr.msk.f32.mxu0 %vm364_vm3, %v2129_v17  ;;  %4069 = vmatprep.mubr.msk.f32.mxu1 %vm364_vm3, %v2129_v17 }
0x1747   :  { %4048 = vmatmul.mubr.msk.f32.vlgmr.msra.gmra.mrb[16].mxu0 %vm364_vm3, %v2130_v22  ;;  %4070 = vmatmul.mubr.msk.f32.vlgmr.msra.gmra.mrb[20].mxu1 %vm364_vm3, %v2130_v22 }
0x1748   :  { %4319 = vmatpush3.bf16.msra.mxu0 %v4316_v55  ;;  %4335 = vmatpush3.bf16.msra.mxu1 %v4332_v59 }
0x1749   :  { %v1898_v32 = vpop.permute.xlu1 %1897  ;;  %4321 = vmatprep.subr.bf16.mxu0 %v4320_v19  ;;  %4337 = vmatprep.subr.bf16.mxu1 %v4336_v20 }
0x174a   :  { %1900 = vst.msk [vmem:[#allocation2 + $0x8] sm:$0x30] %vm796_vm7, %v1898_v32 }
0x174c   :  { %4323 = vmatpush3.bf16.msra.mxu0 %v4320_v19  ;;  %4339 = vmatpush3.bf16.msra.mxu1 %v4336_v20 }
0x174d   :  { %v2127_v26 = vld [vmem:[#allocation2] sm:$0xff]  ;;  %4340 = vmatprep.subr.bf16.mxu0 %v4868_v0  ;;  %4346 = vmatprep.subr.bf16.mxu1 %v4868_v0 }
0x174e   :  { %4058 = vmatprep.mubr.msk.f32.mxu0 %vm364_vm3, %v2127_v26  ;;  %4080 = vmatprep.mubr.msk.f32.mxu1 %vm364_vm3, %v2127_v26 }
0x1751   :  { %v2128_v34 = vld [vmem:[#allocation2 + $0x8] sm:$0xff] }
0x1752   :  { %4059 = vmatmul.mubr.msk.f32.vlgmr.msra.gmra.mrb[16].mxu0 %vm364_vm3, %v2128_v34  ;;  %4081 = vmatmul.mubr.msk.f32.vlgmr.msra.gmra.mrb[22].mxu1 %vm364_vm3, %v2128_v34 }
0x1753   :  { %4342 = vmatpush3.bf16.msra.mxu0 %v5534_v27  ;;  %4348 = vmatpush3.bf16.msra.mxu1 %v4347_v28 }
0x1754   :  { %4343 = vmatprep.subr.bf16.mxu0 %v4868_v0  ;;  %4349 = vmatprep.subr.bf16.mxu1 %v4868_v0 }
0x1755   :  { %4091 = vmatprep.mubr.msk.f32.mxu0 %vm4869_vm0, %v4870_v1  ;;  %4102 = vmatprep.mubr.msk.f32.mxu1 %vm4869_vm0, %v4870_v1 }
0x1757   :  { %4345 = vmatpush3.bf16.msra.mxu0 %v5539_v35  ;;  %4351 = vmatpush3.bf16.msra.mxu1 %v4350_v37 }
0x1758   :  { %4352 = vmatprep.subr.bf16.mxu0 %v4868_v0  ;;  %4358 = vmatprep.subr.bf16.mxu1 %v4868_v0 }
0x175a   :  { %4092 = vmatmul.mubr.f32.vlgmr.msra.gmra.mrb[18].mxu0 %v4870_v1  ;;  %4103 = vmatmul.mubr.f32.vlgmr.msra.gmra.mrb[24].mxu1 %v4870_v1 }
0x175b   :  { %4354 = vmatpush3.bf16.msra.mxu0 %v5534_v27  ;;  %4113 = vmatprep.mubr.msk.f32.mxu0 %vm4869_vm0, %v4870_v1 }
0x175c   :  { %4355 = vmatprep.subr.bf16.mxu0 %v4868_v0  ;;  %4360 = vmatpush3.bf16.msra.mxu1 %v5534_v27 }
0x175d   :  { %4361 = vmatprep.subr.bf16.mxu1 %v4868_v0  ;;  %4124 = vmatprep.mubr.msk.f32.mxu1 %vm4869_vm0, %v4870_v1 }
0x175f   :  { %4357 = vmatpush3.bf16.msra.mxu0 %v5539_v35 }
0x1760   :  { %4363 = vmatpush3.bf16.msra.mxu1 %v5539_v35  ;;  %4364 = vmatprep.subr.bf16.mxu0 %v4868_v0 }
0x1761   :  { %4370 = vmatprep.subr.bf16.mxu1 %v4868_v0 }
0x181a   :  { %v4071_v38 = vpop.f32.mrb[20].mxu1 }
0x181b   :  { %v2384_v39 = vpop.f32.mrb[21].mxu1 }
0x1825   :  { %v4060_v41 = vpop.f32.mrb[16].mxu0  ;;  %v4082_v16 = vpop.f32.mrb[22].mxu1 }
0x1826   :  { %v5567_v42 = vadd.f32 %v4060_v41, %v3657_v40  ;;  %v2463_v7 = vadd.f32 %v4082_v16, %v4071_v38  ;;  %v2300_v44 = vpop.f32.mrb[17].mxu0  ;;  %v2458_v4 = vpop.f32.mrb[23].mxu1 }
0x1827   :  { %v5572_v43 = vadd.f32 %v3657_v40, %v2300_v44 }
0x1828   :  { %v2473_v45 = vadd.f32 %v3662_v54, %v2463_v7 }
0x182d   :  { %v2548_v47 = vpop.f32.mrb[18].mxu0  ;;  %v2619_v10 = vpop.f32.mrb[24].mxu1 }
0x182e   :  { %v2552_v48 = vadd.f32 %v2548_v47, %v5572_v43  ;;  %v2624_v49 = vrot.slane %v2619_v10, 2  ;;  %v4093_v50 = vpop.f32.mrb[19].mxu0  ;;  %v4104_v51 = vpop.f32.mrb[25].mxu1 }
0x1830   :  { %v3663_v52 = vmul.f32 -1.442695, %v2552_v48  ;;  %v5575_v53 = vadd.f32 %v2624_v49, %v2473_v45 }
0x1832   :  { %4553 = vpow2.f32 %v3663_v52 }
0x1833   :  { %4555 = vtanh.f32 %v2552_v48 }
0x183c   :  { %v4554_v55 = vpop.eup %4553 }
0x183d   :  { %v2630_v56 = vadd.f32 1.0, %v4554_v55  ;;  %v4556_v58 = vpop.eup %4555 }
0x183f   :  { %4557 = vrcp.f32 %v2630_v56 }
0x1849   :  { %v4558_v59 = vpop.eup %4557 }
0x184a   :  { %v2634_v60 = vsel %vm178_vm2, %v4558_v59, %v4556_v58 }
0x184b   :  { %2637 = vrot.lane.b32.xlu1 %v2634_v60, %s4871_s5  ;;  %v2635_v2 = vmul.f32 0.0, %v2634_v60 }
0x18bd   :  { %v2638_v61 = vpop.permute.xlu1 %2637 }
0x18be   :  { %v2640_v63 = vmul.f32 %v2638_v61, %v2634_v60 }
0x18c0   :  { %2642 = vrot.lane.b32.xlu0 %v2640_v63, %s4871_s5 }
0x1932   :  { %v2643_v3 = vpop.permute.xlu0 %2642 }
0x1933   :  { %v2645_v5 = vadd.f32 %v2643_v3, %v2635_v2 }
0x1935   :  { %4559 = vtanh.f32 %v2645_v5  ;;  %v2765_v32 = vrot.slane %v2645_v5, 6 }
0x193f   :  { %v4560_v36 = vpop.eup %4559 }
0x1940   :  { %2648 = vrot.lane.b32.xlu1 %v4560_v36, %s4871_s5 }
0x19b2   :  { %v2649_v57 = vpop.permute.xlu1 %2648 }
0x19b3   :  { %v2651_v6 = vmul.f32 %v2649_v57, %v2634_v60 }
0x19b5   :  { %2678 = vrot.lane.b32.xlu0 %v2651_v6, %s4872_s6 }
0x1a27   :  { %v2679_v9 = vpop.permute.xlu0 %2678 }
0x1a28   :  { %4114 = vmatmul.mubr.msk.f32.vlgmr.msra.gmra.mrb[20].mxu0 %vm364_vm3, %v2679_v9 }
0x1a29   :  { %4366 = vmatpush3.bf16.msra.mxu0 %v5534_v27  ;;  %4135 = vmatprep.mubr.msk.f32.mxu0 %vm4869_vm0, %v4870_v1 }
0x1a2a   :  { %4367 = vmatprep.subr.bf16.mxu0 %v4868_v0 }
0x1a2d   :  { %4369 = vmatpush3.bf16.msra.mxu0 %v5539_v35 }
0x1a2e   :  { %4376 = vmatprep.subr.bf16.mxu0 %v4868_v0 }
0x1afb   :  { %v2748_v29 = vpop.f32.mrb[20].mxu0 }
0x1afc   :  { %v2753_v33 = vrot.slane %v2748_v29, 6  ;;  %v4115_v11 = vpop.f32.mrb[21].mxu0 }
0x1afe   :  { %v2755_v12 = vadd.f32 %v2753_v33, %v5572_v43 }
0x1b00   :  { %v3666_v62 = vmul.f32 -1.442695, %v2755_v12 }
0x1b02   :  { %4561 = vpow2.f32 %v3666_v62 }
0x1b03   :  { %4563 = vtanh.f32 %v2755_v12 }
0x1b0c   :  { %v4562_v13 = vpop.eup %4561 }
0x1b0d   :  { %v2759_v14 = vadd.f32 1.0, %v4562_v13  ;;  %v4564_v18 = vpop.eup %4563 }
0x1b0f   :  { %4565 = vrcp.f32 %v2759_v14 }
0x1b19   :  { %v4566_v17 = vpop.eup %4565 }
0x1b1a   :  { %v2763_v19 = vsel %vm178_vm2, %v4566_v17, %v4564_v18 }
0x1b1b   :  { %2769 = vrot.lane.b32.xlu1 %v2763_v19, %s4871_s5  ;;  %v2767_v23 = vmul.f32 %v2765_v32, %v2763_v19 }
0x1b8d   :  { %v2770_v20 = vpop.permute.xlu1 %2769 }
0x1b8e   :  { %v2772_v22 = vmul.f32 %v2770_v20, %v2763_v19 }
0x1b90   :  { %2774 = vrot.lane.b32.xlu0 %v2772_v22, %s4871_s5 }
0x1c02   :  { %v2775_v25 = vpop.permute.xlu0 %2774 }
0x1c03   :  { %v2777_v8 = vadd.f32 %v2775_v25, %v2767_v23 }
0x1c05   :  { %4567 = vtanh.f32 %v2777_v8  ;;  %v2873_v54 = vrot.slane %v2777_v8, 6 }
0x1c0f   :  { %v4568_v24 = vpop.eup %4567 }
0x1c10   :  { %2780 = vrot.lane.b32.xlu1 %v4568_v24, %s4871_s5 }
0x1c82   :  { %v2781_v26 = vpop.permute.xlu1 %2780 }
0x1c83   :  { %v2783_v28 = vmul.f32 %v2781_v26, %v2763_v19 }
0x1c85   :  { %v2785_v30 = vrot.slane %v2783_v28, 2 }
0x1c87   :  { %2786 = vrot.lane.b32.xlu0 %v2785_v30, %s4872_s6 }
0x1cf9   :  { %v2787_v15 = vpop.permute.xlu0 %2786 }
0x1cfa   :  { %4125 = vmatmul.mubr.msk.f32.vlgmr.msra.gmra.mrb[26].mxu1 %vm364_vm3, %v2787_v15 }
0x1cfb   :  { %4372 = vmatpush3.bf16.msra.mxu1 %v5534_v27  ;;  %4146 = vmatprep.mubr.msk.f32.mxu1 %vm4869_vm0, %v4870_v1 }
0x1cfc   :  { %4373 = vmatprep.subr.bf16.mxu1 %v4868_v0 }
0x1cff   :  { %4375 = vmatpush3.bf16.msra.mxu1 %v5539_v35 }
0x1d00   :  { %4382 = vmatprep.subr.bf16.mxu1 %v4868_v0 }
0x1dcd   :  { %v2856_v21 = vpop.f32.mrb[26].mxu1 }
0x1dce   :  { %v2861_v31 = vrot.slane %v2856_v21, 4  ;;  %v4126_v34 = vpop.f32.mrb[27].mxu1 }
0x1dd0   :  { %v2863_v37 = vadd.f32 %v2861_v31, %v5572_v43 }
0x1dd2   :  { %v3668_v38 = vmul.f32 -1.442695, %v2863_v37 }
0x1dd4   :  { %4569 = vpow2.f32 %v3668_v38 }
0x1dd5   :  { %4571 = vtanh.f32 %v2863_v37 }
0x1dde   :  { %v4570_v39 = vpop.eup %4569 }
0x1ddf   :  { %v2867_v40 = vadd.f32 1.0, %v4570_v39  ;;  %v4572_v41 = vpop.eup %4571 }
0x1de1   :  { %4573 = vrcp.f32 %v2867_v40 }
0x1deb   :  { %v4574_v16 = vpop.eup %4573 }
0x1dec   :  { %v2871_v7 = vsel %vm178_vm2, %v4574_v16, %v4572_v41 }
0x1ded   :  { %2877 = vrot.lane.b32.xlu1 %v2871_v7, %s4871_s5  ;;  %v2875_v47 = vmul.f32 %v2873_v54, %v2871_v7 }
0x1e5f   :  { %v2878_v44 = vpop.permute.xlu1 %2877 }
0x1e60   :  { %v2880_v4 = vmul.f32 %v2878_v44, %v2871_v7 }
0x1e62   :  { %2882 = vrot.lane.b32.xlu0 %v2880_v4, %s4871_s5 }
0x1ed4   :  { %v2883_v10 = vpop.permute.xlu0 %2882 }
0x1ed5   :  { %v2885_v45 = vadd.f32 %v2883_v10, %v2875_v47 }
0x1ed7   :  { %4575 = vtanh.f32 %v2885_v45  ;;  %v2981_v6 = vrot.slane %v2885_v45, 6 }
0x1ee1   :  { %v4576_v48 = vpop.eup %4575 }
0x1ee2   :  { %2888 = vrot.lane.b32.xlu1 %v4576_v48, %s4871_s5 }
0x1f54   :  { %v2889_v49 = vpop.permute.xlu1 %2888 }
0x1f55   :  { %v2891_v50 = vmul.f32 %v2889_v49, %v2871_v7 }
0x1f57   :  { %v2893_v51 = vrot.slane %v2891_v50, 4 }
0x1f59   :  { %2894 = vrot.lane.b32.xlu0 %v2893_v51, %s4872_s6 }
0x1fcb   :  { %v2895_v52 = vpop.permute.xlu0 %2894 }
0x1fcc   :  { %4136 = vmatmul.mubr.msk.f32.vlgmr.msra.gmra.mrb[22].mxu0 %vm364_vm3, %v2895_v52 }
0x1fcd   :  { %4378 = vmatpush3.bf16.msra.mxu0 %v5534_v27  ;;  %4157 = vmatprep.mubr.msk.f32.mxu0 %vm4869_vm0, %v4870_v1 }
0x1fce   :  { %4379 = vmatprep.subr.bf16.mxu0 %v4868_v0 }
0x1fd1   :  { %4381 = vmatpush3.bf16.msra.mxu0 %v5539_v35 }
0x1fd2   :  { %4388 = vmatprep.subr.bf16.mxu0 %v4868_v0 }
0x209f   :  { %v2964_v55 = vpop.f32.mrb[22].mxu0 }
0x20a0   :  { %v2969_v56 = vrot.slane %v2964_v55, 2  ;;  %v4137_v58 = vpop.f32.mrb[23].mxu0 }
0x20a2   :  { %v2971_v59 = vadd.f32 %v2969_v56, %v5572_v43 }
0x20a4   :  { %v3670_v60 = vmul.f32 -1.442695, %v2971_v59 }
0x20a6   :  { %4577 = vpow2.f32 %v3670_v60 }
0x20a7   :  { %4579 = vtanh.f32 %v2971_v59 }
0x20b0   :  { %v4578_v61 = vpop.eup %4577 }
0x20b1   :  { %v2975_v63 = vadd.f32 1.0, %v4578_v61  ;;  %v4580_v2 = vpop.eup %4579 }
0x20b3   :  { %4581 = vrcp.f32 %v2975_v63 }
0x20bd   :  { %v4582_v3 = vpop.eup %4581 }
0x20be   :  { %v2979_v5 = vsel %vm178_vm2, %v4582_v3, %v4580_v2 }
0x20bf   :  { %2985 = vrot.lane.b32.xlu1 %v2979_v5, %s4871_s5  ;;  %v2983_v9 = vmul.f32 %v2981_v6, %v2979_v5 }
0x2131   :  { %v2986_v36 = vpop.permute.xlu1 %2985 }
0x2132   :  { %v2988_v57 = vmul.f32 %v2986_v36, %v2979_v5 }
0x2134   :  { %2990 = vrot.lane.b32.xlu0 %v2988_v57, %s4871_s5 }
0x21a6   :  { %v2991_v43 = vpop.permute.xlu0 %2990 }
0x21a7   :  { %v2993_v29 = vadd.f32 %v2991_v43, %v2983_v9  ;;  %v3664_v43 = vmul.f32 -1.442695, %v5575_v53 }
0x21a9   :  { %4583 = vtanh.f32 %v2993_v29  ;;  %v3086_v26 = vrot.slane %v2993_v29, 6 }
0x21b3   :  { %v4584_v33 = vpop.eup %4583 }
0x21b4   :  { %2996 = vrot.lane.b32.xlu1 %v4584_v33, %s4871_s5 }
0x2226   :  { %v2997_v11 = vpop.permute.xlu1 %2996 }
0x2227   :  { %v2999_v12 = vmul.f32 %v2997_v11, %v2979_v5 }
0x2229   :  { %v3001_v62 = vrot.slane %v2999_v12, 6 }
0x222b   :  { %3002 = vrot.lane.b32.xlu0 %v3001_v62, %s4872_s6 }
0x229d   :  { %v3003_v13 = vpop.permute.xlu0 %3002 }
0x229e   :  { %4147 = vmatmul.mubr.msk.f32.vlgmr.msra.gmra.mrb[28].mxu1 %vm364_vm3, %v3003_v13 }
0x229f   :  { %4384 = vmatpush3.bf16.msra.mxu1 %v5534_v27  ;;  %4168 = vmatprep.mubr.msk.f32.mxu1 %vm4869_vm0, %v4870_v1 }
0x22a0   :  { %4385 = vmatprep.subr.bf16.mxu1 %v4868_v0 }
0x22a3   :  { %4387 = vmatpush3.bf16.msra.mxu1 %v5539_v35 }
0x22a4   :  { %4394 = vmatprep.subr.bf16.mxu1 %v4868_v0 }
0x2371   :  { %v3072_v14 = vpop.f32.mrb[28].mxu1 }
0x2372   :  { %v3076_v18 = vadd.f32 %v3072_v14, %v5567_v42  ;;  %v4148_v17 = vpop.f32.mrb[29].mxu1 }
0x2374   :  { %v3672_v19 = vmul.f32 -1.442695, %v3076_v18 }
0x2376   :  { %4585 = vpow2.f32 %v3672_v19 }
0x2377   :  { %4587 = vtanh.f32 %v3076_v18 }
0x2380   :  { %v4586_v20 = vpop.eup %4585 }
0x2381   :  { %v3080_v22 = vadd.f32 1.0, %v4586_v20  ;;  %v4588_v32 = vpop.eup %4587 }
0x2383   :  { %4589 = vrcp.f32 %v3080_v22 }
0x238d   :  { %v4590_v23 = vpop.eup %4589 }
0x238e   :  { %v3084_v25 = vsel %vm178_vm2, %v4590_v23, %v4588_v32 }
0x238f   :  { %3090 = vrot.lane.b32.xlu1 %v3084_v25, %s4871_s5  ;;  %v3088_v28 = vmul.f32 %v3086_v26, %v3084_v25 }
0x2401   :  { %v3091_v8 = vpop.permute.xlu1 %3090 }
0x2402   :  { %v3093_v24 = vmul.f32 %v3091_v8, %v3084_v25 }
0x2404   :  { %3095 = vrot.lane.b32.xlu0 %v3093_v24, %s4871_s5 }
0x2476   :  { %v3096_v30 = vpop.permute.xlu0 %3095 }
0x2477   :  { %v3098_v15 = vadd.f32 %v3096_v30, %v3088_v28  ;;  %v3432_v30 = vld [vmem:[#allocation20] sm:$0xff] }
0x2479   :  { %4591 = vtanh.f32 %v3098_v15  ;;  %v3193_v10 = vrot.slane %v3098_v15, 6  ;;  %v3433_v15 = vld [vmem:[#allocation20 + $0x8] sm:$0xff] }
0x2483   :  { %v4592_v21 = vpop.eup %4591 }
0x2484   :  { %3101 = vrot.lane.b32.xlu1 %v4592_v21, %s4871_s5  ;;  %v4395_v21 = vpack.c.bf16 %v3433_v15, %v3432_v30 }
0x24f6   :  { %v3102_v31 = vpop.permute.xlu1 %3101 }
0x24f7   :  { %v3104_v34 = vmul.f32 %v3102_v31, %v3084_v25  ;;  %v3434_v31 = vld [vmem:[#allocation20 + $0x10] sm:$0xff] }
0x24f9   :  { %3106 = vrot.lane.b32.xlu0 %v3104_v34, %s4872_s6  ;;  %v3435_v34 = vld [vmem:[#allocation20 + $0x18] sm:$0xff] }
0x256b   :  { %v3107_v37 = vpop.permute.xlu0 %3106 }
0x256c   :  { %4158 = vmatmul.mubr.msk.f32.vlgmr.msra.gmra.mrb[24].mxu0 %vm364_vm3, %v3107_v37  ;;  %v4398_v37 = vpack.c.bf16 %v3435_v34, %v3434_v31 }
0x256d   :  { %4390 = vmatpush3.bf16.msra.mxu0 %v5534_v27  ;;  %4179 = vmatprep.mubr.msk.f32.mxu0 %vm4869_vm0, %v4870_v1 }
0x256e   :  { %4391 = vmatprep.subr.bf16.mxu0 %v4868_v0 }
0x2571   :  { %4393 = vmatpush3.bf16.msra.mxu0 %v5539_v35 }
0x2572   :  { %4400 = vmatprep.subr.bf16.mxu0 %v4868_v0 }
0x263f   :  { %v3176_v38 = vpop.f32.mrb[24].mxu0 }
0x2640   :  { %v3181_v39 = vrot.slane %v3176_v38, 6  ;;  %v4159_v40 = vpop.f32.mrb[25].mxu0 }
0x2642   :  { %v3183_v41 = vadd.f32 %v3181_v39, %v5567_v42 }
0x2644   :  { %v3674_v16 = vmul.f32 -1.442695, %v3183_v41 }
0x2646   :  { %4593 = vpow2.f32 %v3674_v16 }
0x2647   :  { %4595 = vtanh.f32 %v3183_v41 }
0x2650   :  { %v4594_v7 = vpop.eup %4593 }
0x2651   :  { %v3187_v44 = vadd.f32 1.0, %v4594_v7  ;;  %v4596_v27 = vpop.eup %4595 }
0x2653   :  { %4597 = vrcp.f32 %v3187_v44 }
0x265d   :  { %v4598_v4 = vpop.eup %4597 }
0x265e   :  { %v3191_v54 = vsel %vm178_vm2, %v4598_v4, %v4596_v27 }
0x265f   :  { %3197 = vrot.lane.b32.xlu1 %v3191_v54, %s4871_s5  ;;  %v3195_v45 = vmul.f32 %v3193_v10, %v3191_v54 }
0x26d1   :  { %v3198_v35 = vpop.permute.xlu1 %3197 }
0x26d2   :  { %v3200_v47 = vmul.f32 %v3198_v35, %v3191_v54 }
0x26d4   :  { %3202 = vrot.lane.b32.xlu0 %v3200_v47, %s4871_s5 }
0x2746   :  { %v3203_v48 = vpop.permute.xlu0 %3202 }
0x2747   :  { %v3205_v49 = vadd.f32 %v3203_v48, %v3195_v45 }
0x2749   :  { %4599 = vtanh.f32 %v3205_v49  ;;  %v3301_v33 = vrot.slane %v3205_v49, 6 }
0x2753   :  { %v4600_v50 = vpop.eup %4599 }
0x2754   :  { %3208 = vrot.lane.b32.xlu1 %v4600_v50, %s4871_s5 }
0x27c6   :  { %v3209_v51 = vpop.permute.xlu1 %3208 }
0x27c7   :  { %v3211_v52 = vmul.f32 %v3209_v51, %v3191_v54 }
0x27c9   :  { %v3213_v55 = vrot.slane %v3211_v52, 2 }
0x27cb   :  { %3214 = vrot.lane.b32.xlu0 %v3213_v55, %s4872_s6 }
0x283d   :  { %v3215_v56 = vpop.permute.xlu0 %3214 }
0x283e   :  { %4169 = vmatmul.mubr.msk.f32.vlgmr.msra.gmra.mrb[30].mxu1 %vm364_vm3, %v3215_v56  ;;  %v3428_v56 = vld [vmem:[#allocation18] sm:$0xff] }
0x283f   :  { %4190 = vmatprep.mubr.msk.f32.mxu1 %vm4869_vm0, %v4870_v1  ;;  %4396 = vmatpush3.bf16.msra.mxu1 %v4395_v21 }
0x2840   :  { %4397 = vmatprep.subr.bf16.mxu1 %v4868_v0 }
0x2843   :  { %4399 = vmatpush3.bf16.msra.mxu1 %v4398_v37 }
0x2911   :  { %v3284_v58 = vpop.f32.mrb[30].mxu1 }
0x2912   :  { %v3289_v59 = vrot.slane %v3284_v58, 4  ;;  %v4170_v60 = vpop.f32.mrb[31].mxu1  ;;  %v3429_v58 = vld [vmem:[#allocation18 + $0x8] sm:$0xff] }
0x2913   :  { %v3431_v60 = vld [vmem:[#allocation18 + $0x18] sm:$0xff] }
0x2914   :  { %v3291_v61 = vadd.f32 %v3289_v59, %v5567_v42  ;;  %v4401_v59 = vpack.c.bf16 %v3429_v58, %v3428_v56 }
0x2916   :  { %v3676_v63 = vmul.f32 -1.442695, %v3291_v61 }
0x2918   :  { %4601 = vpow2.f32 %v3676_v63 }
0x2919   :  { %4603 = vtanh.f32 %v3291_v61  ;;  %v4404_v61 = vpack.c.bf16 %v3431_v60, %v3430_v46 }
0x2922   :  { %v4602_v2 = vpop.eup %4601 }
0x2923   :  { %v3295_v3 = vadd.f32 1.0, %v4602_v2  ;;  %v4604_v5 = vpop.eup %4603 }
0x2925   :  { %4605 = vrcp.f32 %v3295_v3 }
0x2926   :  { %4607 = vpow2.f32 %v3664_v43 }
0x292f   :  { %v4606_v36 = vpop.eup %4605 }
0x2930   :  { %v3299_v57 = vsel %vm178_vm2, %v4606_v36, %v4604_v5  ;;  %v4608_v29 = vpop.eup %4607 }
0x2931   :  { %3305 = vrot.lane.b32.xlu1 %v3299_v57, %s4871_s5  ;;  %v3303_v11 = vmul.f32 %v3301_v33, %v3299_v57  ;;  %v2655_v12 = vadd.f32 1.0, %v4608_v29 }
0x29a3   :  { %v3306_v6 = vpop.permute.xlu1 %3305 }
0x29a4   :  { %v3308_v9 = vmul.f32 %v3306_v6, %v3299_v57  ;;  %v3681_v6 = vld [vmem:[%s5715_s15] ss:$0 sm:$0xff] }
0x29a6   :  { %3310 = vrot.lane.b32.xlu0 %v3308_v9, %s4871_s5 }
0x2a18   :  { %v3311_v62 = vpop.permute.xlu0 %3310 }
0x2a19   :  { %v3313_v13 = vadd.f32 %v3311_v62, %v3303_v11 }
0x2a1b   :  { %4609 = vtanh.f32 %v3313_v13  ;;  %v3409_v50 = vrot.slane %v3313_v13, 6 }
0x2a1c   :  { %4611 = vrcp.f32 %v2655_v12 }
0x2a1d   :  { %4613 = vtanh.f32 %v5575_v53 }
0x2a25   :  { %v4610_v14 = vpop.eup %4609 }
0x2a26   :  { %v4612_v18 = vpop.eup %4611  ;;  %3316 = vrot.lane.b32.xlu1 %v4610_v14, %s4871_s5 }
0x2a27   :  { %v4614_v17 = vpop.eup %4613 }
0x2a28   :  { %v2659_v19 = vsel %vm178_vm2, %v4612_v18, %v4614_v17 }
0x2a29   :  { %v2660_v8 = vmul.f32 0.0, %v2659_v19 }
0x2a2a   :  { %2662 = vrot.lane.b32.xlu1 %v2659_v19, %s4871_s5 }
0x2a98   :  { %v3317_v20 = vpop.permute.xlu1 %3316 }
0x2a99   :  { %v3319_v22 = vmul.f32 %v3317_v20, %v3299_v57 }
0x2a9b   :  { %v3321_v32 = vrot.slane %v3319_v22, 4 }
0x2a9c   :  { %v2663_v23 = vpop.permute.xlu1 %2662 }
0x2a9d   :  { %v2665_v25 = vmul.f32 %v2663_v23, %v2659_v19  ;;  %3322 = vrot.lane.b32.xlu0 %v3321_v32, %s4872_s6 }
0x2a9f   :  { %2667 = vrot.lane.b32.xlu1 %v2665_v25, %s4871_s5 }
0x2b0f   :  { %v3323_v53 = vpop.permute.xlu0 %3322 }
0x2b10   :  { %4180 = vmatmul.mubr.msk.f32.vlgmr.msra.gmra.mrb[26].mxu0 %vm364_vm3, %v3323_v53 }
0x2b11   :  { %v2668_v24 = vpop.permute.xlu1 %2667  ;;  %4201 = vmatprep.mubr.msk.f32.mxu0 %vm4869_vm0, %v4870_v1  ;;  %4402 = vmatpush3.bf16.msra.mxu0 %v4401_v59 }
0x2b12   :  { %v2670_v26 = vadd.f32 %v2668_v24, %v2660_v8  ;;  %4403 = vmatprep.subr.bf16.mxu0 %v4868_v0 }
0x2b14   :  { %4615 = vtanh.f32 %v2670_v26 }
0x2b15   :  { %4405 = vmatpush3.bf16.msra.mxu0 %v4404_v61 }
0x2b1e   :  { %v4616_v28 = vpop.eup %4615 }
0x2b1f   :  { %2673 = vrot.lane.b32.xlu1 %v4616_v28, %s4871_s5 }
0x2b91   :  { %v2674_v38 = vpop.permute.xlu1 %2673 }
0x2b92   :  { %v2676_v39 = vmul.f32 %v2674_v38, %v2659_v19 }
0x2b94   :  { %v3437_v40 = vrot.slane %v2676_v39, 6 }
0x2b96   :  { %3438 = vrot.lane.b32.xlu1 %v3437_v40, %s4872_s6 }
0x2be3   :  { %v3392_v1 = vpop.f32.mrb[26].mxu0 }
0x2be4   :  { %v3397_v41 = vrot.slane %v3392_v1, 2  ;;  %v4181_v16 = vpop.f32.mrb[27].mxu0 }
0x2be6   :  { %v3399_v7 = vadd.f32 %v3397_v41, %v5567_v42 }
0x2be8   :  { %v3678_v44 = vmul.f32 -1.442695, %v3399_v7 }
0x2bea   :  { %4617 = vpow2.f32 %v3678_v44 }
0x2beb   :  { %4619 = vtanh.f32 %v3399_v7 }
0x2bf4   :  { %v4618_v27 = vpop.eup %4617 }
0x2bf5   :  { %v3403_v4 = vadd.f32 1.0, %v4618_v27  ;;  %v4620_v54 = vpop.eup %4619 }
0x2bf7   :  { %4621 = vrcp.f32 %v3403_v4 }
0x2c01   :  { %v4622_v35 = vpop.eup %4621 }
0x2c02   :  { %v3407_v47 = vsel %vm178_vm2, %v4622_v35, %v4620_v54 }
0x2c03   :  { %3413 = vrot.lane.b32.xlu0 %v3407_v47, %s4871_s5  ;;  %v3411_v51 = vmul.f32 %v3409_v50, %v3407_v47 }
0x2c08   :  { %v3439_v10 = vpop.permute.xlu1 %3438 }
0x2c09   :  { %4191 = vmatmul.mubr.msk.f32.vlgmr.msra.gmra.mrb[32].mxu1 %vm364_vm3, %v3439_v10 }
0x2c75   :  { %v3414_v45 = vpop.permute.xlu0 %3413 }
0x2c76   :  { %v3416_v48 = vmul.f32 %v3414_v45, %v3407_v47 }
0x2c78   :  { %3418 = vrot.lane.b32.xlu0 %v3416_v48, %s4871_s5 }
0x2cdc   :  { %v3508_v42 = vpop.f32.mrb[32].mxu1 }
0x2cdd   :  { %v4192_v49 = vpop.f32.mrb[33].mxu1 }
0x2cea   :  { %v3419_v52 = vpop.permute.xlu0 %3418 }
0x2ceb   :  { %v3421_v55 = vadd.f32 %v3419_v52, %v3411_v51 }
0x2ced   :  { %4623 = vtanh.f32 %v3421_v55 }
0x2cf7   :  { %v4624_v63 = vpop.eup %4623 }
0x2cf8   :  { %3424 = vrot.lane.b32.xlu0 %v4624_v63, %s4871_s5 }
0x2d6a   :  { %v3425_v2 = vpop.permute.xlu0 %3424 }
0x2d6b   :  { %v3427_v3 = vmul.f32 %v3425_v2, %v3407_v47 }
0x2d6d   :  { %v3513_v5 = vrot.slane %v3427_v3, 6 }
0x2d6f   :  { %3514 = vrot.lane.b32.xlu0 %v3513_v5, %s4872_s6 }
0x2de1   :  { %v3515_v36 = vpop.permute.xlu0 %3514 }
0x2de2   :  { %4202 = vmatmul.mubr.msk.f32.vlgmr.msra.gmra.mrb[28].mxu0 %vm364_vm3, %v3515_v36 }
0x2eb5   :  { %v3584_v57 = vpop.f32.mrb[28].mxu0 }
0x2eb6   :  { %v3585_v0 = vadd.f32 %v3584_v57, %v3508_v42  ;;  %v4203_v9 = vpop.f32.mrb[29].mxu0 }
0x2eb8   :  { %v3595_v43 = vadd.f32 %v3681_v6, %v3585_v0 }
0x2eba   :  { %3597 = vst.msk [vmem:[#allocation21] sm:$0x3] %vm3596_vm8, %v3595_v43 }
0x2ebb   :  { %4834 = shalt.err (!%p4831_p6)
}
0x2ebc   :  { %s4835_s5 = scalar_lea.hbm %s5716_s16, 32 }
0x2ebd   :  { %p4836_p7 = scmp.ne.s32.totalorder %s5716_s16, %s4835_s5  ;;  %p4839_p8 = scmp.lt.u32.totalorder %s4835_s5, %s5716_s16 }
0x2ebf   :  { %p4841_p9 = pnand %p4839_p8, %p4836_p7 }
0x2ec1   :  { %4844 = shalt.err (!%p4841_p9)
}
0x2ec2   :  { %3607 = dma.vmem_to_hbm [thread:$0]  %s3605_s1, 32, %s5716_s16, [#allocation8]  }
0x2ec3   :  { %4855 = dma.done.wait [#allocation8], 32  }
0x2ec4   :  { %4856 = vsyncadd [#allocation8], 4294967264 }
0x2ec5   :  { %3611 = vsyncpa [#allocation7], 1 }
0x2ec6   :  { %3612 = vsyncpa [#allocation10], 1 }
0x2ec7   :  { %3613 = vsyncpa [#allocation13], 1 }
0x2ec8   :  { %3614 = vsyncpa [#allocation16], 1 }
0x2ec9   :  { %3615 = vsyncpa [#allocation19], 1 }
0x2eca   :  { %3616 = vsyncpa [#allocation8], 1 }

</bundles_post_ra>
